<compile_context>
chip_gen: v7x
topology: tpu7x:2x2x1
jax: 0.10.0
libtpu: 0.0.40
codegen_flags: <defaults>
</compile_context>

<pallas_src>
import functools
from typing import NamedTuple

import jax
import jax.numpy as jnp
from jax.experimental import pallas as pl
from jax.experimental.pallas import tpu as pltpu

ACT = jnp.bfloat16        # activation / matmul-operand dtype
NEG_INF = -1e9


# ----------------------------------------------------------------------------
# Data containers (mirror BatchMMSits / SITS / LatRepr)
# ----------------------------------------------------------------------------
class SITS(NamedTuple):
    sits: jnp.ndarray        # (B, T, C, H, W) float32
    padd_index: jnp.ndarray  # (B, T) bool, True = padded timestep
    h: int
    w: int


class BatchMMSits(NamedTuple):
    sits1a: SITS
    sits1b: SITS
    sits2a: SITS
    sits2b: SITS


class LatRepr(NamedTuple):
    s1a: jnp.ndarray
    s1b: jnp.ndarray
    s2a: jnp.ndarray
    s2b: jnp.ndarray


# ----------------------------------------------------------------------------
# VMEM-aware tiling helpers (review items 4, 5, 7)
# ----------------------------------------------------------------------------
def _vmem_limit_bytes():
    """Per-generation VMEM budget: v7x has 64 MiB/TC vs 128 MiB on v5e/v6e."""
    cap = 0
    try:
        info = pltpu.get_tpu_info()
        cap = int(getattr(info, "vmem_capacity_bytes", 0) or 0)
    except Exception:
        cap = 0
    if cap <= 0:
        cap = 64 * 1024 * 1024            # conservative (v7x-sized) fallback
    return min(cap // 2, 64 * 1024 * 1024)


_VMEM_LIMIT = _vmem_limit_bytes()


def _pick_rows(n, per_row_bytes, min_steps=4, sublane=16):
    """Largest row block that (a) divides n, (b) is a 16-row multiple (bf16
    sublane tile), (c) fits the per-generation VMEM budget with headroom for
    double buffering, (d) keeps >= min_steps grid steps so the software
    pipeline (and both v7x TensorCores) have work to overlap."""
    budget = _VMEM_LIMIT // 3
    max_rows = max(1, budget // max(per_row_bytes, 1))

    def search(step, need_steps):
        best = None
        r = step
        while r <= n:
            if n % r == 0 and r <= max_rows and (n // r) >= need_steps:
                best = r
            r += step
        return best

    for step, need in ((sublane, min_steps), (sublane, 1), (8, 1)):
        best = search(step, need)
        if best is not None:
            return best
    return n


def _bytes(*arrs):
    return int(sum(int(a.size) * a.dtype.itemsize for a in arrs))


# ----------------------------------------------------------------------------
# In-kernel attention helpers (single batched softmax over all heads)
# ----------------------------------------------------------------------------
def _split_heads(x3, base, nh, dh):
    """(rows, seq, F) -> (nh*rows, seq, dh): head-major batch via leading concat
    of static lane slices (no per-head compute fragmentation)."""
    return jnp.concatenate(
        [x3[:, :, base + h * dh: base + (h + 1) * dh] for h in range(nh)],
        axis=0)


def _merge_heads(ctx_b, nh, rows):
    """(nh*rows, seq, dh) -> (rows, seq, nh*dh): inverse of _split_heads."""
    return jnp.concatenate(
        [ctx_b[h * rows:(h + 1) * rows] for h in range(nh)], axis=-1)


def _attend(q_b, k_b, v_b, bias_b):
    """One batched attention over (batch = heads*rows, seq, dh) operands:
    single score matmul, single additive-bias add, single softmax chain and a
    single P@V matmul (softmax scale is pre-folded into Q)."""
    s = jnp.einsum("bqd,bkd->bqk", q_b, k_b,
                   preferred_element_type=jnp.float32)
    s = s + bias_b                                   # additive -1e9 padd bias
    s = s - jnp.max(s, axis=-1, keepdims=True)
    p = jnp.exp(s)
    p = p * pl.reciprocal(jnp.sum(p, axis=-1, keepdims=True), approx=True)
    return jnp.einsum("bqk,bkd->bqd", p.astype(v_b.dtype), v_b,
                      preferred_element_type=jnp.float32)


# ----------------------------------------------------------------------------
# Fused UBarn encoder block kernel (review item 1)
# ----------------------------------------------------------------------------
def _ubarn_block_kernel(tok_ref, bias_ref, pw_ref, pb_ref, qkvw_ref, qkvb_ref,
                        ow_ref, ob_ref, f1w_ref, f1b_ref, f2w_ref, f2b_ref,
                        o_ref, *, num_heads, d, t):
    nh = num_heads
    dh = d // nh
    rows = bias_ref.shape[0]

    # 1) channel projection; residual stream kept in f32, matmul operands bf16.
    x = (jnp.dot(tok_ref[...], pw_ref[...],
                 preferred_element_type=jnp.float32) + pb_ref[...])   # (rows*t, d)

    # 2) fused QKV projection (softmax scale is pre-folded into the Q columns).
    qkv = (jnp.dot(x.astype(ACT), qkvw_ref[...],
                   preferred_element_type=jnp.float32)
           + qkvb_ref[...]).astype(ACT)                               # (rows*t, 3d)
    qkv3 = qkv.reshape(rows, t, 3 * d)       # t == 8-sublane tile -> layout-free

    q_b = _split_heads(qkv3, 0 * d, nh, dh)                 # (nh*rows, t, dh)
    k_b = _split_heads(qkv3, 1 * d, nh, dh)
    v_b = _split_heads(qkv3, 2 * d, nh, dh)
    bias3 = bias_ref[...][:, None, :]                       # (rows, 1, t) f32
    bias_b = jnp.concatenate([bias3] * nh, axis=0)          # (nh*rows, 1, t)

    ctx = _attend(q_b, k_b, v_b, bias_b)                    # (nh*rows, t, dh) f32
    ctx = _merge_heads(ctx.astype(ACT), nh, rows)           # (rows, t, d) bf16
    ctx2 = ctx.reshape(rows * t, d)

    # 3) attention output projection + residual (folded in the same kernel).
    x = (jnp.dot(ctx2, ow_ref[...], preferred_element_type=jnp.float32)
         + ob_ref[...] + x)

    # 4) FFN + residual; the hidden activation never leaves VMEM.
    hdn = jnp.maximum(
        jnp.dot(x.astype(ACT), f1w_ref[...],
                preferred_element_type=jnp.float32) + f1b_ref[...],
        0.0).astype(ACT)
    y = (jnp.dot(hdn, f2w_ref[...], preferred_element_type=jnp.float32)
         + f2b_ref[...] + x)

    o_ref[...] = y.astype(o_ref.dtype)


def ubarn_block(tokens, attn_bias, p, num_heads):
    """Fused CleanUBarnReprEncoder block: channel proj -> temporal MHA (+res)
    -> FFN (+res), one pallas_call over row blocks of (b h w).

    Note: with d=32 / dh=8 / T=8 the MXU is heavily under-utilised by design;
    the binding cost here is launch overhead + loads/stores, which the fusion
    removes (review item 11).
    TODO(synk): LayerNorm, the multi-layer UBarn transformer stack and the
    conv/patch embedding of CleanUBarnReprEncoder are simplified to a single
    fused linear + MHA + FFN block.
    """
    N, T, C = tokens.shape
    d = p["proj_w"].shape[1]
    assert d % num_heads == 0
    per_row = T * (2 * C + 40 * d) + 8 * num_heads * T * T
    R = _pick_rows(N, per_row)
    grid = (N // R,)

    flops = 2 * N * T * d * (C + 3 * d + d + 4 * d) \
        + 4 * N * num_heads * T * T * (d // num_heads)
    args = (tokens.reshape(N * T, C), attn_bias,
            p["proj_w"], p["proj_b"], p["w_qkv"], p["b_qkv"], p["wo"], p["bo"],
            p["ffn_w1"], p["ffn_b1"], p["ffn_w2"], p["ffn_b2"])
    bytes_acc = _bytes(*args) + N * T * d * 2

    # TODO(synk): weight specs (constant index maps) could use
    # pipeline_mode=pl.Buffered(1) to drop the redundant double buffer; left
    # at the default (negligible at these sizes).
    out = pl.pallas_call(
        functools.partial(_ubarn_block_kernel, num_heads=num_heads, d=d, t=T),
        out_shape=jax.ShapeDtypeStruct((N * T, d), ACT),
        grid=grid,
        in_specs=[
            pl.BlockSpec((R * T, C), lambda i: (i, 0)),
            pl.BlockSpec((R, T), lambda i: (i, 0)),
            pl.BlockSpec((C, d), lambda i: (0, 0)),
            pl.BlockSpec((1, d), lambda i: (0, 0)),
            pl.BlockSpec((d, 3 * d), lambda i: (0, 0)),
            pl.BlockSpec((1, 3 * d), lambda i: (0, 0)),
            pl.BlockSpec((d, d), lambda i: (0, 0)),
            pl.BlockSpec((1, d), lambda i: (0, 0)),
            pl.BlockSpec((d, 2 * d), lambda i: (0, 0)),
            pl.BlockSpec((1, 2 * d), lambda i: (0, 0)),
            pl.BlockSpec((2 * d, d), lambda i: (0, 0)),
            pl.BlockSpec((1, d), lambda i: (0, 0)),
        ],
        out_specs=pl.BlockSpec((R * T, d), lambda i: (i, 0)),
        compiler_params=pltpu.CompilerParams(
            dimension_semantics=("parallel",),
            vmem_limit_bytes=_VMEM_LIMIT),
        cost_estimate=pl.CostEstimate(
            flops=int(flops),
            transcendentals=int(N * num_heads * T * T),
            bytes_accessed=int(bytes_acc)),
    )(*args)
    return out.reshape(N, T, d)


# ----------------------------------------------------------------------------
# Fused TemporalProjector + AliseProj kernel
# ----------------------------------------------------------------------------
def _temp_proj_kernel(tok_ref, bias_ref, qh_ref, kvw_ref, kvb_ref, ow_ref,
                      ob_ref, p1w_ref, p1b_ref, p2w_ref, p2b_ref,
                      al_ref, emb_ref, *, num_heads, d, n_q, t):
    nh = num_heads
    dh = d // nh
    rows = bias_ref.shape[0]

    # Fused KV projection of the encoded tokens.
    kv = (jnp.dot(tok_ref[...], kvw_ref[...],
                  preferred_element_type=jnp.float32)
          + kvb_ref[...]).astype(ACT)                        # (rows*t, 2d)
    kv3 = kv.reshape(rows, t, 2 * d)
    k_b = _split_heads(kv3, 0 * d, nh, dh)                   # (nh*rows, t, dh)
    v_b = _split_heads(kv3, 1 * d, nh, dh)

    # Shared learned queries: Q projection + softmax scale folded in at init;
    # the resident (nh*n_q, dh) block is replicated across the (small) row
    # block only here, never in HBM.
    q_all = qh_ref[...]                                      # (nh*n_q, dh) bf16
    q_b = jnp.concatenate(
        [jnp.broadcast_to(q_all[h * n_q:(h + 1) * n_q][None, :, :],
                          (rows, n_q, dh)) for h in range(nh)],
        axis=0)                                              # (nh*rows, n_q, dh)
    bias3 = bias_ref[...][:, None, :]                        # (rows, 1, t)
    bias_b = jnp.concatenate([bias3] * nh, axis=0)           # (nh*rows, 1, t)

    ctx = _attend(q_b, k_b, v_b, bias_b)                     # (nh*rows, n_q, dh)
    ctx = _merge_heads(ctx.astype(ACT), nh, rows)            # (rows, n_q, d)
    ctx2 = ctx.reshape(rows * n_q, d)

    aligned = (jnp.dot(ctx2, ow_ref[...], preferred_element_type=jnp.float32)
               + ob_ref[...])                                # (rows*n_q, d) f32
    al_ref[...] = aligned.astype(al_ref.dtype)

    # AliseProj MLP fused in (pointwise over tokens -> per-satellite is exact).
    # TODO(synk): AliseProj's BatchNorm / freeze options are not reproduced.
    hdn = jnp.maximum(
        jnp.dot(aligned.astype(ACT), p1w_ref[...],
                preferred_element_type=jnp.float32) + p1b_ref[...],
        0.0).astype(ACT)
    emb = (jnp.dot(hdn, p2w_ref[...], preferred_element_type=jnp.float32)
           + p2b_ref[...])
    emb_ref[...] = emb.astype(emb_ref.dtype)


def temporal_projector_block(tokens, attn_bias, tp, proj_p, num_heads):
    """Shared learned queries cross-attending over the encoded tokens, with the
    embedding projector (AliseProj) fused into the same kernel."""
    N, T, d = tokens.shape
    nh = num_heads
    n_q = tp["q_heads"].shape[0] // nh
    l_dim = proj_p["w1"].shape[1]
    out_ch = proj_p["w2"].shape[1]

    per_row = T * 16 * d + 8 * nh * n_q * T \
        + n_q * (8 * d + 4 * l_dim + 4 * out_ch)
    R = _pick_rows(N, per_row)
    grid = (N // R,)

    flops = 2 * N * T * d * 2 * d + 4 * N * nh * n_q * T * (d // nh) \
        + 2 * N * n_q * (d * d + d * l_dim + l_dim * out_ch)
    args = (tokens.reshape(N * T, d), attn_bias, tp["q_heads"],
            tp["w_kv"], tp["b_kv"], tp["wo"], tp["bo"],
            proj_p["w1"], proj_p["b1"], proj_p["w2"], proj_p["b2"])
    bytes_acc = _bytes(*args) + N * n_q * (d + out_ch) * 4

    aligned, emb = pl.pallas_call(
        functools.partial(_temp_proj_kernel, num_heads=nh, d=d, n_q=n_q, t=T),
        out_shape=(jax.ShapeDtypeStruct((N * n_q, d), jnp.float32),
                   jax.ShapeDtypeStruct((N * n_q, out_ch), jnp.float32)),
        grid=grid,
        in_specs=[
            pl.BlockSpec((R * T, d), lambda i: (i, 0)),
            pl.BlockSpec((R, T), lambda i: (i, 0)),
            # constant index map -> the shared query block stays resident.
            pl.BlockSpec((nh * n_q, d // nh), lambda i: (0, 0)),
            pl.BlockSpec((d, 2 * d), lambda i: (0, 0)),
            pl.BlockSpec((1, 2 * d), lambda i: (0, 0)),
            pl.BlockSpec((d, d), lambda i: (0, 0)),
            pl.BlockSpec((1, d), lambda i: (0, 0)),
            pl.BlockSpec((d, l_dim), lambda i: (0, 0)),
            pl.BlockSpec((1, l_dim), lambda i: (0, 0)),
            pl.BlockSpec((l_dim, out_ch), lambda i: (0, 0)),
            pl.BlockSpec((1, out_ch), lambda i: (0, 0)),
        ],
        out_specs=[pl.BlockSpec((R * n_q, d), lambda i: (i, 0)),
                   pl.BlockSpec((R * n_q, out_ch), lambda i: (i, 0))],
        compiler_params=pltpu.CompilerParams(
            dimension_semantics=("parallel",),
            vmem_limit_bytes=_VMEM_LIMIT),
        cost_estimate=pl.CostEstimate(
            flops=int(flops),
            transcendentals=int(N * nh * n_q * T),
            bytes_accessed=int(bytes_acc)),
    )(*args)
    return aligned.reshape(N, n_q, d), emb.reshape(N, n_q, out_ch)


# ----------------------------------------------------------------------------
# Module glue
# ----------------------------------------------------------------------------
def encode_views(batch, sat, params, num_heads):
    """merge2views + fused UBarn encoder + per-row padd bias, per satellite."""
    if "1" in sat:
        v1, v2 = batch.sits1a, batch.sits1b
        enc_p = params["encoder_s1"]
    else:
        v1, v2 = batch.sits2a, batch.sits2b
        enc_p = params["encoder_s2"]
    merged_sits = jnp.concatenate([v1.sits, v2.sits], axis=0)         # (2B,T,C,H,W)
    merged_padd = jnp.concatenate([v1.padd_index, v2.padd_index], 0)  # (2B,T) bool
    B2, T, C, H, W = merged_sits.shape
    N = B2 * H * W
    tokens = jnp.transpose(merged_sits, (0, 3, 4, 1, 2)).reshape(N, T, C).astype(ACT)
    padd_rows = jnp.repeat(merged_padd, H * W, axis=0)                # ((b h w), t)
    # Additive attention bias computed once; padded -> -1e9, valid -> 0.
    # TODO(synk): rows that are entirely padded fall back to a uniform softmax
    # over padded keys, not the exact key_padding_mask NaN semantics of PyTorch.
    attn_bias = jnp.where(padd_rows, NEG_INF, 0.0).astype(jnp.float32)  # (N, T)
    tok_enc = ubarn_block(tokens, attn_bias, enc_p, num_heads)          # (N,T,d)
    return tok_enc, attn_bias


def compute_mm_embeddings(aligned_s1, aligned_s2, emb_s1, emb_s2, h, w):
    two_bhw, n_q, d = aligned_s1.shape
    bhw = two_bhw // 2
    a1 = aligned_s1.reshape(2, bhw, n_q, d)   # '(view bhw) t c -> view bhw t c'
    a2 = aligned_s2.reshape(2, bhw, n_q, d)

    # TODO(synk): mm_embedding duplicates each view twice (pure HBM copy of the
    # aligned representations); kept to preserve the reference output contract.
    mm_embedding = jnp.concatenate(
        [a2[0], a2[0], a2[1], a2[1], a1[0], a1[0], a1[1], a1[1]], axis=0)

    B = bhw // (h * w)

    def rearrange_embeddings(x):  # '(b h w) t c -> b t c h w'
        return jnp.transpose(x.reshape(B, h, w, n_q, d), (0, 3, 4, 1, 2))

    reprojected = LatRepr(
        rearrange_embeddings(a1[0]), rearrange_embeddings(a1[1]),
        rearrange_embeddings(a2[0]), rearrange_embeddings(a2[1]))

    out_ch = emb_s1.shape[-1]
    e1 = emb_s1.reshape(2, bhw, n_q, out_ch)
    e2 = emb_s2.reshape(2, bhw, n_q, out_ch)
    out_emb = LatRepr(s1a=e1[0], s1b=e1[1], s2a=e2[0], s2b=e2[1])
    return reprojected, out_emb, mm_embedding


def malice_encoder_forward(params, batch, num_heads):
    h, w = batch.sits1a.h, batch.sits1a.w
    tok_s1, bias_s1 = encode_views(batch, "s1", params, num_heads)
    tok_s2, bias_s2 = encode_views(batch, "s2", params, num_heads)

    tp, proj_p = params["temp_proj"], params["projector"]
    aligned_s1, emb_s1 = temporal_projector_block(tok_s1, bias_s1, tp, proj_p,
                                                  num_heads)
    aligned_s2, emb_s2 = temporal_projector_block(tok_s2, bias_s2, tp, proj_p,
                                                  num_heads)
    return compute_mm_embeddings(aligned_s1, aligned_s2, emb_s1, emb_s2, h, w)


# ----------------------------------------------------------------------------
# Deterministic parameter init (matmul weights bf16, biases f32); the fused
# QKV / KV weights, the folded softmax scale and the pre-projected learned
# queries are all built here so the kernels never pay for them.
# ----------------------------------------------------------------------------
def init_params(key, c_s1, c_s2, d, n_q, num_heads, l_dim, out_ch):
    dh = d // num_heads
    scale = 1.0 / float(dh) ** 0.5
    keys = jax.random.split(key, 5)

    def dense(k, fi, fo, s=0.05):
        kw, kb = jax.random.split(k)
        w = jax.random.normal(kw, (fi, fo), jnp.float32) * s
        b = jax.random.normal(kb, (1, fo), jnp.float32) * s
        return w, b

    def encoder(k, c_in):
        k0, kq, kk, kv, ko, k1, k2 = jax.random.split(k, 7)
        pw, pb = dense(k0, c_in, d)
        wq, bq = dense(kq, d, d)
        wk, bk = dense(kk, d, d)
        wv, bv = dense(kv, d, d)
        wo, bo = dense(ko, d, d)
        f1w, f1b = dense(k1, d, 2 * d)
        f2w, f2b = dense(k2, 2 * d, d)
        # Fused QKV with the softmax scale folded into the Q columns / bias.
        w_qkv = jnp.concatenate([wq * scale, wk, wv], axis=1)
        b_qkv = jnp.concatenate([bq * scale, bk, bv], axis=1)
        return dict(proj_w=pw.astype(ACT), proj_b=pb,
                    w_qkv=w_qkv.astype(ACT), b_qkv=b_qkv,
                    wo=wo.astype(ACT), bo=bo,
                    ffn_w1=f1w.astype(ACT), ffn_b1=f1b,
                    ffn_w2=f2w.astype(ACT), ffn_b2=f2b)

    # TemporalProjector: shared learned queries + shared MHA weights.  The Q
    # projection and the softmax scale are folded into a per-head query tensor
    # (nh*n_q, dh) that lives resident in VMEM inside the kernel.
    kq, kk, kv, ko, kque = jax.random.split(keys[2], 5)
    wq, bq = dense(kq, d, d)
    wk, bk = dense(kk, d, d)
    wv, bv = dense(kv, d, d)
    wo, bo = dense(ko, d, d)
    queries = jax.random.normal(kque, (n_q, d), jnp.float32) * 0.05
    q_proj = (queries @ wq + bq) * scale                        # (n_q, d)
    q_heads = jnp.transpose(q_proj.reshape(n_q, num_heads, dh),
                            (1, 0, 2)).reshape(num_heads * n_q, dh)
    temp_proj = dict(q_heads=q_heads.astype(ACT),
                     w_kv=jnp.concatenate([wk, wv], axis=1).astype(ACT),
                     b_kv=jnp.concatenate([bk, bv], axis=1),
                     wo=wo.astype(ACT), bo=bo)

    w1, b1 = dense(keys[3], d, l_dim)
    w2, b2 = dense(keys[4], l_dim, out_ch)
    projector = dict(w1=w1.astype(ACT), b1=b1, w2=w2.astype(ACT), b2=b2)

    return dict(encoder_s1=encoder(keys[0], c_s1),
                encoder_s2=encoder(keys[1], c_s2),
                temp_proj=temp_proj, projector=projector)


# ----------------------------------------------------------------------------
# Main
# ----------------------------------------------------------------------------
if __name__ == "__main__":
    B, T, H, W = 2, 8, 4, 4
    C_S1, C_S2 = 3, 10            # DataInputChannels defaults (S1, S2)
    D_REPR, N_Q, NUM_HEADS = 32, 8, 4
    L_DIM, OUT_CH = 64, 32

    key = jax.random.PRNGKey(0)
    k_par, k1a, k1b, k2a, k2b = jax.random.split(key, 5)
    params = init_params(k_par, C_S1, C_S2, D_REPR, N_Q, NUM_HEADS,
                         L_DIM, OUT_CH)

    def make_sits(k, c):
        data = jax.random.normal(k, (B, T, c, H, W), jnp.float32)
        padd = jnp.zeros((B, T), bool).at[0, T - 1].set(True)  # pad last step of sample 0
        return SITS(sits=data, padd_index=padd, h=H, w=W)

    batch = BatchMMSits(
        sits1a=make_sits(k1a, C_S1),
        sits1b=make_sits(k1b, C_S1),
        sits2a=make_sits(k2a, C_S2),
        sits2b=make_sits(k2b, C_S2),
    )

    reprojected, out_emb, mm_embedding = malice_encoder_forward(
        params, batch, NUM_HEADS)
    jax.block_until_ready((reprojected, out_emb, mm_embedding))

    assert mm_embedding.shape == (8 * B * H * W, N_Q, D_REPR)
    assert reprojected.s1a.shape == (B, N_Q, D_REPR, H, W)
    assert out_emb.s2a.shape == (B * H * W, N_Q, OUT_CH)
    print("KERNEL_OK")
</pallas_src>

<mosaic_0001>
module attributes {stable_mosaic.version = 11 : i64} {
  func.func @_ubarn_block_kernel(%arg0: i32, %arg1: memref<128x3xbf16, #tpu.memory_space<vmem>>, %arg2: memref<16x8xf32, #tpu.memory_space<vmem>>, %arg3: memref<3x32xbf16, #tpu.memory_space<vmem>>, %arg4: memref<1x32xf32, #tpu.memory_space<vmem>>, %arg5: memref<32x96xbf16, #tpu.memory_space<vmem>>, %arg6: memref<1x96xf32, #tpu.memory_space<vmem>>, %arg7: memref<32x32xbf16, #tpu.memory_space<vmem>>, %arg8: memref<1x32xf32, #tpu.memory_space<vmem>>, %arg9: memref<32x64xbf16, #tpu.memory_space<vmem>>, %arg10: memref<1x64xf32, #tpu.memory_space<vmem>>, %arg11: memref<64x32xbf16, #tpu.memory_space<vmem>>, %arg12: memref<1x32xf32, #tpu.memory_space<vmem>>, %arg13: memref<128x32xbf16, #tpu.memory_space<vmem>>) attributes {dimension_semantics = [#tpu.dimension_semantics<parallel>], iteration_bounds = array<i64: 4>, scalar_prefetch = 0 : i64, scratch_operands = 0 : i64, tpu.core_type = #tpu.core_type<tc>, window_params = [{transform_indices = @transform_0, window_bounds = array<i64: 128, 3>}, {transform_indices = @transform_1, window_bounds = array<i64: 16, 8>}, {pipeline_mode = #tpu.pipeline_mode<synchronous>, transform_indices = @transform_2, window_bounds = array<i64: 3, 32>}, {pipeline_mode = #tpu.pipeline_mode<synchronous>, transform_indices = @transform_3, window_bounds = array<i64: 1, 32>}, {pipeline_mode = #tpu.pipeline_mode<synchronous>, transform_indices = @transform_4, window_bounds = array<i64: 32, 96>}, {pipeline_mode = #tpu.pipeline_mode<synchronous>, transform_indices = @transform_5, window_bounds = array<i64: 1, 96>}, {pipeline_mode = #tpu.pipeline_mode<synchronous>, transform_indices = @transform_6, window_bounds = array<i64: 32, 32>}, {pipeline_mode = #tpu.pipeline_mode<synchronous>, transform_indices = @transform_7, window_bounds = array<i64: 1, 32>}, {pipeline_mode = #tpu.pipeline_mode<synchronous>, transform_indices = @transform_8, window_bounds = array<i64: 32, 64>}, {pipeline_mode = #tpu.pipeline_mode<synchronous>, transform_indices = @transform_9, window_bounds = array<i64: 1, 64>}, {pipeline_mode = #tpu.pipeline_mode<synchronous>, transform_indices = @transform_10, window_bounds = array<i64: 64, 32>}, {pipeline_mode = #tpu.pipeline_mode<synchronous>, transform_indices = @transform_11, window_bounds = array<i64: 1, 32>}, {transform_indices = @transform_12, window_bounds = array<i64: 128, 32>}]} {
    %c0 = arith.constant 0 : index
    %c0_0 = arith.constant 0 : index
    %0 = vector.load %arg1[%c0, %c0_0] : memref<128x3xbf16, #tpu.memory_space<vmem>>, vector<128x3xbf16>
    %c0_1 = arith.constant 0 : index
    %c0_2 = arith.constant 0 : index
    %1 = vector.load %arg3[%c0_1, %c0_2] : memref<3x32xbf16, #tpu.memory_space<vmem>>, vector<3x32xbf16>
    %cst = arith.constant dense<0.000000e+00> : vector<128x32xf32>
    %2 = tpu.matmul %0, %1, %cst {dimension_numbers = #tpu.dot_dimension_numbers<[1], [0], [0], [1], [0, 0, 1, 1], [], []>} : vector<128x3xbf16>, vector<3x32xbf16>, vector<128x32xf32> -> vector<128x32xf32>
    %c0_3 = arith.constant 0 : index
    %c0_4 = arith.constant 0 : index
    %3 = vector.load %arg4[%c0_3, %c0_4] : memref<1x32xf32, #tpu.memory_space<vmem>>, vector<1x32xf32>
    %4 = vector.broadcast %3 : vector<1x32xf32> to vector<128x32xf32>
    %5 = arith.addf %2, %4 : vector<128x32xf32>
    %6 = arith.truncf %5 : vector<128x32xf32> to vector<128x32xbf16>
    %c0_5 = arith.constant 0 : index
    %c0_6 = arith.constant 0 : index
    %7 = vector.load %arg5[%c0_5, %c0_6] : memref<32x96xbf16, #tpu.memory_space<vmem>>, vector<32x96xbf16>
    %cst_7 = arith.constant dense<0.000000e+00> : vector<128x96xf32>
    %8 = tpu.matmul %6, %7, %cst_7 {dimension_numbers = #tpu.dot_dimension_numbers<[1], [0], [0], [1], [0, 0, 1, 1], [], []>} : vector<128x32xbf16>, vector<32x96xbf16>, vector<128x96xf32> -> vector<128x96xf32>
    %c0_8 = arith.constant 0 : index
    %c0_9 = arith.constant 0 : index
    %9 = vector.load %arg6[%c0_8, %c0_9] : memref<1x96xf32, #tpu.memory_space<vmem>>, vector<1x96xf32>
    %10 = vector.broadcast %9 : vector<1x96xf32> to vector<128x96xf32>
    %11 = arith.addf %8, %10 : vector<128x96xf32>
    %12 = arith.truncf %11 : vector<128x96xf32> to vector<128x96xbf16>
    %13 = vector.shape_cast %12 : vector<128x96xbf16> to vector<16x8x96xbf16>
    %14 = vector.extract_strided_slice %13 {offsets = [0, 0, 0], sizes = [16, 8, 8], strides = [1, 1, 1]} : vector<16x8x96xbf16> to vector<16x8x8xbf16>
    %15 = vector.extract_strided_slice %13 {offsets = [0, 0, 8], sizes = [16, 8, 8], strides = [1, 1, 1]} : vector<16x8x96xbf16> to vector<16x8x8xbf16>
    %16 = vector.extract_strided_slice %13 {offsets = [0, 0, 16], sizes = [16, 8, 8], strides = [1, 1, 1]} : vector<16x8x96xbf16> to vector<16x8x8xbf16>
    %17 = vector.extract_strided_slice %13 {offsets = [0, 0, 24], sizes = [16, 8, 8], strides = [1, 1, 1]} : vector<16x8x96xbf16> to vector<16x8x8xbf16>
    %18 = tpu.concatenate %14, %15, %16, %17 in 0 : vector<16x8x8xbf16>, vector<16x8x8xbf16>, vector<16x8x8xbf16>, vector<16x8x8xbf16> -> vector<64x8x8xbf16>
    %19 = vector.extract_strided_slice %13 {offsets = [0, 0, 32], sizes = [16, 8, 8], strides = [1, 1, 1]} : vector<16x8x96xbf16> to vector<16x8x8xbf16>
    %20 = vector.extract_strided_slice %13 {offsets = [0, 0, 40], sizes = [16, 8, 8], strides = [1, 1, 1]} : vector<16x8x96xbf16> to vector<16x8x8xbf16>
    %21 = vector.extract_strided_slice %13 {offsets = [0, 0, 48], sizes = [16, 8, 8], strides = [1, 1, 1]} : vector<16x8x96xbf16> to vector<16x8x8xbf16>
    %22 = vector.extract_strided_slice %13 {offsets = [0, 0, 56], sizes = [16, 8, 8], strides = [1, 1, 1]} : vector<16x8x96xbf16> to vector<16x8x8xbf16>
    %23 = tpu.concatenate %19, %20, %21, %22 in 0 : vector<16x8x8xbf16>, vector<16x8x8xbf16>, vector<16x8x8xbf16>, vector<16x8x8xbf16> -> vector<64x8x8xbf16>
    %24 = vector.extract_strided_slice %13 {offsets = [0, 0, 64], sizes = [16, 8, 8], strides = [1, 1, 1]} : vector<16x8x96xbf16> to vector<16x8x8xbf16>
    %25 = vector.extract_strided_slice %13 {offsets = [0, 0, 72], sizes = [16, 8, 8], strides = [1, 1, 1]} : vector<16x8x96xbf16> to vector<16x8x8xbf16>
    %26 = vector.extract_strided_slice %13 {offsets = [0, 0, 80], sizes = [16, 8, 8], strides = [1, 1, 1]} : vector<16x8x96xbf16> to vector<16x8x8xbf16>
    %27 = vector.extract_strided_slice %13 {offsets = [0, 0, 88], sizes = [16, 8, 8], strides = [1, 1, 1]} : vector<16x8x96xbf16> to vector<16x8x8xbf16>
    %28 = tpu.concatenate %24, %25, %26, %27 in 0 : vector<16x8x8xbf16>, vector<16x8x8xbf16>, vector<16x8x8xbf16>, vector<16x8x8xbf16> -> vector<64x8x8xbf16>
    %c0_10 = arith.constant 0 : index
    %c0_11 = arith.constant 0 : index
    %29 = vector.load %arg2[%c0_10, %c0_11] : memref<16x8xf32, #tpu.memory_space<vmem>>, vector<16x8xf32>
    %30 = vector.shape_cast %29 : vector<16x8xf32> to vector<16x1x8xf32>
    %31 = tpu.concatenate %30, %30, %30, %30 in 0 : vector<16x1x8xf32>, vector<16x1x8xf32>, vector<16x1x8xf32>, vector<16x1x8xf32> -> vector<64x1x8xf32>
    "tpu.trace_start"() <{level = 10 : i32, message = "bqd,bkd->bqk"}> : () -> ()
    %cst_12 = arith.constant dense<0.000000e+00> : vector<64x8x8xf32>
    %32 = tpu.matmul %18, %23, %cst_12 {dimension_numbers = #tpu.dot_dimension_numbers<[2], [2], [1], [1], [0, 0, 0, 1, 1, 1], [0], [0]>} : vector<64x8x8xbf16>, vector<64x8x8xbf16>, vector<64x8x8xf32> -> vector<64x8x8xf32>
    "tpu.trace_stop"() : () -> ()
    %33 = vector.broadcast %31 : vector<64x1x8xf32> to vector<64x8x8xf32>
    %34 = arith.addf %32, %33 : vector<64x8x8xf32>
    %cst_13 = arith.constant dense<0xFF800000> : vector<64x8xf32>
    %35 = vector.multi_reduction <maximumf>, %34, %cst_13 [2] : vector<64x8x8xf32> to vector<64x8xf32>
    %36 = vector.shape_cast %35 : vector<64x8xf32> to vector<64x8x1xf32>
    %37 = vector.broadcast %36 : vector<64x8x1xf32> to vector<64x8x8xf32>
    %38 = arith.subf %34, %37 : vector<64x8x8xf32>
    %39 = math.exp %38 : vector<64x8x8xf32>
    %cst_14 = arith.constant dense<0.000000e+00> : vector<64x8xf32>
    %40 = vector.multi_reduction <add>, %39, %cst_14 [2] : vector<64x8x8xf32> to vector<64x8xf32>
    %41 = vector.shape_cast %40 : vector<64x8xf32> to vector<64x8x1xf32>
    %42 = tpu.reciprocal %41 {approx = true} : vector<64x8x1xf32> -> vector<64x8x1xf32>
    %43 = vector.broadcast %42 : vector<64x8x1xf32> to vector<64x8x8xf32>
    %44 = arith.mulf %39, %43 : vector<64x8x8xf32>
    %45 = arith.truncf %44 : vector<64x8x8xf32> to vector<64x8x8xbf16>
    "tpu.trace_start"() <{level = 10 : i32, message = "bqk,bkd->bqd"}> : () -> ()
    %cst_15 = arith.constant dense<0.000000e+00> : vector<64x8x8xf32>
    %46 = tpu.matmul %45, %28, %cst_15 {dimension_numbers = #tpu.dot_dimension_numbers<[2], [1], [1], [2], [0, 0, 0, 1, 1, 2], [0], [0]>} : vector<64x8x8xbf16>, vector<64x8x8xbf16>, vector<64x8x8xf32> -> vector<64x8x8xf32>
    "tpu.trace_stop"() : () -> ()
    %47 = arith.truncf %46 : vector<64x8x8xf32> to vector<64x8x8xbf16>
    %48 = vector.extract_strided_slice %47 {offsets = [0, 0, 0], sizes = [16, 8, 8], strides = [1, 1, 1]} : vector<64x8x8xbf16> to vector<16x8x8xbf16>
    %49 = vector.extract_strided_slice %47 {offsets = [16, 0, 0], sizes = [16, 8, 8], strides = [1, 1, 1]} : vector<64x8x8xbf16> to vector<16x8x8xbf16>
    %50 = vector.extract_strided_slice %47 {offsets = [32, 0, 0], sizes = [16, 8, 8], strides = [1, 1, 1]} : vector<64x8x8xbf16> to vector<16x8x8xbf16>
    %51 = vector.extract_strided_slice %47 {offsets = [48, 0, 0], sizes = [16, 8, 8], strides = [1, 1, 1]} : vector<64x8x8xbf16> to vector<16x8x8xbf16>
    %52 = tpu.concatenate %48, %49, %50, %51 in 2 : vector<16x8x8xbf16>, vector<16x8x8xbf16>, vector<16x8x8xbf16>, vector<16x8x8xbf16> -> vector<16x8x32xbf16>
    %53 = vector.shape_cast %52 : vector<16x8x32xbf16> to vector<128x32xbf16>
    %c0_16 = arith.constant 0 : index
    %c0_17 = arith.constant 0 : index
    %54 = vector.load %arg7[%c0_16, %c0_17] : memref<32x32xbf16, #tpu.memory_space<vmem>>, vector<32x32xbf16>
    %cst_18 = arith.constant dense<0.000000e+00> : vector<128x32xf32>
    %55 = tpu.matmul %53, %54, %cst_18 {dimension_numbers = #tpu.dot_dimension_numbers<[1], [0], [0], [1], [0, 0, 1, 1], [], []>} : vector<128x32xbf16>, vector<32x32xbf16>, vector<128x32xf32> -> vector<128x32xf32>
    %c0_19 = arith.constant 0 : index
    %c0_20 = arith.constant 0 : index
    %56 = vector.load %arg8[%c0_19, %c0_20] : memref<1x32xf32, #tpu.memory_space<vmem>>, vector<1x32xf32>
    %57 = vector.broadcast %56 : vector<1x32xf32> to vector<128x32xf32>
    %58 = arith.addf %55, %57 : vector<128x32xf32>
    %59 = arith.addf %58, %5 : vector<128x32xf32>
    %60 = arith.truncf %59 : vector<128x32xf32> to vector<128x32xbf16>
    %c0_21 = arith.constant 0 : index
    %c0_22 = arith.constant 0 : index
    %61 = vector.load %arg9[%c0_21, %c0_22] : memref<32x64xbf16, #tpu.memory_space<vmem>>, vector<32x64xbf16>
    %cst_23 = arith.constant dense<0.000000e+00> : vector<128x64xf32>
    %62 = tpu.matmul %60, %61, %cst_23 {dimension_numbers = #tpu.dot_dimension_numbers<[1], [0], [0], [1], [0, 0, 1, 1], [], []>} : vector<128x32xbf16>, vector<32x64xbf16>, vector<128x64xf32> -> vector<128x64xf32>
    %c0_24 = arith.constant 0 : index
    %c0_25 = arith.constant 0 : index
    %63 = vector.load %arg10[%c0_24, %c0_25] : memref<1x64xf32, #tpu.memory_space<vmem>>, vector<1x64xf32>
    %64 = vector.broadcast %63 : vector<1x64xf32> to vector<128x64xf32>
    %65 = arith.addf %62, %64 : vector<128x64xf32>
    %cst_26 = arith.constant 0.000000e+00 : f32
    %66 = vector.broadcast %cst_26 : f32 to vector<128x64xf32>
    %67 = arith.maximumf %65, %66 : vector<128x64xf32>
    %68 = arith.truncf %67 : vector<128x64xf32> to vector<128x64xbf16>
    %c0_27 = arith.constant 0 : index
    %c0_28 = arith.constant 0 : index
    %69 = vector.load %arg11[%c0_27, %c0_28] : memref<64x32xbf16, #tpu.memory_space<vmem>>, vector<64x32xbf16>
    %cst_29 = arith.constant dense<0.000000e+00> : vector<128x32xf32>
    %70 = tpu.matmul %68, %69, %cst_29 {dimension_numbers = #tpu.dot_dimension_numbers<[1], [0], [0], [1], [0, 0, 1, 1], [], []>} : vector<128x64xbf16>, vector<64x32xbf16>, vector<128x32xf32> -> vector<128x32xf32>
    %c0_30 = arith.constant 0 : index
    %c0_31 = arith.constant 0 : index
    %71 = vector.load %arg12[%c0_30, %c0_31] : memref<1x32xf32, #tpu.memory_space<vmem>>, vector<1x32xf32>
    %72 = vector.broadcast %71 : vector<1x32xf32> to vector<128x32xf32>
    %73 = arith.addf %70, %72 : vector<128x32xf32>
    %74 = arith.addf %73, %59 : vector<128x32xf32>
    %75 = arith.truncf %74 : vector<128x32xf32> to vector<128x32xbf16>
    %c0_32 = arith.constant 0 : index
    %c0_33 = arith.constant 0 : index
    %76 = vector.load %arg13[%c0_32, %c0_33] : memref<128x32xbf16, #tpu.memory_space<vmem>>, vector<128x32xbf16>
    tpu.vector_store %arg13[%c0_32, %c0_33], %75 {strides = array<i32>} : memref<128x32xbf16, #tpu.memory_space<vmem>>, vector<128x32xbf16>,
    return
  }
  func.func @transform_0(%arg0: i32) -> (i32, i32) {
    %c0_i32 = arith.constant 0 : i32
    %c0_i32_0 = arith.constant 0 : i32
    return %arg0, %c0_i32 : i32, i32
  }
  func.func @transform_1(%arg0: i32) -> (i32, i32) {
    %c0_i32 = arith.constant 0 : i32
    %c0_i32_0 = arith.constant 0 : i32
    return %arg0, %c0_i32 : i32, i32
  }
  func.func @transform_2(%arg0: i32) -> (i32, i32) {
    %c0_i32 = arith.constant 0 : i32
    %c0_i32_0 = arith.constant 0 : i32
    %c0_i32_1 = arith.constant 0 : i32
    return %c0_i32, %c0_i32_0 : i32, i32
  }
  func.func @transform_3(%arg0: i32) -> (i32, i32) {
    %c0_i32 = arith.constant 0 : i32
    %c0_i32_0 = arith.constant 0 : i32
    %c0_i32_1 = arith.constant 0 : i32
    return %c0_i32, %c0_i32_0 : i32, i32
  }
  func.func @transform_4(%arg0: i32) -> (i32, i32) {
    %c0_i32 = arith.constant 0 : i32
    %c0_i32_0 = arith.constant 0 : i32
    %c0_i32_1 = arith.constant 0 : i32
    return %c0_i32, %c0_i32_0 : i32, i32
  }
  func.func @transform_5(%arg0: i32) -> (i32, i32) {
    %c0_i32 = arith.constant 0 : i32
    %c0_i32_0 = arith.constant 0 : i32
    %c0_i32_1 = arith.constant 0 : i32
    return %c0_i32, %c0_i32_0 : i32, i32
  }
  func.func @transform_6(%arg0: i32) -> (i32, i32) {
    %c0_i32 = arith.constant 0 : i32
    %c0_i32_0 = arith.constant 0 : i32
    %c0_i32_1 = arith.constant 0 : i32
    return %c0_i32, %c0_i32_0 : i32, i32
  }
  func.func @transform_7(%arg0: i32) -> (i32, i32) {
    %c0_i32 = arith.constant 0 : i32
    %c0_i32_0 = arith.constant 0 : i32
    %c0_i32_1 = arith.constant 0 : i32
    return %c0_i32, %c0_i32_0 : i32, i32
  }
  func.func @transform_8(%arg0: i32) -> (i32, i32) {
    %c0_i32 = arith.constant 0 : i32
    %c0_i32_0 = arith.constant 0 : i32
    %c0_i32_1 = arith.constant 0 : i32
    return %c0_i32, %c0_i32_0 : i32, i32
  }
  func.func @transform_9(%arg0: i32) -> (i32, i32) {
    %c0_i32 = arith.constant 0 : i32
    %c0_i32_0 = arith.constant 0 : i32
    %c0_i32_1 = arith.constant 0 : i32
    return %c0_i32, %c0_i32_0 : i32, i32
  }
  func.func @transform_10(%arg0: i32) -> (i32, i32) {
    %c0_i32 = arith.constant 0 : i32
    %c0_i32_0 = arith.constant 0 : i32
    %c0_i32_1 = arith.constant 0 : i32
    return %c0_i32, %c0_i32_0 : i32, i32
  }
  func.func @transform_11(%arg0: i32) -> (i32, i32) {
    %c0_i32 = arith.constant 0 : i32
    %c0_i32_0 = arith.constant 0 : i32
    %c0_i32_1 = arith.constant 0 : i32
    return %c0_i32, %c0_i32_0 : i32, i32
  }
  func.func @transform_12(%arg0: i32) -> (i32, i32) {
    %c0_i32 = arith.constant 0 : i32
    %c0_i32_0 = arith.constant 0 : i32
    return %arg0, %c0_i32 : i32, i32
  }
}

</mosaic_0001>

<bundles_post_ra>
// kernel: tpu_custom_call.1
= control target key start
LH: loop header
LB: loop body
LE: loop exit
PB: predicated region body
PF: predicated region fallthrough
CT: control target
= control target key end

     0   :  { %s11030_s21 = smov 0   ;;  %s14155_s0 = inlined_call_operand.vmem [shape: bf16[512,3], index: 0, kind: input, shape index: {}]   ;;  %s14156_s1 = inlined_call_operand.vmem [shape: f32[64,8], index: 1, kind: input, shape index: {}]   ;;  %s14157_s2 = inlined_call_operand.vmem [shape: bf16[3,32], index: 2, kind: input, shape index: {}]   ;;  %s14158_s3 = inlined_call_operand.vmem [shape: f32[1,32], index: 3, kind: input, shape index: {}]   ;;  %s14159_s4 = inlined_call_operand.vmem [shape: bf16[32,96], index: 4, kind: input, shape index: {}]   ;;  %s14160_s5 = inlined_call_operand.vmem [shape: f32[1,96], index: 5, kind: input, shape index: {}]   ;;  %s14161_s6 = inlined_call_operand.vmem [shape: bf16[32,32], index: 6, kind: input, shape index: {}]   ;;  %s14162_s7 = inlined_call_operand.vmem [shape: f32[1,32], index: 7, kind: input, shape index: {}]   ;;  %s14163_s8 = inlined_call_operand.vmem [shape: bf16[32,64], index: 8, kind: input, shape index: {}]   ;;  %s14164_s9 = inlined_call_operand.vmem [shape: f32[1,64], index: 9, kind: input, shape index: {}]   ;;  %s14165_s10 = inlined_call_operand.vmem [shape: bf16[64,32], index: 10, kind: input, shape index: {}]   ;;  %s14166_s11 = inlined_call_operand.vmem [shape: f32[1,32], index: 11, kind: input, shape index: {}]   ;;  %s14167_s12 = inlined_call_operand.vmem [shape: bf16[512,32], index: 12, kind: output, shape index: {}]  }
   0x1 LB: > { %s9146_s22 = sadd.s32 4294967295, %s10951_s21   ;;  %p9150_p0 = scmp.ge.s32.totalorder %s10951_s21, 1  ;;  %s10951_s21 = sphi %s11030_s21, %s22_s21  }
   0x2   : > { %p374_p1 = scmp.lt.s32.totalorder %s10951_s21, 5 }
   0x4   : > { %p375_p2 = pnand %p9150_p0, %p374_p1 }
   0x6   : > { %378 = sbr.rel (%p375_p2) target bundleno = 3182 (0xc6e), region = 68 }
   0xd   : > { %v456_v0 = vld [vmem:[%s14157_s2] sm:$0x3]  ;;  %vm529_vm0 = vcmask 1040384   ;;  %vm530_vm1 = vcmask 1041408   ;;  %s9151_s25 = sshll.u32 %s9146_s22, 4  ;;  %v10953_v1 = vmov 65535  }
   0xe   : > { %v531_v2 = vsel %vm529_vm0, 4294967295, %v10953_v1  ;;  %p422_p3 = scmp.lt.s32.totalorder %s9151_s25, 63  ;;  %v10677_v5 = vld [vmem:[%s14159_s4] sm:$0xff]   ;;  %vm504_vm2 = vcmask 23552   ;;  %v10678_v14 = vld [vmem:[%s14159_s4 + $0x8] sm:$0xff]   ;;  %vm664_vm3 = vcmask 261120  }
   0xf   : > { %v532_v3 = vsel %vm530_vm1, %v531_v2, 0  ;;  %v9157_v16 = vld [vmem:[%s14158_s3] ss:$0 sm:$0xff]  ;;  %s10954_s20 = smov 64   ;;  %s10955_s23 = smov 96   ;;  %v14169_v2 = vmov 0.0  }
  0x10   : > { %v534_v4 = vand.u32 %v532_v3, %v456_v0  ;;  %s14580_s25 = smov (!%p422_p3, %s9151_s25), 63  ;;  %v11127_v56 = vld [vmem:[%s14160_s5] ss:$0 sm:$0xff]  ;;  %s10957_s24 = smov 120   ;;  %vm10959_vm4 = vmmov 0   ;;  %vm1114_vm5 = vcmask 64512  }
  0x11   : > { %s9152_s28 = sshll.u32 %s14580_s25, 2  ;;  %s10958_s26 = smov 112   ;;  %vm5054_vm6 = vcmask 1043456   ;;  %vm8378_vm7 = vcmask 130048   ;;  %vm8411_vm8 = vcmask 195584   ;;  %vm8859_vm9 = vcmask 523264  }
  0x12   : > { %9777 = vmatprep.subr.bf16.mxu0 %v534_v4  ;;  %10647 = vmatprep.subr.bf16.mxu1 %v534_v4  ;;  %s425_s13 = scalar_lea.vmem %s14155_s0, %s9152_s28  ;;  %s10960_s27 = smov 104   ;;  %vm9061_vm10 = vcmask 257024  }
  0x13   : > { %9778 = vmatpush3.bf16.msra.mxu0 %v534_v4  ;;  %10648 = vmatpush3.bf16.msra.mxu1 %v534_v4  ;;  %v10669_v6 = vld [vmem:[%s425_s13] sm:$0xff]   ;;  %v10670_v7 = vld [vmem:[%s425_s13 + $0x8] sm:$0xff]   ;;  %v10671_v8 = vld [vmem:[%s425_s13 + $0x10] sm:$0xff]   ;;  %s9153_s29 = sshll.u32 %s9146_s22, 1  ;;  %s10962_s15 = smov 8  }
  0x14   : > { %9795 = vmatprep.subr.bf16.mxu1 %v10677_v5  ;;  %9779 = vmatprep.mubr.msk.bf16.mxu0 %vm504_vm2, %v10669_v6  ;;  %v10673_v9 = vld [vmem:[%s425_s13 + $0x20] sm:$0xff]   ;;  %v10674_v10 = vld [vmem:[%s425_s13 + $0x28] sm:$0xff]   ;;  %v10675_v11 = vld [vmem:[%s425_s13 + $0x30] sm:$0xff]   ;;  %p428_p4 = scmp.lt.s32.totalorder %s9153_s29, 7  ;;  %s10963_s16 = smov 16  }
  0x15   : > { %9787 = vmatprep.mubr.msk.bf16.mxu1 %vm504_vm2, %v10673_v9  ;;  %v10672_v12 = vld [vmem:[%s425_s13 + $0x18] sm:$0xff]   ;;  %9815 = vmatprep.subr.bf16.mxu0 %v14169_v2  ;;  %s10964_s17 = smov 24   ;;  %s14090_s30 = scalar_lea.vmem %s14167_s12, %s9152_s28 }
  0x16   : > { %9780 = vmatmul.mubr.msk.bf16.vlgmr.msra.gmra.mrb[0].mxu0 %vm504_vm2, %v10670_v7  ;;  %9788 = vmatmul.mubr.msk.bf16.vlgmr.msra.gmra.mrb[0].mxu1 %vm504_vm2, %v10674_v10  ;;  %v10676_v13 = vld [vmem:[%s425_s13 + $0x38] sm:$0xff]   ;;  %s14582_s29 = smov (!%p428_p4, %s9153_s29), 7 }
  0x17   : > { %9783 = vmatprep.mubr.msk.bf16.mxu0 %vm504_vm2, %v10671_v8  ;;  %9791 = vmatprep.mubr.msk.bf16.mxu1 %vm504_vm2, %v10675_v11  ;;  %s9154_s22 = sshll.u32 %s14582_s29, 3 }
  0x18   : > { %9796 = vmatpush3.bf16.msra.mxu1 %v10677_v5  ;;  %s11936_s14 = scalar_lea.vmem %s14156_s1, %s9154_s22 }
  0x19   : > { %9797 = vmatprep.subr.bf16.mxu1 %v10678_v14 }
  0x1c   : > { %9798 = vmatpush3.bf16.msra.mxu1 %v10678_v14 }
  0x1d   : > { %9821 = vmatprep.subr.bf16.mxu1 %v14169_v2 }
  0x1e   : > { %9784 = vmatmul.mubr.msk.bf16.gmra.mrb[4].mxu0 %vm504_vm2, %v10672_v12  ;;  %9792 = vmatmul.mubr.msk.bf16.gmra.mrb[4].mxu1 %vm504_vm2, %v10676_v13 }
  0x1f   : > { %9817 = vmatprep.mubr.msk.bf16.mxu0 %vm10959_vm4, %v14169_v2 }
  0xe9   : > { %v9781_v15 = vpop.f32.mrb[0].mxu0  ;;  %v9789_v23 = vpop.f32.mrb[0].mxu1 }
  0xea   : > { %v570_v17 = vpop.f32.mrb[1].mxu0  ;;  %v11074_v24 = vadd.f32 %v9781_v15, %v9157_v16  ;;  %v602_v25 = vpop.f32.mrb[1].mxu1  ;;  %v11102_v47 = vadd.f32 %v9789_v23, %v9157_v16 }
  0xeb   : > { %v9782_v18 = vpop.f32.mrb[2].mxu0  ;;  %v11070_v21 = vadd.f32 %v9157_v16, %v570_v17  ;;  %v9790_v27 = vpop.f32.mrb[2].mxu1  ;;  %v11086_v35 = vadd.f32 %v9157_v16, %v602_v25 }
  0xec   : > { %v11068_v19 = vadd.f32 %v9782_v18, %v9157_v16  ;;  %v573_v20 = vpop.f32.mrb[3].mxu0  ;;  %14275 = vst [vmem:[#allocation5_spill] sm:$0xff] %v11074_v24  ;;  %v605_v29 = vpop.f32.mrb[3].mxu1  ;;  %14282 = vst [vmem:[#allocation12_spill] sm:$0xff] %v11102_v47  ;;  %v11104_v48 = vadd.f32 %v9790_v27, %v9157_v16 }
  0xed   : > { %14273 = vst [vmem:[#allocation3_spill] sm:$0xff] %v11070_v21  ;;  %v11072_v22 = vadd.f32 %v9157_v16, %v573_v20  ;;  %14278 = vst [vmem:[#allocation8_spill] sm:$0xff] %v11086_v35  ;;  %v11088_v36 = vadd.f32 %v9157_v16, %v605_v29 }
  0xee   : > { %14272 = vst [vmem:[#allocation2_spill] sm:$0xff] %v11068_v19  ;;  %v634_v28 = vpack.c.bf16 %v11068_v19, %v11074_v24  ;;  %14283 = vst [vmem:[#allocation13_spill] sm:$0xff] %v11104_v48  ;;  %v638_v51 = vpack.c.bf16 %v11104_v48, %v11102_v47 }
  0xef   : > { %14274 = vst [vmem:[#allocation4_spill] sm:$0xff] %v11072_v22  ;;  %v633_v26 = vpack.c.bf16 %v11072_v22, %v11070_v21  ;;  %14279 = vst [vmem:[#allocation9_spill] sm:$0xff] %v11088_v36  ;;  %v637_v44 = vpack.c.bf16 %v11088_v36, %v11086_v35 }
  0xf1   : > { %9799 = vmatprep.mubr.msk.bf16.mxu1 %vm664_vm3, %v633_v26  ;;  %v9785_v30 = vpop.f32.mrb[4].mxu0  ;;  %v9793_v40 = vpop.f32.mrb[4].mxu1 }
  0xf2   : > { %9800 = vmatmul.mubr.msk.bf16.vlgmr.msra.gmra.mrb[8].mxu1 %vm664_vm3, %v634_v28  ;;  %v11082_v31 = vadd.f32 %v9785_v30, %v9157_v16  ;;  %v586_v32 = vpop.f32.mrb[5].mxu0  ;;  %v618_v42 = vpop.f32.mrb[5].mxu1  ;;  %v11116_v53 = vadd.f32 %v9793_v40, %v9157_v16 }
  0xf3   : > { %v11084_v33 = vadd.f32 %v9157_v16, %v586_v32  ;;  %v9786_v34 = vpop.f32.mrb[6].mxu0  ;;  %v9794_v45 = vpop.f32.mrb[6].mxu1  ;;  %v11107_v49 = vadd.f32 %v9157_v16, %v618_v42 }
  0xf4   : > { %14276 = vst [vmem:[#allocation6_spill] sm:$0xff] %v11082_v31  ;;  %v11090_v37 = vadd.f32 %v9786_v34, %v9157_v16  ;;  %v589_v38 = vpop.f32.mrb[7].mxu0  ;;  %v621_v46 = vpop.f32.mrb[7].mxu1  ;;  %14286 = vst [vmem:[#allocation16_spill] sm:$0xff] %v11116_v53  ;;  %v11118_v54 = vadd.f32 %v9794_v45, %v9157_v16 }
  0xf5   : > { %14277 = vst [vmem:[#allocation7_spill] sm:$0xff] %v11084_v33  ;;  %v11092_v39 = vadd.f32 %v9157_v16, %v589_v38  ;;  %14284 = vst [vmem:[#allocation14_spill] sm:$0xff] %v11107_v49  ;;  %v11109_v50 = vadd.f32 %v9157_v16, %v621_v46 }
  0xf6   : > { %14280 = vst [vmem:[#allocation10_spill] sm:$0xff] %v11090_v37  ;;  %v636_v41 = vpack.c.bf16 %v11090_v37, %v11082_v31  ;;  %14287 = vst [vmem:[#allocation17_spill] sm:$0xff] %v11118_v54  ;;  %v640_v55 = vpack.c.bf16 %v11118_v54, %v11116_v53 }
  0xf7   : > { %14281 = vst [vmem:[#allocation11_spill] sm:$0xff] %v11092_v39  ;;  %v635_v43 = vpack.c.bf16 %v11092_v39, %v11084_v33  ;;  %14285 = vst [vmem:[#allocation15_spill] sm:$0xff] %v11109_v50  ;;  %v639_v52 = vpack.c.bf16 %v11109_v50, %v11107_v49 }
  0xf9   : > { %9803 = vmatprep.mubr.msk.bf16.mxu1 %vm664_vm3, %v635_v43 }
  0xfa   : > { %9804 = vmatmul.mubr.msk.bf16.gmra.mrb[12].mxu1 %vm664_vm3, %v636_v41 }
  0xfb   : > { %9807 = vmatprep.mubr.msk.bf16.mxu1 %vm664_vm3, %v637_v44 }
 0x102   : > { %9808 = vmatmul.mubr.msk.bf16.gmra.mrb[16].mxu1 %vm664_vm3, %v638_v51 }
 0x103   : > { %9811 = vmatprep.mubr.msk.bf16.mxu1 %vm664_vm3, %v639_v52 }
 0x10a   : > { %9812 = vmatmul.mubr.msk.bf16.gmra.mrb[20].mxu1 %vm664_vm3, %v640_v55 }
 0x10b   : > { %9823 = vmatprep.mubr.msk.bf16.mxu1 %vm10959_vm4, %v14169_v2 }
 0x1c5   : > { %v9801_v57 = vpop.f32.mrb[8].mxu1 }
 0x1c6   : > { %v732_v58 = vadd.f32 %v9801_v57, %v11127_v56  ;;  %v723_v59 = vpop.f32.mrb[9].mxu1 }
 0x1c7   : > { %v9802_v60 = vpop.f32.mrb[10].mxu1  ;;  %v724_v62 = vadd.f32 %v11127_v56, %v723_v59 }
 0x1c8   : > { %v11130_v61 = vpack.c.bf16 %v732_v58, %v732_v58  ;;  %v726_v63 = vpop.f32.mrb[11].mxu1  ;;  %v735_v5 = vadd.f32 %v9802_v60, %v11127_v56 }
 0x1c9   : > { %v11137_v0 = vpack.c.bf16 %v724_v62, %v724_v62  ;;  %v727_v26 = vadd.f32 %v11127_v56, %v726_v63 }
 0x1ca   : > { %5146 = vrot.lane.b32.xlu1 %v11130_v61, %s10954_s20  ;;  %1209 = vrot.lane.b32.xlu0 %v11130_v61, %s10955_s23  ;;  %v11155_v8 = vpack.c.bf16 %v735_v5, %v735_v5 }
 0x1cb   : > { %v11192_v30 = vpack.c.bf16 %v727_v26, %v727_v26 }
 0x1cd   : > { %v9805_v1 = vpop.f32.mrb[12].mxu1 }
 0x1ce   : > { %838 = vrot.lane.b32.xlu0 %v11130_v61, %s10957_s24  ;;  %834 = vrot.lane.b32.xlu1 %v11137_v0, %s10957_s24  ;;  %v739_v3 = vpop.f32.mrb[13].mxu1  ;;  %v748_v32 = vadd.f32 %v9805_v1, %v11127_v56 }
 0x1cf   : > { %v9806_v4 = vpop.f32.mrb[14].mxu1  ;;  %v740_v38 = vadd.f32 %v11127_v56, %v739_v3 }
 0x1d0   : > { %v742_v6 = vpop.f32.mrb[15].mxu1  ;;  %v11207_v34 = vpack.c.bf16 %v748_v32, %v748_v32  ;;  %v751_v41 = vadd.f32 %v9806_v4, %v11127_v56 }
 0x1d1   : > { %v743_v7 = vadd.f32 %v11127_v56, %v742_v6  ;;  %v11214_v40 = vpack.c.bf16 %v740_v38, %v740_v38 }
 0x1d2   : > { %870 = vrot.lane.b32.xlu0 %v11130_v61, %s10958_s26  ;;  %5049 = vrot.lane.b32.xlu1 %v11137_v0, %s10954_s20  ;;  %v11221_v42 = vpack.c.bf16 %v751_v41, %v751_v41 }
 0x1d3   : > { %v11239_v43 = vpack.c.bf16 %v743_v7, %v743_v7 }
 0x1d5   : > { %v9809_v9 = vpop.f32.mrb[16].mxu1 }
 0x1d6   : > { %902 = vrot.lane.b32.xlu0 %v11130_v61, %s10960_s27  ;;  %1257 = vrot.lane.b32.xlu1 %v11155_v8, %s10955_s23  ;;  %v764_v10 = vadd.f32 %v9809_v9, %v11127_v56  ;;  %v755_v11 = vpop.f32.mrb[17].mxu1 }
 0x1d7   : > { %v756_v12 = vadd.f32 %v11127_v56, %v755_v11  ;;  %v9810_v13 = vpop.f32.mrb[18].mxu1 }
 0x1d8   : > { %v767_v14 = vadd.f32 %v9810_v13, %v11127_v56  ;;  %v758_v15 = vpop.f32.mrb[19].mxu1  ;;  %v11257_v44 = vpack.c.bf16 %v764_v10, %v764_v10 }
 0x1d9   : > { %v11165_v16 = vadd.f32 %v11127_v56, %v758_v15  ;;  %v11263_v45 = vpack.c.bf16 %v756_v12, %v756_v12 }
 0x1da   : > { %840 = vrot.lane.b32.xlu1 %v11155_v8, %s10957_s24  ;;  %1112 = vrot.lane.b32.xlu0 %v11137_v0, %s10955_s23  ;;  %v11269_v46 = vpack.c.bf16 %v767_v14, %v767_v14 }
 0x1db   : > { %v11289_v51 = vpack.c.bf16 %v11165_v16, %v11165_v16 }
 0x1dd   : > { %v9813_v17 = vpop.f32.mrb[20].mxu1 }
 0x1de   : > { %872 = vrot.lane.b32.xlu1 %v11155_v8, %s10958_s26  ;;  %866 = vrot.lane.b32.xlu0 %v11137_v0, %s10958_s26  ;;  %v11176_v18 = vadd.f32 %v9813_v17, %v11127_v56  ;;  %v771_v20 = vpop.f32.mrb[21].mxu1 }
 0x1df   : > { %v11179_v23 = vadd.f32 %v11127_v56, %v771_v20  ;;  %v9814_v25 = vpop.f32.mrb[22].mxu1 }
 0x1e0   : > { %v11183_v27 = vadd.f32 %v9814_v25, %v11127_v56  ;;  %v774_v28 = vpop.f32.mrb[23].mxu1 }
 0x1e1   : > { %v11186_v29 = vadd.f32 %v11127_v56, %v774_v28  ;;  %v11311_v56 = vpack.c.bf16 %v11176_v18, %v11176_v18  ;;  %v11323_v59 = vpack.c.bf16 %v11179_v23, %v11179_v23 }
 0x1e2   : > { %904 = vrot.lane.b32.xlu1 %v11155_v8, %s10960_s27  ;;  %898 = vrot.lane.b32.xlu0 %v11137_v0, %s10960_s27  ;;  %v11335_v63 = vpack.c.bf16 %v11183_v27, %v11183_v27 }
 0x1e3   : > { %v11372_v13 = vpack.c.bf16 %v11186_v29, %v11186_v29 }
 0x1e6   : > { %836 = vrot.lane.b32.xlu1 %v11192_v30, %s10957_s24  ;;  %5194 = vrot.lane.b32.xlu0 %v11155_v8, %s10954_s20 }
 0x1ea   : > { %868 = vrot.lane.b32.xlu1 %v11192_v30, %s10958_s26  ;;  %1161 = vrot.lane.b32.xlu0 %v11192_v30, %s10955_s23 }
 0x1ee   : > { %900 = vrot.lane.b32.xlu1 %v11192_v30, %s10960_s27  ;;  %5098 = vrot.lane.b32.xlu0 %v11192_v30, %s10954_s20 }
 0x1f2   : > { %5338 = vrot.lane.b32.xlu1 %v11207_v34, %s10954_s20  ;;  %1401 = vrot.lane.b32.xlu0 %v11207_v34, %s10955_s23 }
 0x1f6   : > { %5242 = vrot.lane.b32.xlu1 %v11214_v40, %s10954_s20  ;;  %846 = vrot.lane.b32.xlu0 %v11207_v34, %s10957_s24 }
 0x1fa   : > { %1449 = vrot.lane.b32.xlu1 %v11221_v42, %s10955_s23  ;;  %878 = vrot.lane.b32.xlu0 %v11207_v34, %s10958_s26 }
 0x1fe   : > { %848 = vrot.lane.b32.xlu1 %v11221_v42, %s10957_s24  ;;  %910 = vrot.lane.b32.xlu0 %v11207_v34, %s10960_s27 }
 0x202   : > { %880 = vrot.lane.b32.xlu1 %v11221_v42, %s10958_s26  ;;  %1305 = vrot.lane.b32.xlu0 %v11214_v40, %s10955_s23 }
 0x206   : > { %912 = vrot.lane.b32.xlu1 %v11221_v42, %s10960_s27  ;;  %842 = vrot.lane.b32.xlu0 %v11214_v40, %s10957_s24 }
 0x20a   : > { %1353 = vrot.lane.b32.xlu1 %v11239_v43, %s10955_s23  ;;  %874 = vrot.lane.b32.xlu0 %v11214_v40, %s10958_s26 }
 0x20e   : > { %844 = vrot.lane.b32.xlu1 %v11239_v43, %s10957_s24  ;;  %906 = vrot.lane.b32.xlu0 %v11214_v40, %s10960_s27 }
 0x212   : > { %876 = vrot.lane.b32.xlu1 %v11239_v43, %s10958_s26  ;;  %5386 = vrot.lane.b32.xlu0 %v11221_v42, %s10954_s20 }
 0x216   : > { %908 = vrot.lane.b32.xlu1 %v11239_v43, %s10960_s27  ;;  %5290 = vrot.lane.b32.xlu0 %v11239_v43, %s10954_s20 }
 0x21a   : > { %5530 = vrot.lane.b32.xlu1 %v11257_v44, %s10954_s20  ;;  %1593 = vrot.lane.b32.xlu0 %v11257_v44, %s10955_s23 }
 0x21e   : > { %5434 = vrot.lane.b32.xlu1 %v11263_v45, %s10954_s20  ;;  %854 = vrot.lane.b32.xlu0 %v11257_v44, %s10957_s24 }
 0x222   : > { %1641 = vrot.lane.b32.xlu1 %v11269_v46, %s10955_s23  ;;  %886 = vrot.lane.b32.xlu0 %v11257_v44, %s10958_s26 }
 0x226   : > { %856 = vrot.lane.b32.xlu1 %v11269_v46, %s10957_s24  ;;  %918 = vrot.lane.b32.xlu0 %v11257_v44, %s10960_s27 }
 0x22a   : > { %888 = vrot.lane.b32.xlu1 %v11269_v46, %s10958_s26  ;;  %1497 = vrot.lane.b32.xlu0 %v11263_v45, %s10955_s23 }
 0x22e   : > { %920 = vrot.lane.b32.xlu1 %v11269_v46, %s10960_s27  ;;  %850 = vrot.lane.b32.xlu0 %v11263_v45, %s10957_s24 }
 0x232   : > { %1545 = vrot.lane.b32.xlu1 %v11289_v51, %s10955_s23  ;;  %882 = vrot.lane.b32.xlu0 %v11263_v45, %s10958_s26 }
 0x236   : > { %852 = vrot.lane.b32.xlu1 %v11289_v51, %s10957_s24  ;;  %914 = vrot.lane.b32.xlu0 %v11263_v45, %s10960_s27 }
 0x23a   : > { %884 = vrot.lane.b32.xlu1 %v11289_v51, %s10958_s26  ;;  %5578 = vrot.lane.b32.xlu0 %v11269_v46, %s10954_s20 }
 0x23c   : > { %v11303_v52 = vpop.permute.xlu1 %5146  ;;  %v1210_v55 = vpop.permute.xlu0 %1209 }
 0x23d   : > { %14288 = vst [vmem:[#allocation18_spill] sm:$0xff] %v11303_v52  ;;  %v1215_v12 = vsel %vm1114_vm5, %v1210_v55, 0 }
 0x23e   : > { %916 = vrot.lane.b32.xlu1 %v11289_v51, %s10960_s27  ;;  %5482 = vrot.lane.b32.xlu0 %v11289_v51, %s10954_s20 }
 0x240   : > { %v11313_v57 = vpop.permute.xlu0 %838  ;;  %v11315_v58 = vpop.permute.xlu1 %834 }
 0x241   : > { %v9221_v26 = vcombine.low %v11313_v57, %v11313_v57  ;;  %v9217_v29 = vcombine.low %v11315_v58, %v11315_v58 }
 0x242   : > { %5722 = vrot.lane.b32.xlu1 %v11311_v56, %s10954_s20  ;;  %1785 = vrot.lane.b32.xlu0 %v11311_v56, %s10955_s23 }
 0x244   : > { %v11325_v60 = vpop.permute.xlu0 %870  ;;  %v11327_v62 = vpop.permute.xlu1 %5049 }
 0x245   : > { %14289 = vst [vmem:[#allocation19_spill] sm:$0xff] %v11327_v62  ;;  %v11431_v38 = vcombine.low %v11325_v60, %v11325_v60 }
 0x246   : > { %5626 = vrot.lane.b32.xlu1 %v11323_v59, %s10954_s20  ;;  %862 = vrot.lane.b32.xlu0 %v11311_v56, %s10957_s24 }
 0x247   : > { %14294 = vst [vmem:[#allocation24_spill] sm:$0xff] %v11431_v38 }
 0x248   : > { %v11337_v1 = vpop.permute.xlu0 %902  ;;  %v1258_v3 = vpop.permute.xlu1 %1257 }
 0x249   : > { %v1263_v25 = vsel %vm1114_vm5, %v1258_v3, 0 }
 0x24a   : > { %1833 = vrot.lane.b32.xlu1 %v11335_v63, %s10955_s23  ;;  %894 = vrot.lane.b32.xlu0 %v11311_v56, %s10958_s26 }
 0x24c   : > { %v11343_v4 = vpop.permute.xlu1 %840  ;;  %v1113_v5 = vpop.permute.xlu0 %1112 }
 0x24d   : > { %v1119_v6 = vsel %vm1114_vm5, %v1113_v5, 0  ;;  %v9223_v41 = vcombine.low %v11343_v4, %v11343_v4  ;;  %v11448_v5 = vcombine.low %v11337_v1, %v11337_v1 }
 0x24e   : > { %864 = vrot.lane.b32.xlu1 %v11335_v63, %s10957_s24  ;;  %926 = vrot.lane.b32.xlu0 %v11311_v56, %s10960_s27 }
 0x24f   : > { %9816 = vmatpush3.bf16.xpose.msra.mxu0 %v1119_v6  ;;  %14296 = vst [vmem:[#allocation26_spill] sm:$0xff] %v11448_v5 }
 0x250   : > { %v11350_v7 = vpop.permute.xlu1 %872  ;;  %v11352_v9 = vpop.permute.xlu0 %866  ;;  %9827 = vmatprep.subr.bf16.mxu0 %v14169_v2 }
 0x251   : > { %v11474_v53 = vcombine.low %v11352_v9, %v11352_v9 }
 0x252   : > { %896 = vrot.lane.b32.xlu1 %v11335_v63, %s10958_s26  ;;  %1689 = vrot.lane.b32.xlu0 %v11323_v59, %s10955_s23 }
 0x253   : > { %14300 = vst [vmem:[#allocation30_spill] sm:$0xff] %v11474_v53 }
 0x254   : > { %v11359_v10 = vpop.permute.xlu1 %904  ;;  %v11361_v11 = vpop.permute.xlu0 %898 }
 0x256   : > { %9818 = vmatmul.mubr.msk.bf16.vlgmr.msra.gmra.mrb[8].mxu0 %vm1114_vm5, %v11137_v0  ;;  %928 = vrot.lane.b32.xlu1 %v11335_v63, %s10960_s27 }
 0x257   : > { %858 = vrot.lane.b32.xlu0 %v11323_v59, %s10957_s24  ;;  %9828 = vmatpush3.bf16.xpose.msra.mxu0 %v1215_v12 }
 0x258   : > { %v11374_v14 = vpop.permute.xlu1 %836  ;;  %v11376_v15 = vpop.permute.xlu0 %5194  ;;  %9829 = vmatprep.mubr.msk.bf16.mxu0 %vm10959_vm4, %v14169_v2  ;;  %9839 = vmatprep.subr.bf16.mxu0 %v14169_v2 }
 0x259   : > { %14290 = vst [vmem:[#allocation20_spill] sm:$0xff] %v11376_v15 }
 0x25a   : > { %1737 = vrot.lane.b32.xlu1 %v11372_v13, %s10955_s23 }
 0x25b   : > { %890 = vrot.lane.b32.xlu0 %v11323_v59, %s10958_s26 }
 0x25c   : > { %v11385_v0 = vpop.permute.xlu1 %868  ;;  %v1162_v16 = vpop.permute.xlu0 %1161 }
 0x25d   : > { %v1167_v17 = vsel %vm1114_vm5, %v1162_v16, 0  ;;  %v11497_v54 = vcombine.low %v11385_v0, %v11385_v0 }
 0x25e   : > { %9830 = vmatmul.mubr.msk.bf16.vlgmr.msra.gmra.mrb[12].mxu0 %vm1114_vm5, %v11130_v61  ;;  %860 = vrot.lane.b32.xlu1 %v11372_v13, %s10957_s24 }
 0x25f   : > { %922 = vrot.lane.b32.xlu0 %v11323_v59, %s10960_s27  ;;  %9822 = vmatpush3.bf16.xpose.msra.mxu1 %v1167_v17  ;;  %v11466_v17 = vcombine.low %v11359_v10, %v11359_v10  ;;  %14302 = vst [vmem:[#allocation32_spill] sm:$0xff] %v11497_v54 }
 0x260   : > { %v11394_v18 = vpop.permute.xlu1 %900  ;;  %v11396_v20 = vpop.permute.xlu0 %5098  ;;  %9833 = vmatprep.subr.bf16.mxu1 %v14169_v2  ;;  %9841 = vmatprep.mubr.msk.bf16.mxu0 %vm10959_vm4, %v14169_v2 }
 0x261   : > { %14291 = vst [vmem:[#allocation21_spill] sm:$0xff] %v11396_v20  ;;  %14298 = vst [vmem:[#allocation28_spill] sm:$0xff] %v11466_v17 }
 0x262   : > { %892 = vrot.lane.b32.xlu1 %v11372_v13, %s10958_s26 }
 0x263   : > { %5770 = vrot.lane.b32.xlu0 %v11335_v63, %s10954_s20 }
 0x264   : > { %v11405_v61 = vpop.permute.xlu1 %5338  ;;  %v1402_v23 = vpop.permute.xlu0 %1401 }
 0x265   : > { %14292 = vst [vmem:[#allocation22_spill] sm:$0xff] %v11405_v61  ;;  %v1407_v49 = vsel %vm1114_vm5, %v1402_v23, 0 }
 0x266   : > { %9824 = vmatmul.mubr.msk.bf16.vlgmr.msra.gmra.mrb[24].mxu1 %vm1114_vm5, %v11192_v30  ;;  %924 = vrot.lane.b32.xlu1 %v11372_v13, %s10960_s27 }
 0x267   : > { %5674 = vrot.lane.b32.xlu0 %v11372_v13, %s10954_s20  ;;  %9834 = vmatpush3.bf16.xpose.msra.mxu1 %v1263_v25 }
 0x268   : > { %v11416_v27 = vpop.permute.xlu1 %5242  ;;  %v11418_v28 = vpop.permute.xlu0 %846  ;;  %9835 = vmatprep.mubr.msk.bf16.mxu1 %vm10959_vm4, %v14169_v2  ;;  %9845 = vmatprep.subr.bf16.mxu1 %v14169_v2 }
 0x269   : > { %14293 = vst [vmem:[#allocation23_spill] sm:$0xff] %v11416_v27 }
 0x26a   : > { %5914 = vrot.lane.b32.xlu1 %v9221_v26, %s10954_s20 }
 0x26b   : > { %1983 = vrot.lane.b32.xlu0 %v9221_v26, %s10955_s23 }
 0x26c   : > { %v1450_v30 = vpop.permute.xlu1 %1449  ;;  %v11427_v32 = vpop.permute.xlu0 %878 }
 0x26d   : > { %v1455_v23 = vsel %vm1114_vm5, %v1450_v30, 0 }
 0x26e   : > { %9836 = vmatmul.mubr.msk.bf16.vlgmr.msra.gmra.mrb[28].mxu1 %vm1114_vm5, %v11155_v8  ;;  %5818 = vrot.lane.b32.xlu1 %v9217_v29, %s10954_s20  ;;  %v11455_v8 = vcombine.low %v11350_v7, %v11350_v7 }
 0x26f   : > { %2783 = vrot.lane.b32.xlu0 %v11431_v38, %s10955_s23  ;;  %9847 = vmatprep.mubr.msk.bf16.mxu1 %vm10959_vm4, %v14169_v2 }
 0x270   : > { %v11442_v55 = vpop.permute.xlu1 %848  ;;  %v11444_v3 = vpop.permute.xlu0 %910  ;;  %14297 = vst [vmem:[#allocation27_spill] sm:$0xff] %v11455_v8 }
 0x271   : > { %14295 = vst [vmem:[#allocation25_spill] sm:$0xff] %v11444_v3  ;;  %v11562_v39 = vcombine.low %v11444_v3, %v11444_v3 }
 0x272   : > { %2033 = vrot.lane.b32.xlu1 %v9223_v41, %s10955_s23 }
 0x273   : > { %3583 = vrot.lane.b32.xlu0 %v11448_v5, %s10955_s23  ;;  %14312 = vst [vmem:[#allocation41_spill] sm:$0xff] %v11562_v39 }
 0x274   : > { %v11457_v6 = vpop.permute.xlu1 %880  ;;  %v1306_v12 = vpop.permute.xlu0 %1305 }
 0x275   : > { %v1311_v16 = vsel %vm1114_vm5, %v1306_v12, 0 }
 0x276   : > { %2833 = vrot.lane.b32.xlu1 %v11455_v8, %s10955_s23  ;;  %9840 = vmatpush3.bf16.xpose.msra.mxu0 %v1311_v16 }
 0x277   : > { %1883 = vrot.lane.b32.xlu0 %v9217_v29, %s10955_s23  ;;  %9851 = vmatprep.subr.bf16.mxu0 %v14169_v2  ;;  %v9219_v29 = vcombine.low %v11374_v14, %v11374_v14  ;;  %v11486_v2 = vcombine.low %v11361_v11, %v11361_v11 }
 0x278   : > { %v11468_v25 = vpop.permute.xlu1 %912  ;;  %v11470_v26 = vpop.permute.xlu0 %842 }
 0x279   : > { %14299 = vst [vmem:[#allocation29_spill] sm:$0xff] %v11468_v25  ;;  %14301 = vst [vmem:[#allocation31_spill] sm:$0xff] %v11486_v2  ;;  %v11578_v24 = vcombine.low %v11468_v25, %v11468_v25 }
 0x27a   : > { %3633 = vrot.lane.b32.xlu1 %v11466_v17, %s10955_s23 }
 0x27b   : > { %2683 = vrot.lane.b32.xlu0 %v11474_v53, %s10955_s23  ;;  %14314 = vst [vmem:[#allocation43_spill] sm:$0xff] %v11578_v24 }
 0x27c   : > { %v1354_v12 = vpop.permute.xlu1 %1353  ;;  %v11482_v16 = vpop.permute.xlu0 %874 }
 0x27d   : > { %v1359_v50 = vsel %vm1114_vm5, %v1354_v12, 0  ;;  %9842 = vmatmul.mubr.msk.bf16.vlgmr.msra.gmra.mrb[16].mxu0 %vm1114_vm5, %v11214_v40  ;;  %v14304_v12 = vmov 0.0   ;;  %v11586_v19 = vcombine.low %v11482_v16, %v11482_v16 }
 0x27e   : > { %1933 = vrot.lane.b32.xlu1 %v9219_v29, %s10955_s23  ;;  %9846 = vmatpush3.bf16.xpose.msra.mxu1 %v1359_v50 }
 0x27f   : > { %3483 = vrot.lane.b32.xlu0 %v11486_v2, %s10955_s23  ;;  %9852 = vmatpush3.bf16.xpose.msra.mxu0 %v1407_v49  ;;  %v11512_v49 = vcombine.low %v11394_v18, %v11394_v18  ;;  %14316 = vst [vmem:[#allocation45_spill] sm:$0xff] %v11586_v19 }
 0x280   : > { %v11499_v47 = vpop.permute.xlu1 %844  ;;  %v11501_v36 = vpop.permute.xlu0 %906  ;;  %9853 = vmatprep.mubr.msk.bf16.mxu0 %vm10959_vm4, %v14304_v12  ;;  %9857 = vmatprep.subr.bf16.mxu1 %v14304_v12 }
 0x281   : > { %14303 = vst [vmem:[#allocation33_spill] sm:$0xff] %v11501_v36  ;;  %9863 = vmatprep.subr.bf16.mxu0 %v14304_v12  ;;  %14305 = vst [vmem:[#allocation34_spill] sm:$0xff] %v11512_v49  ;;  %v11598_v5 = vcombine.low %v11501_v36, %v11501_v36 }
 0x282   : > { %2733 = vrot.lane.b32.xlu1 %v11497_v54, %s10955_s23 }
 0x283   : > { %5962 = vrot.lane.b32.xlu0 %v9223_v41, %s10954_s20  ;;  %v9229_v41 = vcombine.low %v11418_v28, %v11418_v28  ;;  %14317 = vst [vmem:[#allocation46_spill] sm:$0xff] %v11598_v5 }
 0x284   : > { %v11514_v50 = vpop.permute.xlu1 %876  ;;  %v11516_v40 = vpop.permute.xlu0 %5386 }
 0x285   : > { %14306 = vst [vmem:[#allocation35_spill] sm:$0xff] %v11516_v40  ;;  %9848 = vmatmul.mubr.msk.bf16.vlgmr.msra.gmra.mrb[32].mxu1 %vm1114_vm5, %v11239_v43 }
 0x286   : > { %9854 = vmatmul.mubr.msk.bf16.vlgmr.msra.gmra.mrb[20].mxu0 %vm1114_vm5, %v11207_v34  ;;  %3533 = vrot.lane.b32.xlu1 %v11512_v49, %s10955_s23  ;;  %v9225_v34 = vcombine.low %v11470_v26, %v11470_v26 }
 0x287   : > { %5866 = vrot.lane.b32.xlu0 %v9219_v29, %s10954_s20  ;;  %9858 = vmatpush3.bf16.xpose.msra.mxu1 %v1455_v23  ;;  %v11545_v29 = vcombine.low %v11427_v32, %v11427_v32  ;;  %v9231_v23 = vcombine.low %v11442_v55, %v11442_v55 }
 0x288   : > { %v11528_v35 = vpop.permute.xlu1 %908  ;;  %v11530_v48 = vpop.permute.xlu0 %5290  ;;  %9859 = vmatprep.mubr.msk.bf16.mxu1 %vm10959_vm4, %v14304_v12  ;;  %9865 = vmatprep.mubr.msk.bf16.mxu0 %vm10959_vm4, %v14304_v12 }
 0x289   : > { %14307 = vst [vmem:[#allocation36_spill] sm:$0xff] %v11528_v35  ;;  %14308 = vst [vmem:[#allocation37_spill] sm:$0xff] %v11530_v48  ;;  %9869 = vmatprep.subr.bf16.mxu1 %v14304_v12 }
 0x28a   : > { %6106 = vrot.lane.b32.xlu1 %v9229_v41, %s10954_s20  ;;  %14310 = vst [vmem:[#allocation39_spill] sm:$0xff] %v11545_v29 }
 0x28b   : > { %2183 = vrot.lane.b32.xlu0 %v9229_v41, %s10955_s23 }
 0x28c   : > { %v11541_v43 = vpop.permute.xlu1 %5530  ;;  %v1594_v30 = vpop.permute.xlu0 %1593 }
 0x28d   : > { %14309 = vst [vmem:[#allocation38_spill] sm:$0xff] %v11541_v43 }
 0x28e   : > { %9860 = vmatmul.mubr.msk.bf16.vlgmr.msra.gmra.mrb[36].mxu1 %vm1114_vm5, %v11221_v42  ;;  %6010 = vrot.lane.b32.xlu1 %v9225_v34, %s10954_s20  ;;  %v11569_v42 = vcombine.low %v11457_v6, %v11457_v6 }
 0x28f   : > { %2983 = vrot.lane.b32.xlu0 %v11545_v29, %s10955_s23  ;;  %9871 = vmatprep.mubr.msk.bf16.mxu1 %vm10959_vm4, %v14304_v12 }
 0x290   : > { %v11556_v41 = vpop.permute.xlu1 %5434  ;;  %v11558_v31 = vpop.permute.xlu0 %854  ;;  %14313 = vst [vmem:[#allocation42_spill] sm:$0xff] %v11569_v42 }
 0x291   : > { %14311 = vst [vmem:[#allocation40_spill] sm:$0xff] %v11556_v41 }
 0x292   : > { %2233 = vrot.lane.b32.xlu1 %v9231_v23, %s10955_s23 }
 0x293   : > { %3783 = vrot.lane.b32.xlu0 %v11562_v39, %s10955_s23 }
 0x294   : > { %v1642_v33 = vpop.permute.xlu1 %1641  ;;  %v11571_v37 = vpop.permute.xlu0 %886 }
 0x296   : > { %3033 = vrot.lane.b32.xlu1 %v11569_v42, %s10955_s23 }
 0x297   : > { %2083 = vrot.lane.b32.xlu0 %v9225_v34, %s10955_s23  ;;  %v9227_v34 = vcombine.low %v11499_v47, %v11499_v47 }
 0x298   : > { %v11580_v22 = vpop.permute.xlu1 %856  ;;  %v11582_v21 = vpop.permute.xlu0 %918 }
 0x299   : > { %14315 = vst [vmem:[#allocation44_spill] sm:$0xff] %v11582_v21 }
 0x29a   : > { %3833 = vrot.lane.b32.xlu1 %v11578_v24, %s10955_s23  ;;  %v11607_v24 = vcombine.low %v11514_v50, %v11514_v50 }
 0x29b   : > { %2883 = vrot.lane.b32.xlu0 %v11586_v19, %s10955_s23  ;;  %v1599_v19 = vsel %vm1114_vm5, %v1594_v30, 0  ;;  %v1647_v30 = vsel %vm1114_vm5, %v1642_v33, 0 }
 0x29c   : > { %v11594_v39 = vpop.permute.xlu1 %888  ;;  %v1498_v17 = vpop.permute.xlu0 %1497  ;;  %14318 = vst [vmem:[#allocation47_spill] sm:$0xff] %v11607_v24 }
 0x29d   : > { %v1503_v49 = vsel %vm1114_vm5, %v1498_v17, 0  ;;  %v11618_v17 = vcombine.low %v11528_v35, %v11528_v35 }
 0x29e   : > { %2133 = vrot.lane.b32.xlu1 %v9227_v34, %s10955_s23  ;;  %9864 = vmatpush3.bf16.xpose.msra.mxu0 %v1503_v49 }
 0x29f   : > { %3683 = vrot.lane.b32.xlu0 %v11598_v5, %s10955_s23  ;;  %9875 = vmatprep.subr.bf16.mxu0 %v14304_v12  ;;  %14320 = vst [vmem:[#allocation49_spill] sm:$0xff] %v11618_v17 }
 0x2a0   : > { %v11609_v2 = vpop.permute.xlu1 %920  ;;  %v11611_v42 = vpop.permute.xlu0 %850 }
 0x2a1   : > { %14319 = vst [vmem:[#allocation48_spill] sm:$0xff] %v11609_v2  ;;  %v11696_v38 = vcombine.low %v11609_v2, %v11609_v2 }
 0x2a2   : > { %2933 = vrot.lane.b32.xlu1 %v11607_v24, %s10955_s23 }
 0x2a3   : > { %6154 = vrot.lane.b32.xlu0 %v9231_v23, %s10954_s20  ;;  %v9237_v23 = vcombine.low %v11558_v31, %v11558_v31  ;;  %14330 = vst [vmem:[#allocation59_spill] sm:$0xff] %v11696_v38 }
 0x2a4   : > { %v1546_v49 = vpop.permute.xlu1 %1545  ;;  %v11620_v5 = vpop.permute.xlu0 %882 }
 0x2a5   : > { %v1551_v29 = vsel %vm1114_vm5, %v1546_v49, 0  ;;  %9866 = vmatmul.mubr.msk.bf16.vlgmr.msra.gmra.mrb[24].mxu0 %vm1114_vm5, %v11263_v45  ;;  %v11700_v54 = vcombine.low %v11620_v5, %v11620_v5 }
 0x2a6   : > { %9870 = vmatpush3.bf16.xpose.msra.mxu1 %v1551_v29  ;;  %3733 = vrot.lane.b32.xlu1 %v11618_v17, %s10955_s23  ;;  %v11648_v29 = vcombine.low %v11571_v37, %v11571_v37  ;;  %v11681_v17 = vcombine.low %v11594_v39, %v11594_v39 }
 0x2a7   : > { %6058 = vrot.lane.b32.xlu0 %v9227_v34, %s10954_s20  ;;  %9876 = vmatpush3.bf16.xpose.msra.mxu0 %v1599_v19  ;;  %v9233_v34 = vcombine.low %v11611_v42, %v11611_v42  ;;  %14331 = vst [vmem:[#allocation60_spill] sm:$0xff] %v11700_v54 }
 0x2a8   : > { %v11631_v24 = vpop.permute.xlu1 %852  ;;  %v11633_v8 = vpop.permute.xlu0 %914  ;;  %9877 = vmatprep.mubr.msk.bf16.mxu0 %vm10959_vm4, %v14304_v12  ;;  %9881 = vmatprep.subr.bf16.mxu1 %v14304_v12  ;;  %14323 = vst [vmem:[#allocation52_spill] sm:$0xff] %v11648_v29  ;;  %14328 = vst [vmem:[#allocation57_spill] sm:$0xff] %v11681_v17 }
 0x2a9   : > { %14321 = vst [vmem:[#allocation50_spill] sm:$0xff] %v11633_v8  ;;  %9887 = vmatprep.subr.bf16.mxu0 %v14304_v12  ;;  %v11712_v53 = vcombine.low %v11633_v8, %v11633_v8 }
 0x2aa   : > { %6298 = vrot.lane.b32.xlu1 %v9237_v23, %s10954_s20 }
 0x2ab   : > { %2383 = vrot.lane.b32.xlu0 %v9237_v23, %s10955_s23  ;;  %14332 = vst [vmem:[#allocation61_spill] sm:$0xff] %v11712_v53 }
 0x2ac   : > { %v11641_v45 = vpop.permute.xlu1 %884  ;;  %v11643_v19 = vpop.permute.xlu0 %5578 }
 0x2ad   : > { %14322 = vst [vmem:[#allocation51_spill] sm:$0xff] %v11643_v19  ;;  %9872 = vmatmul.mubr.msk.bf16.vlgmr.msra.gmra.mrb[40].mxu1 %vm1114_vm5, %v11289_v51  ;;  %v9239_v51 = vcombine.low %v11580_v22, %v11580_v22 }
 0x2ae   : > { %9878 = vmatmul.mubr.msk.bf16.vlgmr.msra.gmra.mrb[28].mxu0 %vm1114_vm5, %v11257_v44  ;;  %9882 = vmatpush3.bf16.xpose.msra.mxu1 %v1647_v30  ;;  %v11671_v44 = vcombine.low %v11582_v21, %v11582_v21 }
 0x2af   : > { %3183 = vrot.lane.b32.xlu0 %v11648_v29, %s10955_s23  ;;  %6202 = vrot.lane.b32.xlu1 %v9233_v34, %s10954_s20 }
 0x2b0   : > { %v11659_v33 = vpop.permute.xlu1 %916  ;;  %v11661_v49 = vpop.permute.xlu0 %5482  ;;  %9883 = vmatprep.mubr.msk.bf16.mxu1 %vm10959_vm4, %v14304_v12  ;;  %9889 = vmatprep.mubr.msk.bf16.mxu0 %vm10959_vm4, %v14304_v12  ;;  %14326 = vst [vmem:[#allocation55_spill] sm:$0xff] %v11671_v44 }
 0x2b1   : > { %14324 = vst [vmem:[#allocation53_spill] sm:$0xff] %v11659_v33  ;;  %14325 = vst [vmem:[#allocation54_spill] sm:$0xff] %v11661_v49  ;;  %9893 = vmatprep.subr.bf16.mxu1 %v14304_v12  ;;  %v11732_v43 = vcombine.low %v11659_v33, %v11659_v33 }
 0x2b3   : > { %3983 = vrot.lane.b32.xlu0 %v11671_v44, %s10955_s23  ;;  %2433 = vrot.lane.b32.xlu1 %v9239_v51, %s10955_s23  ;;  %14335 = vst [vmem:[#allocation64_spill] sm:$0xff] %v11732_v43 }
 0x2b4   : > { %v11677_v23 = vpop.permute.xlu1 %5722  ;;  %v1786_v30 = vpop.permute.xlu0 %1785 }
 0x2b5   : > { %14327 = vst [vmem:[#allocation56_spill] sm:$0xff] %v11677_v23  ;;  %9884 = vmatmul.mubr.msk.bf16.vlgmr.msra.gmra.mrb[44].mxu1 %vm1114_vm5, %v11269_v46 }
 0x2b6   : > { %9895 = vmatprep.mubr.msk.bf16.mxu1 %vm10959_vm4, %v14304_v12 }
 0x2b7   : > { %3233 = vrot.lane.b32.xlu1 %v11681_v17, %s10955_s23  ;;  %2283 = vrot.lane.b32.xlu0 %v9233_v34, %s10955_s23  ;;  %v9235_v17 = vcombine.low %v11631_v24, %v11631_v24 }
 0x2b8   : > { %v11690_v44 = vpop.permute.xlu1 %5626  ;;  %v11692_v29 = vpop.permute.xlu0 %862 }
 0x2b9   : > { %14329 = vst [vmem:[#allocation58_spill] sm:$0xff] %v11690_v44 }
 0x2bb   : > { %4033 = vrot.lane.b32.xlu1 %v11696_v38, %s10955_s23  ;;  %3083 = vrot.lane.b32.xlu0 %v11700_v54, %s10955_s23  ;;  %v11723_v54 = vcombine.low %v11641_v45, %v11641_v45 }
 0x2bc   : > { %v1834_v46 = vpop.permute.xlu1 %1833  ;;  %v11706_v34 = vpop.permute.xlu0 %894 }
 0x2bd   : > { %14334 = vst [vmem:[#allocation63_spill] sm:$0xff] %v11723_v54 }
 0x2bf   : > { %2333 = vrot.lane.b32.xlu1 %v9235_v17, %s10955_s23  ;;  %3883 = vrot.lane.b32.xlu0 %v11712_v53, %s10955_s23 }
 0x2c0   : > { %v11717_v23 = vpop.permute.xlu1 %864  ;;  %v11719_v38 = vpop.permute.xlu0 %926 }
 0x2c1   : > { %14333 = vst [vmem:[#allocation62_spill] sm:$0xff] %v11719_v38 }
 0x2c3   : > { %3133 = vrot.lane.b32.xlu1 %v11723_v54, %s10955_s23  ;;  %6346 = vrot.lane.b32.xlu0 %v9239_v51, %s10954_s20  ;;  %v11743_v51 = vcombine.low %v11692_v29, %v11692_v29  ;;  %v11747_v54 = vcombine.low %v11717_v23, %v11717_v23 }
 0x2c4   : > { %v11728_v44 = vpop.permute.xlu1 %896  ;;  %v1690_v19 = vpop.permute.xlu0 %1689 }
 0x2c5   : > { %v1695_v53 = vsel %vm1114_vm5, %v1690_v19, 0  ;;  %14337 = vst [vmem:[#allocation66_spill] sm:$0xff] %v11743_v51  ;;  %14338 = vst [vmem:[#allocation67_spill] sm:$0xff] %v11747_v54  ;;  %v11758_v19 = vcombine.low %v11706_v34, %v11706_v34 }
 0x2c6   : > { %9888 = vmatpush3.bf16.xpose.msra.mxu0 %v1695_v53 }
 0x2c7   : > { %3933 = vrot.lane.b32.xlu1 %v11732_v43, %s10955_s23  ;;  %6250 = vrot.lane.b32.xlu0 %v9235_v17, %s10954_s20  ;;  %v1791_v17 = vsel %vm1114_vm5, %v1786_v30, 0  ;;  %14339 = vst [vmem:[#allocation68_spill] sm:$0xff] %v11758_v19  ;;  %v11762_v43 = vcombine.low %v11728_v44, %v11728_v44 }
 0x2c8   : > { %v11738_v49 = vpop.permute.xlu1 %928  ;;  %9899 = vmatprep.subr.bf16.mxu0 %v14304_v12 }
 0x2c9   : > { %14336 = vst [vmem:[#allocation65_spill] sm:$0xff] %v11738_v49  ;;  %v11749_v41 = vpop.permute.xlu0 %858  ;;  %14340 = vst [vmem:[#allocation69_spill] sm:$0xff] %v11762_v43 }
 0x2cb   : > { %2633 = vrot.lane.b32.xlu1 %v11747_v54, %s10955_s23  ;;  %2583 = vrot.lane.b32.xlu0 %v11743_v51, %s10955_s23 }
 0x2cc   : > { %v1738_v53 = vpop.permute.xlu1 %1737 }
 0x2cd   : > { %v1743_v40 = vsel %vm1114_vm5, %v1738_v53, 0  ;;  %v11765_v61 = vpop.permute.xlu0 %890  ;;  %9890 = vmatmul.mubr.msk.bf16.vlgmr.msra.gmra.mrb[32].mxu0 %vm1114_vm5, %v11323_v59  ;;  %v11780_v53 = vcombine.low %v11719_v38, %v11719_v38  ;;  %v11784_v59 = vcombine.low %v11738_v49, %v11738_v49 }
 0x2ce   : > { %9894 = vmatpush3.bf16.xpose.msra.mxu1 %v1743_v40  ;;  %9900 = vmatpush3.bf16.xpose.msra.mxu0 %v1791_v17 }
 0x2cf   : > { %3433 = vrot.lane.b32.xlu1 %v11762_v43, %s10955_s23  ;;  %3383 = vrot.lane.b32.xlu0 %v11758_v19, %s10955_s23  ;;  %14341 = vst [vmem:[#allocation70_spill] sm:$0xff] %v11780_v53  ;;  %14342 = vst [vmem:[#allocation71_spill] sm:$0xff] %v11784_v59  ;;  %v1839_v43 = vsel %vm1114_vm5, %v1834_v46, 0  ;;  %v11798_v19 = vcombine.low %v11749_v41, %v11749_v41 }
 0x2d0   : > { %v11773_v30 = vpop.permute.xlu1 %860  ;;  %9901 = vmatprep.mubr.msk.bf16.mxu0 %vm10959_vm4, %v14304_v12  ;;  %9905 = vmatprep.subr.bf16.mxu1 %v14304_v12 }
 0x2d1   : > { %v11786_v40 = vpop.permute.xlu0 %922  ;;  %9911 = vmatprep.subr.bf16.mxu0 %v14304_v12  ;;  %14344 = vst [vmem:[#allocation73_spill] sm:$0xff] %v11798_v19  ;;  %v11802_v54 = vcombine.low %v11773_v30, %v11773_v30 }
 0x2d2   : > { %14343 = vst [vmem:[#allocation72_spill] sm:$0xff] %v11786_v40 }
 0x2d3   : > { %4233 = vrot.lane.b32.xlu1 %v11784_v59, %s10955_s23  ;;  %4183 = vrot.lane.b32.xlu0 %v11780_v53, %s10955_s23  ;;  %14345 = vst [vmem:[#allocation74_spill] sm:$0xff] %v11802_v54  ;;  %v11839_v53 = vcombine.low %v11786_v40, %v11786_v40  ;;  %v938_v40 = vlaneseq }
 0x2d4   : > { %v11793_v17 = vpop.permute.xlu1 %892 }
 0x2d5   : > { %v11804_v51 = vpop.permute.xlu0 %5770  ;;  %9896 = vmatmul.mubr.msk.bf16.vlgmr.msra.gmra.mrb[48].mxu1 %vm1114_vm5, %v11372_v13  ;;  %9902 = vmatmul.mubr.msk.bf16.vlgmr.msra.gmra.mrb[36].mxu0 %vm1114_vm5, %v11311_v56  ;;  %v11823_v56 = vcombine.low %v11765_v61, %v11765_v61  ;;  %v11827_v13 = vcombine.low %v11793_v17, %v11793_v17  ;;  %14352 = vst [vmem:[#allocation81_spill] sm:$0xff] %v11839_v53  ;;  %v939_v21 = vshrl.u32 %v938_v40, 7 }
 0x2d6   : > { %14346 = vst [vmem:[#allocation75_spill] sm:$0xff] %v11804_v51  ;;  %9906 = vmatpush3.bf16.xpose.msra.mxu1 %v1839_v43  ;;  %9907 = vmatprep.mubr.msk.bf16.mxu1 %vm10959_vm4, %v14304_v12 }
 0x2d7   : > { %2533 = vrot.lane.b32.xlu1 %v11802_v54, %s10955_s23  ;;  %2483 = vrot.lane.b32.xlu0 %v11798_v19, %s10955_s23  ;;  %14348 = vst [vmem:[#allocation77_spill] sm:$0xff] %v11823_v56  ;;  %14349 = vst [vmem:[#allocation78_spill] sm:$0xff] %v11827_v13 }
 0x2d8   : > { %v11816_v46 = vpop.permute.xlu1 %924  ;;  %9913 = vmatprep.mubr.msk.bf16.mxu0 %vm10959_vm4, %v14304_v12  ;;  %9917 = vmatprep.subr.bf16.mxu1 %v14304_v12 }
 0x2d9   : > { %14347 = vst [vmem:[#allocation76_spill] sm:$0xff] %v11816_v46  ;;  %v11829_v43 = vpop.permute.xlu0 %5674  ;;  %v11843_v54 = vcombine.low %v11816_v46, %v11816_v46 }
 0x2da   : > { %14350 = vst [vmem:[#allocation79_spill] sm:$0xff] %v11829_v43 }
 0x2db   : > { %3333 = vrot.lane.b32.xlu1 %v11827_v13, %s10955_s23  ;;  %3283 = vrot.lane.b32.xlu0 %v11823_v56, %s10955_s23  ;;  %14353 = vst [vmem:[#allocation82_spill] sm:$0xff] %v11843_v54 }
 0x2dc   : > { %v11835_v59 = vpop.permute.xlu1 %5914 }
 0x2dd   : > { %14351 = vst [vmem:[#allocation80_spill] sm:$0xff] %v11835_v59  ;;  %v1984_v51 = vpop.permute.xlu0 %1983  ;;  %9908 = vmatmul.mubr.msk.bf16.vlgmr.msra.gmra.mrb[52].mxu1 %vm1114_vm5, %v11335_v63 }
 0x2de   : > { %9919 = vmatprep.mubr.msk.bf16.mxu1 %vm10959_vm4, %v14304_v12  ;;  %v1989_v52 = vsel %vm1114_vm5, %v1984_v51, 0 }
 0x2df   : > { %4133 = vrot.lane.b32.xlu1 %v11843_v54, %s10955_s23  ;;  %4083 = vrot.lane.b32.xlu0 %v11839_v53, %s10955_s23 }
 0x2e0   : > { %v11853_v13 = vpop.permute.xlu1 %5818 }
 0x2e1   : > { %14354 = vst [vmem:[#allocation83_spill] sm:$0xff] %v11853_v13  ;;  %v11855_v56 = vpop.permute.xlu0 %2783 }
 0x2e4   : > { %v2034_v59 = vpop.permute.xlu1 %2033 }
 0x2e5   : > { %v11857_v19 = vpop.permute.xlu0 %3583  ;;  %v2039_v51 = vsel %vm1114_vm5, %v2034_v59, 0 }
 0x2e8   : > { %v11859_v43 = vpop.permute.xlu1 %2833 }
 0x2e9   : > { %v1884_v48 = vpop.permute.xlu0 %1883 }
 0x2ea   : > { %v1889_v63 = vsel %vm1114_vm5, %v1884_v48, 0 }
 0x2eb   : > { %9912 = vmatpush3.bf16.xpose.msra.mxu0 %v1889_v63 }
 0x2ec   : > { %v11862_v27 = vpop.permute.xlu1 %3633  ;;  %9923 = vmatprep.subr.bf16.mxu0 %v14304_v12 }
 0x2ed   : > { %v11865_v54 = vpop.permute.xlu0 %2683 }
 0x2f0   : > { %v1934_v53 = vpop.permute.xlu1 %1933 }
 0x2f1   : > { %v1939_v13 = vsel %vm1114_vm5, %v1934_v53, 0  ;;  %v11868_v15 = vpop.permute.xlu0 %3483 }
 0x2f2   : > { %9914 = vmatmul.mubr.msk.bf16.vlgmr.msra.gmra.mrb[40].mxu0 %vm1114_vm5, %v11315_v58  ;;  %9918 = vmatpush3.bf16.xpose.msra.mxu1 %v1939_v13 }
 0x2f3   : > { %9924 = vmatpush3.bf16.xpose.msra.mxu0 %v1989_v52  ;;  %9925 = vmatprep.mubr.msk.bf16.mxu0 %vm10959_vm4, %v14304_v12 }
 0x2f4   : > { %v11875_v48 = vpop.permute.xlu1 %2733  ;;  %9929 = vmatprep.subr.bf16.mxu1 %v14304_v12  ;;  %9935 = vmatprep.subr.bf16.mxu0 %v14304_v12 }
 0x2f5   : > { %v11879_v63 = vpop.permute.xlu0 %5962 }
 0x2f6   : > { %14355 = vst [vmem:[#allocation84_spill] sm:$0xff] %v11879_v63 }
 0x2f8   : > { %v11881_v53 = vpop.permute.xlu1 %3533 }
 0x2f9   : > { %v11884_v38 = vpop.permute.xlu0 %5866  ;;  %9920 = vmatmul.mubr.msk.bf16.vlgmr.msra.gmra.mrb[56].mxu1 %vm1114_vm5, %v11374_v14 }
 0x2fa   : > { %14356 = vst [vmem:[#allocation85_spill] sm:$0xff] %v11884_v38  ;;  %9926 = vmatmul.mubr.msk.bf16.vlgmr.msra.gmra.mrb[44].mxu0 %vm1114_vm5, %v11313_v57  ;;  %9930 = vmatpush3.bf16.xpose.msra.mxu1 %v2039_v51 }
 0x2fb   : > { %9931 = vmatprep.mubr.msk.bf16.mxu1 %vm10959_vm4, %v14304_v12  ;;  %9937 = vmatprep.mubr.msk.bf16.mxu0 %vm10959_vm4, %v14304_v12 }
 0x2fc   : > { %v11894_v52 = vpop.permute.xlu1 %6106  ;;  %9941 = vmatprep.subr.bf16.mxu1 %v14304_v12 }
 0x2fd   : > { %14357 = vst [vmem:[#allocation86_spill] sm:$0xff] %v11894_v52  ;;  %v2184_v58 = vpop.permute.xlu0 %2183 }
 0x2fe   : > { %v2189_v20 = vsel %vm1114_vm5, %v2184_v58, 0 }
 0x300   : > { %v11897_v59 = vpop.permute.xlu1 %6010 }
 0x301   : > { %14358 = vst [vmem:[#allocation87_spill] sm:$0xff] %v11897_v59  ;;  %v11899_v13 = vpop.permute.xlu0 %2983  ;;  %9932 = vmatmul.mubr.msk.bf16.vlgmr.msra.gmra.mrb[60].mxu1 %vm1114_vm5, %v11343_v4 }
 0x302   : > { %9943 = vmatprep.mubr.msk.bf16.mxu1 %vm10959_vm4, %v14304_v12 }
 0x304   : > { %v2234_v57 = vpop.permute.xlu1 %2233 }
 0x305   : > { %v11905_v14 = vpop.permute.xlu0 %3783 }
 0x306   : > { %14359 = vst [vmem:[#allocation88_spill] sm:$0xff] %v11905_v14 }
 0x308   : > { %v11907_v51 = vpop.permute.xlu1 %3033 }
 0x309   : > { %v2084_v63 = vpop.permute.xlu0 %2083 }
 0x30a   : > { %v2089_v52 = vsel %vm1114_vm5, %v2084_v63, 0  ;;  %v10961_v63 = vmov 1966171168  }
 0x30b   : > { %9936 = vmatpush3.bf16.xpose.msra.mxu0 %v2089_v52  ;;  %v936_v52 = vunpack.c.l.s4 %v10961_v63  ;;  %v11950_v63 = vld [vmem:[%s11936_s14] sm:$0xff] }
 0x30c   : > { %v11912_v59 = vpop.permute.xlu1 %3833  ;;  %9947 = vmatprep.subr.bf16.mxu0 %v14304_v12 }
 0x30d   : > { %14360 = vst [vmem:[#allocation89_spill] sm:$0xff] %v11912_v59  ;;  %v11915_v38 = vpop.permute.xlu0 %2883  ;;  %v937_v58 = vunpack.c.0.s8 %v936_v52 }
 0x30f   : > { %v11945_v40 = vsub.s32 %v937_v58, %v939_v21 }
 0x310   : > { %v2134_v4 = vpop.permute.xlu1 %2133 }
 0x311   : > { %v2139_v62 = vsel %vm1114_vm5, %v2134_v4, 0  ;;  %v11918_v49 = vpop.permute.xlu0 %3683 }
 0x312   : > { %9938 = vmatmul.mubr.msk.bf16.vlgmr.msra.gmra.mrb[48].mxu0 %vm1114_vm5, %v11470_v26  ;;  %9942 = vmatpush3.bf16.xpose.msra.mxu1 %v2139_v62  ;;  %v2239_v62 = vsel %vm1114_vm5, %v2234_v57, 0 }
 0x313   : > { %9948 = vmatpush3.bf16.xpose.msra.mxu0 %v2189_v20  ;;  %9949 = vmatprep.mubr.msk.bf16.mxu0 %vm10959_vm4, %v14304_v12 }
 0x314   : > { %v11925_v46 = vpop.permute.xlu1 %2933  ;;  %9953 = vmatprep.subr.bf16.mxu1 %v14304_v12  ;;  %9959 = vmatprep.subr.bf16.mxu0 %v14304_v12 }
 0x315   : > { %v11929_v4 = vpop.permute.xlu0 %6154 }
 0x316   : > { %14361 = vst [vmem:[#allocation90_spill] sm:$0xff] %v11929_v4  ;;  %v11966_v4 = vsub.s32 0, %v939_v21 }
 0x318   : > { %v11931_v26 = vpop.permute.xlu1 %3733 }
 0x319   : > { %v11939_v20 = vpop.permute.xlu0 %6058  ;;  %9944 = vmatmul.mubr.msk.bf16.vlgmr.msra.gmra.mrb[64].mxu1 %vm1114_vm5, %v11499_v47  ;;  %v941_v47 = vrot.slane %v11950_v63, %v11945_v40 }
 0x31a   : > { %14362 = vst [vmem:[#allocation91_spill] sm:$0xff] %v11939_v20  ;;  %9950 = vmatmul.mubr.msk.bf16.vlgmr.msra.gmra.mrb[52].mxu0 %vm1114_vm5, %v11418_v28  ;;  %9954 = vmatpush3.bf16.xpose.msra.mxu1 %v2239_v62 }
 0x31b   : > { %9955 = vmatprep.mubr.msk.bf16.mxu1 %vm10959_vm4, %v14304_v12  ;;  %9961 = vmatprep.mubr.msk.bf16.mxu0 %vm10959_vm4, %v14304_v12  ;;  %v957_v62 = vrot.slane %v941_v47, %v11945_v40 }
 0x31c   : > { %v11954_v57 = vpop.permute.xlu1 %6298  ;;  %9965 = vmatprep.subr.bf16.mxu1 %v14304_v12 }
 0x31d   : > { %14363 = vst [vmem:[#allocation92_spill] sm:$0xff] %v11954_v57  ;;  %v2384_v52 = vpop.permute.xlu0 %2383  ;;  %v11973_v2 = vrot.slane %v957_v62, %v11966_v4  ;;  %v979_v25 = vcombine.high %v957_v62, %v957_v62 }
 0x31f   : > { %14366 = vst [vmem:[#allocation95_spill] sm:$0xff] %v11973_v2 }
 0x321   : > { %v11959_v28 = vpop.permute.xlu1 %6202  ;;  %v11961_v58 = vpop.permute.xlu0 %3183  ;;  %9956 = vmatmul.mubr.msk.bf16.vlgmr.msra.gmra.mrb[68].mxu1 %vm1114_vm5, %v11442_v55 }
 0x322   : > { %14364 = vst [vmem:[#allocation93_spill] sm:$0xff] %v11959_v28  ;;  %9967 = vmatprep.mubr.msk.bf16.mxu1 %vm10959_vm4, %v14304_v12 }
 0x325   : > { %v2434_v57 = vpop.permute.xlu1 %2433  ;;  %v11970_v20 = vpop.permute.xlu0 %3983 }
 0x326   : > { %14365 = vst [vmem:[#allocation94_spill] sm:$0xff] %v11970_v20 }
 0x329   : > { %v1155_v8 = vpop.f32.mrb[8].mxu0  ;;  %v11975_v28 = vpop.permute.xlu1 %3233 }
 0x32a   : > { %v11978_v33 = vadd.f32 %v1155_v8, %v11973_v2  ;;  %v2284_v55 = vpop.permute.xlu0 %2283  ;;  %v9819_v3 = vpop.f32.mrb[9].mxu0  ;;  %v11989_v8 = vrot.slane %v979_v25, %v11966_v4 }
 0x32b   : > { %v2289_v21 = vsel %vm1114_vm5, %v2284_v55, 0  ;;  %v1158_v36 = vpop.f32.mrb[10].mxu0  ;;  %v949_v3 = vcombine.high %v941_v47, %v941_v47 }
 0x32c   : > { %14367 = vst [vmem:[#allocation96_spill] sm:$0xff] %v11978_v33  ;;  %9960 = vmatpush3.bf16.xpose.msra.mxu0 %v2289_v21  ;;  %v9820_v14 = vpop.f32.mrb[11].mxu0  ;;  %v4281_v20 = vsel %vm1114_vm5, %v11978_v33, -inf  ;;  %14368 = vst [vmem:[#allocation97_spill] sm:$0xff] %v11989_v8  ;;  %v2389_v33 = vsel %vm1114_vm5, %v2384_v52, 0 }
 0x32d   : > { %v11983_v35 = vpop.permute.xlu1 %4033  ;;  %4282 = vmax.xlane.f32.xlu0 %v4281_v20  ;;  %9971 = vmatprep.subr.bf16.mxu0 %v14304_v12  ;;  %v971_v20 = vrot.slane %v949_v3, %v11945_v40 }
 0x32e   : > { %v11986_v59 = vpop.permute.xlu0 %3083 }
 0x32f   : > { %v12011_v52 = vrot.slane %v971_v20, %v11966_v4 }
 0x331   : > { %v1251_v62 = vpop.f32.mrb[12].mxu0  ;;  %v2334_v2 = vpop.permute.xlu1 %2333  ;;  %14371 = vst [vmem:[#allocation100_spill] sm:$0xff] %v12011_v52 }
 0x332   : > { %v11992_v36 = vadd.f32 %v1251_v62, %v11989_v8  ;;  %v2339_v14 = vsel %vm1114_vm5, %v2334_v2, 0  ;;  %v11995_v55 = vpop.permute.xlu0 %3883  ;;  %v9831_v21 = vpop.f32.mrb[13].mxu0 }
 0x333   : > { %9962 = vmatmul.mubr.msk.bf16.vlgmr.msra.gmra.mrb[56].mxu0 %vm1114_vm5, %v11611_v42  ;;  %v1254_v25 = vpop.f32.mrb[14].mxu0  ;;  %9966 = vmatpush3.bf16.xpose.msra.mxu1 %v2339_v14  ;;  %v2439_v14 = vsel %vm1114_vm5, %v2434_v57, 0 }
 0x334   : > { %14369 = vst [vmem:[#allocation98_spill] sm:$0xff] %v11992_v36  ;;  %9972 = vmatpush3.bf16.xpose.msra.mxu0 %v2389_v33  ;;  %v9832_v47 = vpop.f32.mrb[15].mxu0  ;;  %v4287_v62 = vsel %vm1114_vm5, %v11992_v36, -inf  ;;  %9973 = vmatprep.mubr.msk.bf16.mxu0 %vm10959_vm4, %v14304_v12 }
 0x335   : > { %v12005_v2 = vpop.permute.xlu1 %3133  ;;  %4288 = vmax.xlane.f32.xlu0 %v4287_v62  ;;  %9977 = vmatprep.subr.bf16.mxu1 %v14304_v12  ;;  %v981_v62 = vcombine.high %v971_v20, %v971_v20 }
 0x336   : > { %v12008_v3 = vpop.permute.xlu0 %6346  ;;  %9983 = vmatprep.subr.bf16.mxu0 %v14304_v12 }
 0x337   : > { %14370 = vst [vmem:[#allocation99_spill] sm:$0xff] %v12008_v3  ;;  %v12034_v20 = vrot.slane %v981_v62, %v11966_v4 }
 0x339   : > { %v1203_v42 = vpop.f32.mrb[24].mxu1  ;;  %v12014_v33 = vpop.permute.xlu1 %3933  ;;  %14374 = vst [vmem:[#allocation103_spill] sm:$0xff] %v12034_v20 }
 0x33a   : > { %v12018_v21 = vadd.f32 %v1203_v42, %v12011_v52  ;;  %v12020_v25 = vpop.permute.xlu0 %6250  ;;  %v9825_v47 = vpop.f32.mrb[25].mxu1  ;;  %9968 = vmatmul.mubr.msk.bf16.vlgmr.msra.gmra.mrb[72].mxu1 %vm1114_vm5, %v11631_v24 }
 0x33b   : > { %14373 = vst [vmem:[#allocation102_spill] sm:$0xff] %v12020_v25  ;;  %9974 = vmatmul.mubr.msk.bf16.vlgmr.msra.gmra.mrb[60].mxu0 %vm1114_vm5, %v11558_v31  ;;  %v1206_v3 = vpop.f32.mrb[26].mxu1  ;;  %9978 = vmatpush3.bf16.xpose.msra.mxu1 %v2439_v14 }
 0x33c   : > { %14372 = vst [vmem:[#allocation101_spill] sm:$0xff] %v12018_v21  ;;  %v9826_v36 = vpop.f32.mrb[27].mxu1  ;;  %v4284_v8 = vsel %vm1114_vm5, %v12018_v21, -inf  ;;  %9979 = vmatprep.mubr.msk.bf16.mxu1 %vm10959_vm4, %v14304_v12  ;;  %9989 = vmatprep.subr.bf16.mxu1 %v14304_v12 }
 0x33d   : > { %4285 = vmax.xlane.f32.xlu1 %v4284_v8  ;;  %v2634_v57 = vpop.permute.xlu1 %2633  ;;  %9985 = vmatprep.mubr.msk.bf16.mxu0 %vm10959_vm4, %v14304_v12  ;;  %v934_v36 = vcombine.high %v11950_v63, %v11950_v63 }
 0x33e   : > { %v2584_v24 = vpop.permute.xlu0 %2583 }
 0x33f   : > { %v948_v63 = vrot.slane %v934_v36, %v11945_v40 }
 0x341   : > { %v1299_v31 = vpop.f32.mrb[28].mxu1  ;;  %v12036_v3 = vpop.permute.xlu1 %3433 }
 0x342   : > { %v12041_v42 = vadd.f32 %v1299_v31, %v12034_v20  ;;  %v12043_v14 = vpop.permute.xlu0 %3383  ;;  %v9837_v8 = vpop.f32.mrb[29].mxu1  ;;  %9980 = vmatmul.mubr.msk.bf16.vlgmr.msra.gmra.mrb[76].mxu1 %vm1114_vm5, %v11580_v22 }
 0x343   : > { %v1302_v47 = vpop.f32.mrb[30].mxu1  ;;  %9991 = vmatprep.mubr.msk.bf16.mxu1 %vm10959_vm4, %v14304_v12  ;;  %v964_v8 = vrot.slane %v948_v63, %v11945_v40 }
 0x344   : > { %14375 = vst [vmem:[#allocation104_spill] sm:$0xff] %v12041_v42  ;;  %v9838_v62 = vpop.f32.mrb[31].mxu1  ;;  %v4290_v25 = vsel %vm1114_vm5, %v12041_v42, -inf }
 0x345   : > { %v12051_v21 = vpop.permute.xlu1 %4233  ;;  %4291 = vmax.xlane.f32.xlu0 %v4290_v25  ;;  %v12061_v62 = vrot.slane %v964_v8, %v11966_v4  ;;  %v950_v25 = vcombine.high %v948_v63, %v948_v63 }
 0x346   : > { %14376 = vst [vmem:[#allocation105_spill] sm:$0xff] %v12051_v21  ;;  %v12054_v31 = vpop.permute.xlu0 %4183  ;;  %v2639_v21 = vsel %vm1114_vm5, %v2634_v57, 0 }
 0x347   : > { %14377 = vst [vmem:[#allocation106_spill] sm:$0xff] %v12054_v31 }
 0x349   : > { %v2534_v20 = vpop.permute.xlu1 %2533 }
 0x34a   : > { %v2539_v22 = vsel %vm1114_vm5, %v2534_v20, 0  ;;  %v2484_v47 = vpop.permute.xlu0 %2483  ;;  %v978_v20 = vrot.slane %v950_v25, %v11945_v40 }
 0x34b   : > { %v2489_v52 = vsel %vm1114_vm5, %v2484_v47, 0  ;;  %9990 = vmatpush3.bf16.xpose.msra.mxu1 %v2539_v22  ;;  %v980_v22 = vcombine.high %v964_v8, %v964_v8  ;;  %v2589_v47 = vsel %vm1114_vm5, %v2584_v24, 0  ;;  %v2739_v8 = vsel %vm1114_vm5, %v11875_v48, 0 }
 0x34c   : > { %9984 = vmatpush3.bf16.xpose.msra.mxu0 %v2489_v52  ;;  %10001 = vmatprep.subr.bf16.mxu1 %v14304_v12 }
 0x34d   : > { %9995 = vmatprep.subr.bf16.mxu0 %v14304_v12 }
 0x350   : > { %v1347_v36 = vpop.f32.mrb[16].mxu0 }
 0x351   : > { %v12065_v42 = vadd.f32 %v1347_v36, %v12061_v62  ;;  %v9843_v31 = vpop.f32.mrb[17].mxu0 }
 0x352   : > { %9992 = vmatmul.mubr.msk.bf16.vlgmr.msra.gmra.mrb[80].mxu1 %vm1114_vm5, %v11773_v30  ;;  %v1350_v52 = vpop.f32.mrb[18].mxu0  ;;  %v12077_v31 = vrot.slane %v978_v20, %v11966_v4  ;;  %v12084_v30 = vrot.slane %v980_v22, %v11966_v4 }
 0x353   : > { %9986 = vmatmul.mubr.msk.bf16.vlgmr.msra.gmra.mrb[64].mxu0 %vm1114_vm5, %v11749_v41  ;;  %10002 = vmatpush3.bf16.xpose.msra.mxu1 %v2639_v21  ;;  %v9844_v63 = vpop.f32.mrb[19].mxu0  ;;  %v4293_v36 = vsel %vm1114_vm5, %v12065_v42, -inf }
 0x354   : > { %9996 = vmatpush3.bf16.xpose.msra.mxu0 %v2589_v47  ;;  %4294 = vmax.xlane.f32.xlu1 %v4293_v36  ;;  %v982_v47 = vcombine.high %v978_v20, %v978_v20  ;;  %v2689_v63 = vsel %vm1114_vm5, %v11865_v54, 0 }
 0x355   : > { %9997 = vmatprep.mubr.msk.bf16.mxu0 %vm10959_vm4, %v14304_v12  ;;  %10003 = vmatprep.mubr.msk.bf16.mxu1 %vm10959_vm4, %v14304_v12 }
 0x356   : > { %10007 = vmatprep.subr.bf16.mxu0 %v14304_v12  ;;  %10013 = vmatprep.subr.bf16.mxu1 %v14304_v12  ;;  %v12109_v54 = vrot.slane %v982_v47, %v11966_v4 }
 0x358   : > { %v1395_v41 = vpop.f32.mrb[32].mxu1 }
 0x359   : > { %v12089_v21 = vadd.f32 %v1395_v41, %v12077_v31  ;;  %v1443_v57 = vpop.f32.mrb[20].mxu0  ;;  %v9849_v24 = vpop.f32.mrb[33].mxu1 }
 0x35a   : > { %v12094_v25 = vadd.f32 %v1443_v57, %v12084_v30  ;;  %v9855_v52 = vpop.f32.mrb[21].mxu0  ;;  %10004 = vmatmul.mubr.msk.bf16.vlgmr.msra.gmra.mrb[84].mxu1 %vm1114_vm5, %v11717_v23  ;;  %v1398_v22 = vpop.f32.mrb[34].mxu1  ;;  %v2839_v23 = vsel %vm1114_vm5, %v11859_v43, 0 }
 0x35b   : > { %9998 = vmatmul.mubr.msk.bf16.vlgmr.msra.gmra.mrb[68].mxu0 %vm1114_vm5, %v11692_v29  ;;  %v1446_v36 = vpop.f32.mrb[22].mxu0  ;;  %10014 = vmatpush3.bf16.xpose.msra.mxu1 %v2739_v8  ;;  %v9850_v41 = vpop.f32.mrb[35].mxu1  ;;  %v4296_v48 = vsel %vm1114_vm5, %v12089_v21, -inf  ;;  %v2789_v52 = vsel %vm1114_vm5, %v11855_v56, 0  ;;  %v2889_v56 = vsel %vm1114_vm5, %v11915_v38, 0 }
 0x35c   : > { %10008 = vmatpush3.bf16.xpose.msra.mxu0 %v2689_v63  ;;  %v9856_v57 = vpop.f32.mrb[23].mxu0  ;;  %v4299_v24 = vsel %vm1114_vm5, %v12094_v25, -inf  ;;  %4297 = vmax.xlane.f32.xlu0 %v4296_v48  ;;  %v3139_v41 = vsel %vm1114_vm5, %v12005_v2, 0 }
 0x35d   : > { %4300 = vmax.xlane.f32.xlu1 %v4299_v24  ;;  %10009 = vmatprep.mubr.msk.bf16.mxu0 %vm10959_vm4, %v14304_v12  ;;  %v3089_v24 = vsel %vm1114_vm5, %v11986_v59, 0 }
 0x35e   : > { %10015 = vmatprep.mubr.msk.bf16.mxu1 %vm10959_vm4, %v14304_v12  ;;  %10019 = vmatprep.subr.bf16.mxu0 %v14304_v12 }
 0x35f   : > { %10025 = vmatprep.subr.bf16.mxu1 %v14304_v12 }
 0x361   : > { %v1491_v29 = vpop.f32.mrb[36].mxu1 }
 0x362   : > { %v12118_v20 = vadd.f32 %v1491_v29, %v12109_v54  ;;  %v9861_v8 = vpop.f32.mrb[37].mxu1  ;;  %10016 = vmatmul.mubr.msk.bf16.vlgmr.msra.gmra.mrb[88].mxu1 %vm1114_vm5, %v11385_v0  ;;  %v12139_v0 = vld [vmem:[%s11936_s14 + $0x8] sm:$0xff] }
 0x363   : > { %10010 = vmatmul.mubr.msk.bf16.vlgmr.msra.gmra.mrb[72].mxu0 %vm1114_vm5, %v11352_v9  ;;  %v1494_v22 = vpop.f32.mrb[38].mxu1  ;;  %10026 = vmatpush3.bf16.xpose.msra.mxu1 %v2839_v23  ;;  %v2939_v9 = vsel %vm1114_vm5, %v11925_v46, 0  ;;  %v2989_v46 = vsel %vm1114_vm5, %v11899_v13, 0 }
 0x364   : > { %10020 = vmatpush3.bf16.xpose.msra.mxu0 %v2789_v52  ;;  %v9862_v47 = vpop.f32.mrb[39].mxu1  ;;  %v4302_v43 = vsel %vm1114_vm5, %v12118_v20, -inf  ;;  %10021 = vmatprep.mubr.msk.bf16.mxu0 %vm10959_vm4, %v14304_v12 }
 0x365   : > { %4303 = vmax.xlane.f32.xlu0 %v4302_v43  ;;  %10027 = vmatprep.mubr.msk.bf16.mxu1 %vm10959_vm4, %v14304_v12  ;;  %v3239_v47 = vsel %vm1114_vm5, %v11975_v28, 0 }
 0x366   : > { %10031 = vmatprep.subr.bf16.mxu0 %v14304_v12  ;;  %10037 = vmatprep.subr.bf16.mxu1 %v14304_v12 }
 0x36a   : > { %10028 = vmatmul.mubr.msk.bf16.vlgmr.msra.gmra.mrb[92].mxu1 %vm1114_vm5, %v11350_v7  ;;  %v990_v7 = vrot.slane %v12139_v0, %v11945_v40 }
 0x36b   : > { %10022 = vmatmul.mubr.msk.bf16.vlgmr.msra.gmra.mrb[76].mxu0 %vm1114_vm5, %v11325_v60  ;;  %10038 = vmatpush3.bf16.xpose.msra.mxu1 %v2939_v9  ;;  %v3039_v60 = vsel %vm1114_vm5, %v11907_v51, 0 }
 0x36c   : > { %10032 = vmatpush3.bf16.xpose.msra.mxu0 %v2889_v56  ;;  %10033 = vmatprep.mubr.msk.bf16.mxu0 %vm10959_vm4, %v14304_v12  ;;  %v1006_v38 = vrot.slane %v990_v7, %v11945_v40 }
 0x36d   : > { %10039 = vmatprep.mubr.msk.bf16.mxu1 %vm10959_vm4, %v14304_v12  ;;  %10043 = vmatprep.subr.bf16.mxu0 %v14304_v12 }
 0x36e   : > { %10049 = vmatprep.subr.bf16.mxu1 %v14304_v12  ;;  %v12165_v63 = vrot.slane %v1006_v38, %v11966_v4  ;;  %v1028_v57 = vcombine.high %v1006_v38, %v1006_v38 }
 0x372   : > { %10040 = vmatmul.mubr.msk.bf16.vlgmr.msra.gmra.mrb[96].mxu1 %vm1114_vm5, %v11514_v50  ;;  %v998_v50 = vcombine.high %v990_v7, %v990_v7  ;;  %v3189_v7 = vsel %vm1114_vm5, %v11961_v58, 0  ;;  %v3284_v58 = vpop.permute.xlu0 %3283 }
 0x373   : > { %10034 = vmatmul.mubr.msk.bf16.vlgmr.msra.gmra.mrb[80].mxu0 %vm1114_vm5, %v11482_v16  ;;  %10050 = vmatpush3.bf16.xpose.msra.mxu1 %v3039_v60 }
 0x374   : > { %10044 = vmatpush3.bf16.xpose.msra.mxu0 %v2989_v46  ;;  %10045 = vmatprep.mubr.msk.bf16.mxu0 %vm10959_vm4, %v14304_v12  ;;  %v1020_v36 = vrot.slane %v998_v50, %v11945_v40 }
 0x375   : > { %10051 = vmatprep.mubr.msk.bf16.mxu1 %vm10959_vm4, %v14304_v12  ;;  %10055 = vmatprep.subr.bf16.mxu0 %v14304_v12 }
 0x376   : > { %10061 = vmatprep.subr.bf16.mxu1 %v14304_v12  ;;  %v12186_v2 = vrot.slane %v1020_v36, %v11966_v4  ;;  %v1030_v22 = vcombine.high %v1020_v36, %v1020_v36 }
 0x378   : > { %v1539_v13 = vpop.f32.mrb[24].mxu0 }
 0x379   : > { %v12172_v51 = vadd.f32 %v1539_v13, %v12165_v63  ;;  %v9867_v16 = vpop.f32.mrb[25].mxu0 }
 0x37a   : > { %10052 = vmatmul.mubr.msk.bf16.vlgmr.msra.gmra.mrb[100].mxu1 %vm1114_vm5, %v11457_v6  ;;  %v1542_v48 = vpop.f32.mrb[26].mxu0  ;;  %v12193_v6 = vrot.slane %v1028_v57, %v11966_v4  ;;  %v3289_v57 = vsel %vm1114_vm5, %v3284_v58, 0  ;;  %v3689_v58 = vsel %vm1114_vm5, %v11918_v49, 0 }
 0x37b   : > { %10046 = vmatmul.mubr.msk.bf16.vlgmr.msra.gmra.mrb[84].mxu0 %vm1114_vm5, %v11427_v32  ;;  %10062 = vmatpush3.bf16.xpose.msra.mxu1 %v3139_v41  ;;  %v9868_v29 = vpop.f32.mrb[27].mxu0  ;;  %v4305_v23 = vsel %vm1114_vm5, %v12172_v51, -inf }
 0x37c   : > { %10056 = vmatpush3.bf16.xpose.msra.mxu0 %v3089_v24  ;;  %4306 = vmax.xlane.f32.xlu1 %v4305_v23  ;;  %v3389_v23 = vsel %vm1114_vm5, %v12043_v14, 0  ;;  %v3539_v14 = vsel %vm1114_vm5, %v11881_v53, 0 }
 0x37d   : > { %10057 = vmatprep.mubr.msk.bf16.mxu0 %vm10959_vm4, %v14304_v12  ;;  %10063 = vmatprep.mubr.msk.bf16.mxu1 %vm10959_vm4, %v14304_v12 }
 0x37e   : > { %10067 = vmatprep.subr.bf16.mxu0 %v14304_v12  ;;  %10073 = vmatprep.subr.bf16.mxu1 %v14304_v12 }
 0x380   : > { %v1587_v32 = vpop.f32.mrb[40].mxu1 }
 0x381   : > { %v12198_v59 = vadd.f32 %v1587_v32, %v12186_v2  ;;  %v1635_v8 = vpop.f32.mrb[28].mxu0  ;;  %v9873_v52 = vpop.f32.mrb[41].mxu1 }
 0x382   : > { %v12203_v43 = vadd.f32 %v1635_v8, %v12193_v6  ;;  %v9879_v9 = vpop.f32.mrb[29].mxu0  ;;  %10064 = vmatmul.mubr.msk.bf16.vlgmr.msra.gmra.mrb[104].mxu1 %vm1114_vm5, %v11641_v45  ;;  %v1590_v56 = vpop.f32.mrb[42].mxu1  ;;  %v12216_v45 = vrot.slane %v1030_v22, %v11966_v4  ;;  %v3639_v52 = vsel %vm1114_vm5, %v11862_v27, 0 }
 0x383   : > { %10058 = vmatmul.mubr.msk.bf16.vlgmr.msra.gmra.mrb[88].mxu0 %vm1114_vm5, %v11620_v5  ;;  %v1638_v38 = vpop.f32.mrb[30].mxu0  ;;  %10074 = vmatpush3.bf16.xpose.msra.mxu1 %v3239_v47  ;;  %v9874_v60 = vpop.f32.mrb[43].mxu1  ;;  %v4308_v28 = vsel %vm1114_vm5, %v12198_v59, -inf  ;;  %v3589_v47 = vsel %vm1114_vm5, %v11857_v19, 0 }
 0x384   : > { %10068 = vmatpush3.bf16.xpose.msra.mxu0 %v3189_v7  ;;  %v9880_v46 = vpop.f32.mrb[31].mxu0  ;;  %v4311_v50 = vsel %vm1114_vm5, %v12203_v43, -inf  ;;  %4309 = vmax.xlane.f32.xlu0 %v4308_v28  ;;  %14378 = vst [vmem:[#allocation107_spill] sm:$0xff] %v12216_v45  ;;  %v3334_v5 = vpop.permute.xlu1 %3333 }
 0x385   : > { %4312 = vmax.xlane.f32.xlu1 %v4311_v50  ;;  %10069 = vmatprep.mubr.msk.bf16.mxu0 %vm10959_vm4, %v14304_v12  ;;  %v3339_v41 = vsel %vm1114_vm5, %v3334_v5, 0  ;;  %v3739_v46 = vsel %vm1114_vm5, %v11931_v26, 0 }
 0x386   : > { %10075 = vmatprep.mubr.msk.bf16.mxu1 %vm10959_vm4, %v14304_v12  ;;  %10079 = vmatprep.subr.bf16.mxu0 %v14304_v12 }
 0x387   : > { %10085 = vmatprep.subr.bf16.mxu1 %v14304_v12 }
 0x388   : > { %v1683_v13 = vpop.f32.mrb[44].mxu1 }
 0x389   : > { %v12225_v16 = vadd.f32 %v1683_v13, %v12216_v45  ;;  %v9885_v36 = vpop.f32.mrb[45].mxu1 }
 0x38a   : > { %10076 = vmatmul.mubr.msk.bf16.vlgmr.msra.gmra.mrb[108].mxu1 %vm1114_vm5, %v11594_v39  ;;  %v1686_v48 = vpop.f32.mrb[46].mxu1  ;;  %v3439_v39 = vsel %vm1114_vm5, %v12036_v3, 0 }
 0x38b   : > { %10070 = vmatmul.mubr.msk.bf16.vlgmr.msra.gmra.mrb[92].mxu0 %vm1114_vm5, %v11571_v37  ;;  %10086 = vmatpush3.bf16.xpose.msra.mxu1 %v3339_v41  ;;  %v9886_v24 = vpop.f32.mrb[47].mxu1  ;;  %v4314_v29 = vsel %vm1114_vm5, %v12225_v16, -inf  ;;  %v983_v37 = vcombine.high %v12139_v0, %v12139_v0 }
 0x38c   : > { %10080 = vmatpush3.bf16.xpose.msra.mxu0 %v3289_v57  ;;  %4315 = vmax.xlane.f32.xlu0 %v4314_v29  ;;  %v14381_v57 = vld [vmem:[#allocation89_spill] sm:$0xff] }
 0x38d   : > { %10081 = vmatprep.mubr.msk.bf16.mxu0 %vm10959_vm4, %v14304_v12  ;;  %10087 = vmatprep.mubr.msk.bf16.mxu1 %vm10959_vm4, %v14304_v12  ;;  %v997_v3 = vrot.slane %v983_v37, %v11945_v40  ;;  %v3839_v24 = vsel %vm1114_vm5, %v14381_v57, 0  ;;  %v14383_v37 = vld [vmem:[#allocation88_spill] sm:$0xff] }
 0x38e   : > { %10091 = vmatprep.subr.bf16.mxu0 %v14304_v12  ;;  %10097 = vmatprep.subr.bf16.mxu1 %v14304_v12 }
 0x392   : > { %10088 = vmatmul.mubr.msk.bf16.vlgmr.msra.gmra.mrb[112].mxu1 %vm1114_vm5, %v11793_v17  ;;  %v1013_v17 = vrot.slane %v997_v3, %v11945_v40 }
 0x393   : > { %10082 = vmatmul.mubr.msk.bf16.vlgmr.msra.gmra.mrb[96].mxu0 %vm1114_vm5, %v11765_v61  ;;  %10098 = vmatpush3.bf16.xpose.msra.mxu1 %v3439_v39  ;;  %v3489_v61 = vsel %vm1114_vm5, %v11868_v15, 0  ;;  %v3789_v39 = vsel %vm1114_vm5, %v14383_v37, 0 }
 0x394   : > { %10092 = vmatpush3.bf16.xpose.msra.mxu0 %v3389_v23  ;;  %10093 = vmatprep.mubr.msk.bf16.mxu0 %vm10959_vm4, %v14304_v12  ;;  %v12270_v0 = vrot.slane %v1013_v17, %v11966_v4  ;;  %v1029_v8 = vcombine.high %v1013_v17, %v1013_v17  ;;  %v14384_v23 = vld [vmem:[#allocation33_spill] sm:$0xff] }
 0x395   : > { %10099 = vmatprep.mubr.msk.bf16.mxu1 %vm10959_vm4, %v14304_v12  ;;  %10103 = vmatprep.subr.bf16.mxu0 %v14304_v12 }
 0x396   : > { %10109 = vmatprep.subr.bf16.mxu1 %v14304_v12  ;;  %v12294_v27 = vrot.slane %v1029_v8, %v11966_v4  ;;  %v14389_v8 = vld [vmem:[#allocation50_spill] sm:$0xff] }
 0x398   : > { %14379 = vst [vmem:[#allocation108_spill] sm:$0xff] %v12294_v27 }
 0x39a   : > { %10100 = vmatmul.mubr.msk.bf16.vlgmr.msra.gmra.mrb[116].mxu1 %vm1114_vm5, %v11728_v44  ;;  %v999_v44 = vcombine.high %v997_v3, %v997_v3 }
 0x39b   : > { %10094 = vmatmul.mubr.msk.bf16.vlgmr.msra.gmra.mrb[100].mxu0 %vm1114_vm5, %v11706_v34  ;;  %10110 = vmatpush3.bf16.xpose.msra.mxu1 %v3539_v14  ;;  %v3939_v14 = vsel %vm1114_vm5, %v12014_v33, 0  ;;  %v4039_v33 = vsel %vm1114_vm5, %v11983_v35, 0  ;;  %v14390_v35 = vld [vmem:[#allocation95_spill] sm:$0xff] }
 0x39c   : > { %10104 = vmatpush3.bf16.xpose.msra.mxu0 %v3489_v61  ;;  %10105 = vmatprep.mubr.msk.bf16.mxu0 %vm10959_vm4, %v14304_v12  ;;  %v1027_v32 = vrot.slane %v999_v44, %v11945_v40  ;;  %v14385_v61 = vld [vmem:[#allocation29_spill] sm:$0xff]  ;;  %v3889_v44 = vsel %vm1114_vm5, %v11995_v55, 0  ;;  %v14388_v55 = vld [vmem:[#allocation94_spill] sm:$0xff] }
 0x39d   : > { %10111 = vmatprep.mubr.msk.bf16.mxu1 %vm10959_vm4, %v14304_v12  ;;  %10115 = vmatprep.subr.bf16.mxu0 %v14304_v12 }
 0x39e   : > { %10121 = vmatprep.subr.bf16.mxu1 %v14304_v12  ;;  %v12291_v40 = vrot.slane %v1027_v32, %v11966_v4  ;;  %v1031_v28 = vcombine.high %v1027_v32, %v1027_v32  ;;  %v3989_v32 = vsel %vm1114_vm5, %v14388_v55, 0 }
 0x3a0   : > { %v1731_v15 = vpop.f32.mrb[32].mxu0 }
 0x3a1   : > { %v12277_v53 = vadd.f32 %v1731_v15, %v12270_v0  ;;  %v9891_v34 = vpop.f32.mrb[33].mxu0  ;;  %v14386_v15 = vld [vmem:[#allocation25_spill] sm:$0xff] }
 0x3a2   : > { %10112 = vmatmul.mubr.msk.bf16.vlgmr.msra.gmra.mrb[120].mxu1 %vm1114_vm5, %v11394_v18  ;;  %v1734_v22 = vpop.f32.mrb[34].mxu0  ;;  %v14387_v34 = vld [vmem:[#allocation53_spill] sm:$0xff] }
 0x3a3   : > { %10106 = vmatmul.mubr.msk.bf16.vlgmr.msra.gmra.mrb[104].mxu0 %vm1114_vm5, %v11361_v11  ;;  %10122 = vmatpush3.bf16.xpose.msra.mxu1 %v3639_v52  ;;  %v9892_v9 = vpop.f32.mrb[35].mxu0  ;;  %v4317_v56 = vsel %vm1114_vm5, %v12277_v53, -inf }
 0x3a4   : > { %10116 = vmatpush3.bf16.xpose.msra.mxu0 %v3589_v47  ;;  %4318 = vmax.xlane.f32.xlu1 %v4317_v56  ;;  %v4134_v9 = vpop.permute.xlu1 %4133 }
 0x3a5   : > { %10117 = vmatprep.mubr.msk.bf16.mxu0 %vm10959_vm4, %v14304_v12  ;;  %10123 = vmatprep.mubr.msk.bf16.mxu1 %vm10959_vm4, %v14304_v12 }
 0x3a6   : > { %10127 = vmatprep.subr.bf16.mxu0 %v14304_v12  ;;  %10133 = vmatprep.subr.bf16.mxu1 %v14304_v12 }
 0x3a8   : > { %v1779_v11 = vpop.f32.mrb[48].mxu1  ;;  %v1827_v18 = vpop.f32.mrb[36].mxu0 }
 0x3a9   : > { %v12303_v19 = vadd.f32 %v1779_v11, %v12291_v40  ;;  %v12306_v7 = vadd.f32 %v1827_v18, %v12294_v27  ;;  %v9897_v38 = vpop.f32.mrb[49].mxu1  ;;  %v9903_v60 = vpop.f32.mrb[37].mxu0 }
 0x3aa   : > { %10124 = vmatmul.mubr.msk.bf16.vlgmr.msra.gmra.mrb[124].mxu1 %vm1114_vm5, %v11359_v10  ;;  %v1782_v50 = vpop.f32.mrb[50].mxu1  ;;  %v1830_v5 = vpop.f32.mrb[38].mxu0  ;;  %v12321_v10 = vrot.slane %v1031_v28, %v11966_v4  ;;  %v14382_v4 = vld [vmem:[#allocation36_spill] sm:$0xff]  ;;  %v4139_v60 = vsel %vm1114_vm5, %v4134_v9, 0 }
 0x3ab   : > { %10118 = vmatmul.mubr.msk.bf16.vlgmr.msra.gmra.mrb[108].mxu0 %vm1114_vm5, %v11337_v1  ;;  %10134 = vmatpush3.bf16.xpose.msra.mxu1 %v3739_v46  ;;  %v9898_v13 = vpop.f32.mrb[51].mxu1  ;;  %v9904_v36 = vpop.f32.mrb[39].mxu0  ;;  %v4323_v41 = vsel %vm1114_vm5, %v12306_v7, -inf  ;;  %v4320_v26 = vsel %vm1114_vm5, %v12303_v19, -inf  ;;  %v14391_v28 = vld [vmem:[#allocation48_spill] sm:$0xff] }
 0x3ac   : > { %10128 = vmatpush3.bf16.xpose.msra.mxu0 %v3689_v58  ;;  %4324 = vmax.xlane.f32.xlu1 %v4323_v41  ;;  %14380 = vst [vmem:[#allocation109_spill] sm:$0xff] %v12321_v10  ;;  %v4084_v11 = vpop.permute.xlu0 %4083  ;;  %v14392_v50 = vld [vmem:[#allocation44_spill] sm:$0xff] }
 0x3ad   : > { %4321 = vmax.xlane.f32.xlu0 %v4320_v26  ;;  %10129 = vmatprep.mubr.msk.bf16.mxu0 %vm10959_vm4, %v14304_v12  ;;  %v4089_v46 = vsel %vm1114_vm5, %v4084_v11, 0  ;;  %v14393_v58 = vld [vmem:[#allocation100_spill] sm:$0xff]  ;;  %v14394_v26 = vld [vmem:[#allocation97_spill] sm:$0xff]  ;;  %v14402_v11 = vld [vmem:[#allocation19_spill] sm:$0xff] }
 0x3ae   : > { %10135 = vmatprep.mubr.msk.bf16.mxu1 %vm10959_vm4, %v14304_v12  ;;  %10139 = vmatprep.subr.bf16.mxu0 %v14304_v12 }
 0x3af   : > { %10145 = vmatprep.subr.bf16.mxu1 %v14304_v12 }
 0x3b0   : > { %v1875_v1 = vpop.f32.mrb[52].mxu1 }
 0x3b1   : > { %v12330_v49 = vadd.f32 %v1875_v1, %v12321_v10  ;;  %v9909_v48 = vpop.f32.mrb[53].mxu1 }
 0x3b2   : > { %10136 = vmatmul.mubr.msk.bf16.vlgmr.msra.gmra.mrb[128].mxu1 %vm1114_vm5, %v14382_v4  ;;  %v1878_v29 = vpop.f32.mrb[54].mxu1 }
 0x3b3   : > { %10130 = vmatmul.mubr.msk.bf16.vlgmr.msra.gmra.mrb[112].mxu0 %vm1114_vm5, %v14384_v23  ;;  %10146 = vmatpush3.bf16.xpose.msra.mxu1 %v3839_v24  ;;  %v9910_v3 = vpop.f32.mrb[55].mxu1  ;;  %v4326_v17 = vsel %vm1114_vm5, %v12330_v49, -inf  ;;  %v14395_v23 = vld [vmem:[#allocation105_spill] sm:$0xff] }
 0x3b4   : > { %10140 = vmatpush3.bf16.xpose.msra.mxu0 %v3789_v39  ;;  %4327 = vmax.xlane.f32.xlu0 %v4326_v17  ;;  %v4239_v3 = vsel %vm1114_vm5, %v14395_v23, 0  ;;  %v14396_v17 = vld [vmem:[#allocation76_spill] sm:$0xff] }
 0x3b5   : > { %10141 = vmatprep.mubr.msk.bf16.mxu0 %vm10959_vm4, %v14304_v12  ;;  %10147 = vmatprep.mubr.msk.bf16.mxu1 %vm10959_vm4, %v14304_v12 }
 0x3b6   : > { %10151 = vmatprep.subr.bf16.mxu0 %v14304_v12  ;;  %10157 = vmatprep.subr.bf16.mxu1 %v14304_v12 }
 0x3ba   : > { %10148 = vmatmul.mubr.msk.bf16.vlgmr.msra.gmra.mrb[132].mxu1 %vm1114_vm5, %v14385_v61 }
 0x3bb   : > { %10142 = vmatmul.mubr.msk.bf16.vlgmr.msra.gmra.mrb[116].mxu0 %vm1114_vm5, %v14386_v15  ;;  %10158 = vmatpush3.bf16.xpose.msra.mxu1 %v3939_v14  ;;  %v14397_v14 = vld [vmem:[#allocation106_spill] sm:$0xff] }
 0x3bc   : > { %10152 = vmatpush3.bf16.xpose.msra.mxu0 %v3889_v44  ;;  %10153 = vmatprep.mubr.msk.bf16.mxu0 %vm10959_vm4, %v14304_v12  ;;  %v4189_v61 = vsel %vm1114_vm5, %v14397_v14, 0  ;;  %v14398_v44 = vld [vmem:[#allocation72_spill] sm:$0xff] }
 0x3bd   : > { %10159 = vmatprep.mubr.msk.bf16.mxu1 %vm10959_vm4, %v14304_v12  ;;  %10163 = vmatprep.subr.bf16.mxu0 %v14304_v12 }
 0x3be   : > { %10169 = vmatprep.subr.bf16.mxu1 %v14304_v12 }
 0x3c2   : > { %10160 = vmatmul.mubr.msk.bf16.vlgmr.msra.gmra.mrb[136].mxu1 %vm1114_vm5, %v14387_v34 }
 0x3c3   : > { %10154 = vmatmul.mubr.msk.bf16.vlgmr.msra.gmra.mrb[120].mxu0 %vm1114_vm5, %v14389_v8  ;;  %10170 = vmatpush3.bf16.xpose.msra.mxu1 %v4039_v33  ;;  %v14399_v33 = vld [vmem:[#allocation103_spill] sm:$0xff] }
 0x3c4   : > { %10164 = vmatpush3.bf16.xpose.msra.mxu0 %v3989_v32  ;;  %10171 = vmatprep.mubr.msk.bf16.mxu1 %vm10959_vm4, %v14304_v12 }
 0x3c5   : > { %v1925_v52 = vpop.f32.mrb[40].mxu0  ;;  %10165 = vmatprep.mubr.msk.bf16.mxu0 %vm10959_vm4, %v14304_v12  ;;  %10181 = vmatprep.subr.bf16.mxu1 %v14304_v12 }
 0x3c6   : > { %v12376_v22 = vadd.f32 %v1925_v52, %v14390_v35  ;;  %v9915_v47 = vpop.f32.mrb[41].mxu0  ;;  %10175 = vmatprep.subr.bf16.mxu0 %v14304_v12 }
 0x3c7   : > { %v1928_v56 = vpop.f32.mrb[42].mxu0  ;;  %v14400_v47 = vld [vmem:[#allocation21_spill] sm:$0xff] }
 0x3c8   : > { %v9916_v18 = vpop.f32.mrb[43].mxu0  ;;  %v4329_v38 = vsel %vm1114_vm5, %v12376_v22, -inf  ;;  %v5104_v9 = vsel %vm5054_vm6, %v14400_v47, 0  ;;  %v14401_v56 = vld [vmem:[#allocation65_spill] sm:$0xff]  ;;  %v14404_v47 = vld [vmem:[#allocation96_spill] sm:$0xff] }
 0x3c9   : > { %4330 = vmax.xlane.f32.xlu1 %v4329_v38  ;;  %v5056_v18 = vsel %vm5054_vm6, %v14402_v11, 0  ;;  %v14403_v38 = vld [vmem:[#allocation62_spill] sm:$0xff] }
 0x3ca   : > { %10172 = vmatmul.mubr.msk.bf16.vlgmr.msra.gmra.mrb[140].mxu1 %vm1114_vm5, %v14391_v28  ;;  %v4286_v11 = vpop.xlane.xlu1 %4285 }
 0x3cb   : > { %10166 = vmatmul.mubr.msk.bf16.vlgmr.msra.gmra.mrb[124].mxu0 %vm1114_vm5, %v14392_v50  ;;  %10182 = vmatpush3.bf16.xpose.msra.mxu1 %v4139_v60 }
 0x3cc   : > { %10176 = vmatpush3.bf16.xpose.msra.mxu0 %v4089_v46  ;;  %v1975_v5 = vpop.f32.mrb[56].mxu1  ;;  %10183 = vmatprep.mubr.msk.bf16.mxu1 %vm10959_vm4, %v14304_v12 }
 0x3cd   : > { %v12390_v13 = vadd.f32 %v1975_v5, %v14393_v58  ;;  %v2025_v36 = vpop.f32.mrb[44].mxu0  ;;  %v9921_v41 = vpop.f32.mrb[57].mxu1  ;;  %10177 = vmatprep.mubr.msk.bf16.mxu0 %vm10959_vm4, %v14304_v12  ;;  %10187 = vmatprep.subr.bf16.mxu0 %v14304_v12 }
 0x3ce   : > { %v12396_v1 = vadd.f32 %v2025_v36, %v14394_v26  ;;  %v9927_v48 = vpop.f32.mrb[45].mxu0  ;;  %v1978_v57 = vpop.f32.mrb[58].mxu1  ;;  %10193 = vmatprep.subr.bf16.mxu1 %v14304_v12 }
 0x3cf   : > { %v2028_v24 = vpop.f32.mrb[46].mxu0  ;;  %v9922_v4 = vpop.f32.mrb[59].mxu1  ;;  %v4332_v29 = vsel %vm1114_vm5, %v12390_v13, -inf }
 0x3d0   : > { %v9928_v37 = vpop.f32.mrb[47].mxu0  ;;  %4333 = vmax.xlane.f32.xlu0 %v4332_v29  ;;  %v4335_v39 = vsel %vm1114_vm5, %v12396_v1, -inf }
 0x3d1   : > { %4336 = vmax.xlane.f32.xlu1 %v4335_v39 }
 0x3d2   : > { %10184 = vmatmul.mubr.msk.bf16.vlgmr.msra.gmra.mrb[144].mxu1 %vm1114_vm5, %v14396_v17 }
 0x3d3   : > { %10178 = vmatmul.mubr.msk.bf16.vlgmr.msra.gmra.mrb[128].mxu0 %vm1114_vm5, %v14398_v44  ;;  %10194 = vmatpush3.bf16.xpose.msra.mxu1 %v4239_v3 }
 0x3d4   : > { %10188 = vmatpush3.bf16.xpose.msra.mxu0 %v4189_v61  ;;  %v2075_v15 = vpop.f32.mrb[60].mxu1  ;;  %10195 = vmatprep.mubr.msk.bf16.mxu1 %vm10959_vm4, %v14304_v12 }
 0x3d5   : > { %v12414_v34 = vadd.f32 %v2075_v15, %v14399_v33  ;;  %v9933_v55 = vpop.f32.mrb[61].mxu1  ;;  %10189 = vmatprep.mubr.msk.bf16.mxu0 %vm10959_vm4, %v14304_v12  ;;  %10199 = vmatprep.subr.bf16.mxu0 %v14304_v12 }
 0x3d6   : > { %v2078_v32 = vpop.f32.mrb[62].mxu1  ;;  %10205 = vmatprep.subr.bf16.mxu1 %v14304_v12 }
 0x3d7   : > { %v9934_v8 = vpop.f32.mrb[63].mxu1  ;;  %v4338_v52 = vsel %vm1114_vm5, %v12414_v34, -inf }
 0x3d8   : > { %4339 = vmax.xlane.f32.xlu0 %v4338_v52  ;;  %v4283_v52 = vpop.xlane.xlu0 %4282 }
 0x3da   : > { %10196 = vmatmul.mubr.msk.bf16.vlgmr.msra.gmra.mrb[148].mxu1 %vm1114_vm5, %v14401_v56 }
 0x3db   : > { %10190 = vmatmul.mubr.msk.bf16.vlgmr.msra.gmra.mrb[132].mxu0 %vm1114_vm5, %v14403_v38  ;;  %10206 = vmatpush3.bf16.msra.mxu1 %v5104_v9  ;;  %v4473_v9 = vsub.f32 %v14404_v47, %v4283_v52  ;;  %v14405_v38 = vld [vmem:[#allocation101_spill] sm:$0xff] }
 0x3dc   : > { %10200 = vmatpush3.bf16.msra.mxu0 %v5056_v18  ;;  %10201 = vmatprep.mubr.msk.bf16.mxu0 %vm10959_vm4, %v14304_v12 }
 0x3dd   : > { %10211 = vmatprep.subr.bf16.mxu0 %v14304_v12  ;;  %10207 = vmatprep.mubr.msk.bf16.mxu1 %vm10959_vm4, %v14304_v12  ;;  %v4537_v56 = vmul.f32 1.442695, %v4473_v9 }
 0x3de   : > { %10217 = vmatprep.subr.bf16.mxu1 %v14304_v12 }
 0x3df   : > { %10689 = vpow2.f32 %v4537_v56 }
 0x3e5   : > { %v2125_v60 = vpop.f32.mrb[48].mxu0 }
 0x3e6   : > { %v12437_v28 = vadd.f32 %v2125_v60, %v12061_v62  ;;  %v9939_v46 = vpop.f32.mrb[49].mxu0  ;;  %v4474_v60 = vsub.f32 %v14405_v38, %v4286_v11  ;;  %v14406_v38 = vld [vmem:[#allocation104_spill] sm:$0xff] }
 0x3e7   : > { %v2128_v50 = vpop.f32.mrb[50].mxu0 }
 0x3e8   : > { %v9940_v5 = vpop.f32.mrb[51].mxu0  ;;  %v4341_v36 = vsel %vm1114_vm5, %v12437_v28, -inf }
 0x3e9   : > { %4342 = vmax.xlane.f32.xlu1 %v4341_v36  ;;  %v12473_v52 = vpop.eup %10689 }
 0x3ea   : > { %v4665_v56 = vsel %vm1114_vm5, %v12473_v52, 0.0 }
 0x3ec   : > { %v2175_v41 = vpop.f32.mrb[64].mxu1 }
 0x3ed   : > { %v12442_v48 = vadd.f32 %v2175_v41, %v12077_v31  ;;  %v2225_v57 = vpop.f32.mrb[52].mxu0  ;;  %v9945_v24 = vpop.f32.mrb[65].mxu1 }
 0x3ee   : > { %v12445_v4 = vadd.f32 %v2225_v57, %v12084_v30  ;;  %v9951_v29 = vpop.f32.mrb[53].mxu0  ;;  %v2178_v37 = vpop.f32.mrb[66].mxu1  ;;  %v4539_v57 = vmul.f32 1.442695, %v4474_v60 }
 0x3ef   : > { %v2228_v39 = vpop.f32.mrb[54].mxu0  ;;  %v9946_v23 = vpop.f32.mrb[67].mxu1  ;;  %v4344_v3 = vsel %vm1114_vm5, %v12442_v48, -inf }
 0x3f0   : > { %v9952_v17 = vpop.f32.mrb[55].mxu0  ;;  %4345 = vmax.xlane.f32.xlu0 %v4344_v3  ;;  %v4347_v14 = vsel %vm1114_vm5, %v12445_v4, -inf  ;;  %v4289_v24 = vpop.xlane.xlu0 %4288  ;;  %10691 = vpow2.f32 %v4539_v57 }
 0x3f1   : > { %4348 = vmax.xlane.f32.xlu1 %v4347_v14 }
 0x3f4   : > { %v2275_v61 = vpop.f32.mrb[68].mxu1  ;;  %v4292_v47 = vpop.xlane.xlu0 %4291 }
 0x3f5   : > { %v12452_v44 = vadd.f32 %v2275_v61, %v12109_v54  ;;  %v9957_v15 = vpop.f32.mrb[69].mxu1  ;;  %v4476_v60 = vsub.f32 %v14406_v38, %v4292_v47 }
 0x3f6   : > { %v2278_v55 = vpop.f32.mrb[70].mxu1 }
 0x3f7   : > { %v9958_v32 = vpop.f32.mrb[71].mxu1  ;;  %v4350_v8 = vsel %vm1114_vm5, %v12452_v44, -inf }
 0x3f8   : > { %4351 = vmax.xlane.f32.xlu0 %v4350_v8 }
 0x406   : > { %v2325_v18 = vpop.f32.mrb[56].mxu0 }
 0x407   : > { %v12459_v46 = vadd.f32 %v2325_v18, %v12165_v63  ;;  %v9963_v50 = vpop.f32.mrb[57].mxu0 }
 0x408   : > { %v2328_v5 = vpop.f32.mrb[58].mxu0 }
 0x409   : > { %v9964_v36 = vpop.f32.mrb[59].mxu0  ;;  %v4353_v41 = vsel %vm1114_vm5, %v12459_v46, -inf  ;;  %v14407_v5 = vld [vmem:[#allocation98_spill] sm:$0xff] }
 0x40a   : > { %4354 = vmax.xlane.f32.xlu1 %v4353_v41  ;;  %v4475_v36 = vsub.f32 %v14407_v5, %v4289_v24 }
 0x40d   : > { %v2375_v29 = vpop.f32.mrb[72].mxu1 }
 0x40e   : > { %v12464_v37 = vadd.f32 %v2375_v29, %v12186_v2  ;;  %v2425_v39 = vpop.f32.mrb[60].mxu0  ;;  %v9969_v23 = vpop.f32.mrb[73].mxu1 }
 0x40f   : > { %v12467_v3 = vadd.f32 %v2425_v39, %v12193_v6  ;;  %v9975_v17 = vpop.f32.mrb[61].mxu0  ;;  %v2378_v14 = vpop.f32.mrb[74].mxu1  ;;  %v4543_v39 = vmul.f32 1.442695, %v4476_v60  ;;  %v4541_v23 = vmul.f32 1.442695, %v4475_v36 }
 0x410   : > { %v2428_v61 = vpop.f32.mrb[62].mxu0  ;;  %v9970_v15 = vpop.f32.mrb[75].mxu1  ;;  %v4356_v55 = vsel %vm1114_vm5, %v12464_v37, -inf }
 0x411   : > { %v9976_v32 = vpop.f32.mrb[63].mxu0  ;;  %4357 = vmax.xlane.f32.xlu0 %v4356_v55  ;;  %v4359_v8 = vsel %vm1114_vm5, %v12467_v3, -inf  ;;  %v12484_v29 = vpop.eup %10691  ;;  %10693 = vpow2.f32 %v4543_v39 }
 0x412   : > { %4360 = vmax.xlane.f32.xlu1 %v4359_v8  ;;  %v4298_v17 = vpop.xlane.xlu0 %4297  ;;  %v4668_v14 = vsel %vm1114_vm5, %v12484_v29, 0.0  ;;  %v4295_v61 = vpop.xlane.xlu1 %4294  ;;  %10695 = vpow2.f32 %v4541_v23 }
 0x413   : > { %v4478_v15 = vsub.f32 %v12089_v21, %v4298_v17  ;;  %v4477_v24 = vsub.f32 %v12065_v42, %v4295_v61 }
 0x415   : > { %v2475_v9 = vpop.f32.mrb[76].mxu1  ;;  %v4547_v55 = vmul.f32 1.442695, %v4478_v15  ;;  %v4545_v32 = vmul.f32 1.442695, %v4477_v24 }
 0x416   : > { %v12478_v11 = vadd.f32 %v2475_v9, %v12216_v45  ;;  %4666 = vadd.xlane.f32.xlu1 %v4665_v56  ;;  %v9981_v18 = vpop.f32.mrb[77].mxu1  ;;  %v4304_v8 = vpop.xlane.xlu0 %4303 }
 0x417   : > { %v2478_v50 = vpop.f32.mrb[78].mxu1  ;;  %v4301_v47 = vpop.xlane.xlu1 %4300  ;;  %10697 = vpow2.f32 %v4547_v55  ;;  %v4480_v60 = vsub.f32 %v12118_v20, %v4304_v8 }
 0x418   : > { %v9982_v41 = vpop.f32.mrb[79].mxu1  ;;  %v4362_v57 = vsel %vm1114_vm5, %v12478_v11, -inf  ;;  %10699 = vpow2.f32 %v4545_v32  ;;  %v4479_v42 = vsub.f32 %v12094_v25, %v4301_v47 }
 0x419   : > { %4363 = vmax.xlane.f32.xlu0 %v4362_v57 }
 0x41a   : > { %v4549_v61 = vmul.f32 1.442695, %v4479_v42  ;;  %v4310_v15 = vpop.xlane.xlu0 %4309 }
 0x41b   : > { %v12500_v39 = vpop.eup %10693  ;;  %v4307_v24 = vpop.xlane.xlu1 %4306 }
 0x41c   : > { %v12504_v17 = vpop.eup %10695  ;;  %v4674_v25 = vsel %vm1114_vm5, %v12500_v39, 0.0 }
 0x41d   : > { %4669 = vadd.xlane.f32.xlu0 %v4668_v14  ;;  %v4551_v14 = vmul.f32 1.442695, %v4480_v60  ;;  %v4671_v32 = vsel %vm1114_vm5, %v12504_v17, 0.0 }
 0x41f   : > { %10701 = vpow2.f32 %v4551_v14 }
 0x420   : > { %10703 = vpow2.f32 %v4549_v61  ;;  %v4316_v61 = vpop.xlane.xlu0 %4315 }
 0x425   : > { %v2575_v9 = vpop.f32.mrb[80].mxu1 }
 0x426   : > { %v2525_v56 = vpop.f32.mrb[64].mxu0  ;;  %v12491_v18 = vadd.f32 %v2575_v9, %v12291_v40  ;;  %v9993_v38 = vpop.f32.mrb[81].mxu1 }
 0x427   : > { %v12495_v50 = vadd.f32 %v2525_v56, %v12270_v0  ;;  %v9987_v21 = vpop.f32.mrb[65].mxu0  ;;  %v2578_v5 = vpop.f32.mrb[82].mxu1  ;;  %v4482_v56 = vsub.f32 %v12198_v59, %v4310_v15 }
 0x428   : > { %v2528_v36 = vpop.f32.mrb[66].mxu0  ;;  %v9994_v41 = vpop.f32.mrb[83].mxu1  ;;  %v4368_v57 = vsel %vm1114_vm5, %v12491_v18, -inf  ;;  %v4481_v5 = vsub.f32 %v12172_v51, %v4307_v24 }
 0x429   : > { %v9988_v23 = vpop.f32.mrb[67].mxu0  ;;  %4369 = vmax.xlane.f32.xlu0 %v4368_v57  ;;  %v4365_v20 = vsel %vm1114_vm5, %v12495_v50, -inf  ;;  %v12520_v57 = vpop.eup %10697  ;;  %v4555_v14 = vmul.f32 1.442695, %v4482_v56  ;;  %v4484_v56 = vsub.f32 %v12225_v16, %v4316_v61 }
 0x42a   : > { %4366 = vmax.xlane.f32.xlu1 %v4365_v20  ;;  %v12524_v59 = vpop.eup %10699  ;;  %v4553_v15 = vmul.f32 1.442695, %v4481_v5  ;;  %v4680_v51 = vsel %vm1114_vm5, %v12520_v57, 0.0 }
 0x42b   : > { %10705 = vpow2.f32 %v4555_v14  ;;  %v4559_v61 = vmul.f32 1.442695, %v4484_v56 }
 0x42c   : > { %10707 = vpow2.f32 %v4553_v15 }
 0x42d   : > { %v2675_v55 = vpop.f32.mrb[84].mxu1  ;;  %4675 = vadd.xlane.f32.xlu0 %v4674_v25  ;;  %v4313_v25 = vpop.xlane.xlu1 %4312  ;;  %10709 = vpow2.f32 %v4559_v61 }
 0x42e   : > { %v2625_v8 = vpop.f32.mrb[68].mxu0  ;;  %v12511_v47 = vadd.f32 %v2675_v55, %v12321_v10  ;;  %4672 = vadd.xlane.f32.xlu1 %v4671_v32  ;;  %v10005_v9 = vpop.f32.mrb[85].mxu1  ;;  %v4677_v55 = vsel %vm1114_vm5, %v12524_v59, 0.0 }
 0x42f   : > { %v12515_v38 = vadd.f32 %v2625_v8, %v12294_v27  ;;  %v9999_v60 = vpop.f32.mrb[69].mxu0  ;;  %v2678_v21 = vpop.f32.mrb[86].mxu1 }
 0x430   : > { %v2628_v42 = vpop.f32.mrb[70].mxu0  ;;  %v10006_v36 = vpop.f32.mrb[87].mxu1  ;;  %v4374_v41 = vsel %vm1114_vm5, %v12511_v47, -inf }
 0x431   : > { %v10000_v23 = vpop.f32.mrb[71].mxu0  ;;  %v4371_v20 = vsel %vm1114_vm5, %v12515_v38, -inf  ;;  %4375 = vmax.xlane.f32.xlu0 %v4374_v41  ;;  %v4483_v42 = vsub.f32 %v12203_v43, %v4313_v25  ;;  %v4319_v25 = vpop.xlane.xlu1 %4318 }
 0x432   : > { %4372 = vmax.xlane.f32.xlu1 %v4371_v20  ;;  %v12540_v20 = vpop.eup %10701 }
 0x433   : > { %v12544_v16 = vpop.eup %10703  ;;  %v4686_v43 = vsel %vm1114_vm5, %v12540_v20, 0.0 }
 0x435   : > { %v2775_v24 = vpop.f32.mrb[88].mxu1  ;;  %4681 = vadd.xlane.f32.xlu0 %v4680_v51 }
 0x436   : > { %v2725_v32 = vpop.f32.mrb[72].mxu0  ;;  %v12531_v8 = vadd.f32 %v2775_v24, %v14393_v58  ;;  %4678 = vadd.xlane.f32.xlu1 %v4677_v55  ;;  %v10017_v9 = vpop.f32.mrb[89].mxu1  ;;  %v4557_v24 = vmul.f32 1.442695, %v4483_v42 }
 0x437   : > { %v12535_v60 = vadd.f32 %v2725_v32, %v14390_v35  ;;  %v10011_v21 = vpop.f32.mrb[73].mxu0  ;;  %v2778_v5 = vpop.f32.mrb[90].mxu1  ;;  %v4683_v32 = vsel %vm1114_vm5, %v12544_v16, 0.0 }
 0x438   : > { %v2728_v36 = vpop.f32.mrb[74].mxu0  ;;  %v10018_v41 = vpop.f32.mrb[91].mxu1  ;;  %v4380_v23 = vsel %vm1114_vm5, %v12531_v8, -inf  ;;  %10711 = vpow2.f32 %v4557_v24 }
 0x439   : > { %v10012_v51 = vpop.f32.mrb[75].mxu0  ;;  %v4377_v14 = vsel %vm1114_vm5, %v12535_v60, -inf  ;;  %4381 = vmax.xlane.f32.xlu0 %v4380_v23  ;;  %v4485_v23 = vsub.f32 %v12277_v53, %v4319_v25  ;;  %v4325_v25 = vpop.xlane.xlu1 %4324 }
 0x43a   : > { %4378 = vmax.xlane.f32.xlu1 %v4377_v14  ;;  %v4322_v15 = vpop.xlane.xlu0 %4321 }
 0x43b   : > { %v4486_v56 = vsub.f32 %v12303_v19, %v4322_v15 }
 0x43d   : > { %v2875_v55 = vpop.f32.mrb[92].mxu1  ;;  %4687 = vadd.xlane.f32.xlu0 %v4686_v43  ;;  %v4563_v15 = vmul.f32 1.442695, %v4486_v56 }
 0x43e   : > { %v2825_v9 = vpop.f32.mrb[76].mxu0  ;;  %v12551_v21 = vadd.f32 %v2875_v55, %v14399_v33  ;;  %4684 = vadd.xlane.f32.xlu1 %v4683_v32  ;;  %v10029_v5 = vpop.f32.mrb[93].mxu1 }
 0x43f   : > { %v12555_v42 = vadd.f32 %v2825_v9, %v14394_v26  ;;  %v10023_v36 = vpop.f32.mrb[77].mxu0  ;;  %v2878_v41 = vpop.f32.mrb[94].mxu1  ;;  %v4561_v9 = vmul.f32 1.442695, %v4485_v23  ;;  %10713 = vpow2.f32 %v4563_v15 }
 0x440   : > { %v2828_v51 = vpop.f32.mrb[78].mxu0  ;;  %v10030_v14 = vpop.f32.mrb[95].mxu1  ;;  %v4386_v43 = vsel %vm1114_vm5, %v12551_v21, -inf }
 0x441   : > { %v12560_v55 = vpop.eup %10705  ;;  %v10024_v32 = vpop.f32.mrb[79].mxu0  ;;  %v4383_v61 = vsel %vm1114_vm5, %v12555_v42, -inf  ;;  %4387 = vmax.xlane.f32.xlu0 %v4386_v43  ;;  %10715 = vpow2.f32 %v4561_v9 }
 0x442   : > { %14408 = vst [vmem:[#allocation89_spill] sm:$0xff] %v12560_v55  ;;  %v12564_v19 = vpop.eup %10707  ;;  %4384 = vmax.xlane.f32.xlu1 %v4383_v61  ;;  %v4328_v24 = vpop.xlane.xlu0 %4327  ;;  %v4692_v53 = vsel %vm1114_vm5, %v12560_v55, 0.0  ;;  %v4487_v61 = vsub.f32 %v12306_v7, %v4325_v25 }
 0x443   : > { %14409 = vst [vmem:[#allocation36_spill] sm:$0xff] %v12564_v19  ;;  %v4689_v36 = vsel %vm1114_vm5, %v12564_v19, 0.0  ;;  %v4488_v56 = vsub.f32 %v12330_v49, %v4328_v24 }
 0x445   : > { %v2975_v5 = vpop.f32.mrb[96].mxu1  ;;  %4693 = vadd.xlane.f32.xlu0 %v4692_v53  ;;  %v4567_v24 = vmul.f32 1.442695, %v4488_v56 }
 0x446   : > { %v2925_v41 = vpop.f32.mrb[80].mxu0  ;;  %v12571_v51 = vadd.f32 %v2975_v5, %v12077_v31  ;;  %4690 = vadd.xlane.f32.xlu1 %v4689_v36  ;;  %v10041_v14 = vpop.f32.mrb[97].mxu1 }
 0x447   : > { %v12575_v23 = vadd.f32 %v2925_v41, %v12061_v62  ;;  %v10035_v43 = vpop.f32.mrb[81].mxu0  ;;  %v2978_v32 = vpop.f32.mrb[98].mxu1  ;;  %v4565_v41 = vmul.f32 1.442695, %v4487_v61  ;;  %10717 = vpow2.f32 %v4567_v24 }
 0x448   : > { %14410 = vst [vmem:[#allocation88_spill] sm:$0xff] %v12571_v51  ;;  %v2928_v55 = vpop.f32.mrb[82].mxu0  ;;  %v10042_v19 = vpop.f32.mrb[99].mxu1  ;;  %v4392_v53 = vsel %vm1114_vm5, %v12571_v51, -inf }
 0x449   : > { %14411 = vst [vmem:[#allocation33_spill] sm:$0xff] %v12575_v23  ;;  %v12580_v5 = vpop.eup %10709  ;;  %v10036_v36 = vpop.f32.mrb[83].mxu0  ;;  %v4389_v15 = vsel %vm1114_vm5, %v12575_v23, -inf  ;;  %4393 = vmax.xlane.f32.xlu0 %v4392_v53  ;;  %10719 = vpow2.f32 %v4565_v41 }
 0x44a   : > { %v12584_v49 = vpop.eup %10711  ;;  %4390 = vmax.xlane.f32.xlu1 %v4389_v15  ;;  %v4698_v7 = vsel %vm1114_vm5, %v12580_v5, 0.0 }
 0x44b   : > { %v4695_v19 = vsel %vm1114_vm5, %v12584_v49, 0.0  ;;  %v12598_v15 = vpop.eup %10713 }
 0x44c   : > { %v4704_v24 = vsel %vm1114_vm5, %v12598_v15, 0.0 }
 0x44d   : > { %v3075_v55 = vpop.f32.mrb[100].mxu1  ;;  %4699 = vadd.xlane.f32.xlu0 %v4698_v7 }
 0x44e   : > { %v3025_v9 = vpop.f32.mrb[84].mxu0  ;;  %v12591_v25 = vadd.f32 %v3075_v55, %v12109_v54  ;;  %4696 = vadd.xlane.f32.xlu1 %v4695_v19  ;;  %v10053_v14 = vpop.f32.mrb[101].mxu1 }
 0x44f   : > { %v12594_v43 = vadd.f32 %v3025_v9, %v12084_v30  ;;  %v10047_v56 = vpop.f32.mrb[85].mxu0  ;;  %v3078_v32 = vpop.f32.mrb[102].mxu1 }
 0x450   : > { %14412 = vst [vmem:[#allocation29_spill] sm:$0xff] %v12591_v25  ;;  %v3028_v61 = vpop.f32.mrb[86].mxu0  ;;  %v10054_v53 = vpop.f32.mrb[103].mxu1  ;;  %v4398_v36 = vsel %vm1114_vm5, %v12591_v25, -inf }
 0x451   : > { %14413 = vst [vmem:[#allocation25_spill] sm:$0xff] %v12594_v43  ;;  %v10048_v7 = vpop.f32.mrb[87].mxu0  ;;  %v4395_v55 = vsel %vm1114_vm5, %v12594_v43, -inf  ;;  %4399 = vmax.xlane.f32.xlu0 %v4398_v36  ;;  %v12602_v19 = vpop.eup %10715 }
 0x452   : > { %4396 = vmax.xlane.f32.xlu1 %v4395_v55  ;;  %v4701_v41 = vsel %vm1114_vm5, %v12602_v19, 0.0  ;;  %v12616_v25 = vpop.eup %10717 }
 0x455   : > { %v3175_v9 = vpop.f32.mrb[104].mxu1  ;;  %4705 = vadd.xlane.f32.xlu0 %v4704_v24 }
 0x456   : > { %v3125_v14 = vpop.f32.mrb[88].mxu0  ;;  %v12609_v56 = vadd.f32 %v3175_v9, %v12186_v2  ;;  %4702 = vadd.xlane.f32.xlu1 %v4701_v41  ;;  %v10065_v32 = vpop.f32.mrb[105].mxu1  ;;  %v4710_v41 = vsel %vm1114_vm5, %v12616_v25, 0.0 }
 0x457   : > { %v12612_v61 = vadd.f32 %v3125_v14, %v12165_v63  ;;  %v10059_v53 = vpop.f32.mrb[89].mxu0  ;;  %v3178_v7 = vpop.f32.mrb[106].mxu1 }
 0x458   : > { %14414 = vst [vmem:[#allocation53_spill] sm:$0xff] %v12609_v56  ;;  %v3128_v36 = vpop.f32.mrb[90].mxu0  ;;  %v4404_v55 = vsel %vm1114_vm5, %v12609_v56, -inf  ;;  %v10066_v23 = vpop.f32.mrb[107].mxu1 }
 0x459   : > { %14415 = vst [vmem:[#allocation94_spill] sm:$0xff] %v12612_v61  ;;  %v10060_v43 = vpop.f32.mrb[91].mxu0  ;;  %v4401_v24 = vsel %vm1114_vm5, %v12612_v61, -inf  ;;  %4405 = vmax.xlane.f32.xlu0 %v4404_v55  ;;  %v12620_v9 = vpop.eup %10719 }
 0x45a   : > { %4402 = vmax.xlane.f32.xlu1 %v4401_v24  ;;  %v4707_v32 = vsel %vm1114_vm5, %v12620_v9, 0.0 }
 0x45d   : > { %v3275_v14 = vpop.f32.mrb[108].mxu1  ;;  %4711 = vadd.xlane.f32.xlu0 %v4710_v41 }
 0x45e   : > { %v3225_v53 = vpop.f32.mrb[92].mxu0  ;;  %v12627_v36 = vadd.f32 %v3275_v14, %v12216_v45  ;;  %4708 = vadd.xlane.f32.xlu1 %v4707_v32  ;;  %v10077_v23 = vpop.f32.mrb[109].mxu1 }
 0x45f   : > { %v12630_v43 = vadd.f32 %v3225_v53, %v12193_v6  ;;  %v10071_v7 = vpop.f32.mrb[93].mxu0  ;;  %v3278_v24 = vpop.f32.mrb[110].mxu1 }
 0x460   : > { %14416 = vst [vmem:[#allocation50_spill] sm:$0xff] %v12627_v36  ;;  %v3228_v55 = vpop.f32.mrb[94].mxu0  ;;  %v4410_v56 = vsel %vm1114_vm5, %v12627_v36, -inf  ;;  %v10078_v51 = vpop.f32.mrb[111].mxu1 }
 0x461   : > { %14417 = vst [vmem:[#allocation95_spill] sm:$0xff] %v12630_v43  ;;  %v10072_v61 = vpop.f32.mrb[95].mxu0  ;;  %v4407_v41 = vsel %vm1114_vm5, %v12630_v43, -inf  ;;  %4411 = vmax.xlane.f32.xlu0 %v4410_v56 }
 0x462   : > { %4408 = vmax.xlane.f32.xlu1 %v4407_v41 }
 0x465   : > { %v3375_v14 = vpop.f32.mrb[112].mxu1 }
 0x466   : > { %v3325_v45 = vpop.f32.mrb[96].mxu0  ;;  %v12637_v32 = vadd.f32 %v3375_v14, %v12291_v40  ;;  %v10089_v53 = vpop.f32.mrb[113].mxu1 }
 0x467   : > { %v12640_v23 = vadd.f32 %v3325_v45, %v12270_v0  ;;  %v10083_v7 = vpop.f32.mrb[97].mxu0  ;;  %v3378_v55 = vpop.f32.mrb[114].mxu1 }
 0x468   : > { %14418 = vst [vmem:[#allocation48_spill] sm:$0xff] %v12637_v32  ;;  %v3328_v24 = vpop.f32.mrb[98].mxu0  ;;  %v10090_v36 = vpop.f32.mrb[115].mxu1  ;;  %v4416_v51 = vsel %vm1114_vm5, %v12637_v32, -inf }
 0x469   : > { %14419 = vst [vmem:[#allocation44_spill] sm:$0xff] %v12640_v23  ;;  %v10084_v61 = vpop.f32.mrb[99].mxu0  ;;  %v4413_v56 = vsel %vm1114_vm5, %v12640_v23, -inf  ;;  %4417 = vmax.xlane.f32.xlu0 %v4416_v51 }
 0x46a   : > { %4414 = vmax.xlane.f32.xlu1 %v4413_v56  ;;  %v4331_v56 = vpop.xlane.xlu1 %4330 }
 0x46d   : > { %v3475_v41 = vpop.f32.mrb[116].mxu1 }
 0x46e   : > { %v3425_v14 = vpop.f32.mrb[100].mxu0  ;;  %v12647_v53 = vadd.f32 %v3475_v41, %v12321_v10  ;;  %v10101_v45 = vpop.f32.mrb[117].mxu1 }
 0x46f   : > { %v12650_v7 = vadd.f32 %v3425_v14, %v12294_v27  ;;  %v10095_v55 = vpop.f32.mrb[101].mxu0  ;;  %v3478_v36 = vpop.f32.mrb[118].mxu1 }
 0x470   : > { %14420 = vst [vmem:[#allocation100_spill] sm:$0xff] %v12647_v53  ;;  %v3428_v24 = vpop.f32.mrb[102].mxu0  ;;  %v10102_v43 = vpop.f32.mrb[119].mxu1  ;;  %v4422_v61 = vsel %vm1114_vm5, %v12647_v53, -inf }
 0x471   : > { %14421 = vst [vmem:[#allocation97_spill] sm:$0xff] %v12650_v7  ;;  %v10096_v32 = vpop.f32.mrb[103].mxu0  ;;  %v4419_v51 = vsel %vm1114_vm5, %v12650_v7, -inf  ;;  %4423 = vmax.xlane.f32.xlu0 %v4422_v61  ;;  %v4334_v55 = vpop.xlane.xlu0 %4333 }
 0x472   : > { %4420 = vmax.xlane.f32.xlu1 %v4419_v51 }
 0x475   : > { %v3575_v41 = vpop.f32.mrb[120].mxu1 }
 0x476   : > { %v3525_v23 = vpop.f32.mrb[104].mxu0  ;;  %v12657_v45 = vadd.f32 %v3575_v41, %v14393_v58  ;;  %v10113_v14 = vpop.f32.mrb[121].mxu1 }
 0x477   : > { %v12660_v36 = vadd.f32 %v3525_v23, %v14390_v35  ;;  %v10107_v43 = vpop.f32.mrb[105].mxu0  ;;  %v3578_v53 = vpop.f32.mrb[122].mxu1 }
 0x478   : > { %14422 = vst [vmem:[#allocation105_spill] sm:$0xff] %v12657_v45  ;;  %v3528_v24 = vpop.f32.mrb[106].mxu0  ;;  %v4428_v32 = vsel %vm1114_vm5, %v12657_v45, -inf  ;;  %v10114_v61 = vpop.f32.mrb[123].mxu1  ;;  %v4490_v53 = vsub.f32 %v12390_v13, %v4334_v55 }
 0x479   : > { %14423 = vst [vmem:[#allocation76_spill] sm:$0xff] %v12660_v36  ;;  %v10108_v7 = vpop.f32.mrb[107].mxu0  ;;  %v4425_v51 = vsel %vm1114_vm5, %v12660_v36, -inf  ;;  %4429 = vmax.xlane.f32.xlu0 %v4428_v32  ;;  %v4340_v58 = vpop.xlane.xlu0 %4339  ;;  %v4489_v61 = vsub.f32 %v12376_v22, %v4331_v56 }
 0x47a   : > { %4426 = vmax.xlane.f32.xlu1 %v4425_v51  ;;  %v4337_v41 = vpop.xlane.xlu1 %4336  ;;  %v4571_v13 = vmul.f32 1.442695, %v4490_v53 }
 0x47b   : > { %v4491_v55 = vsub.f32 %v12396_v1, %v4337_v41 }
 0x47c   : > { %10721 = vpow2.f32 %v4571_v13 }
 0x47d   : > { %v3675_v14 = vpop.f32.mrb[124].mxu1  ;;  %v4346_v24 = vpop.xlane.xlu0 %4345 }
 0x47e   : > { %v3625_v10 = vpop.f32.mrb[108].mxu0  ;;  %v12667_v35 = vadd.f32 %v3675_v14, %v14399_v33  ;;  %v10125_v23 = vpop.f32.mrb[125].mxu1 }
 0x47f   : > { %v12671_v43 = vadd.f32 %v3625_v10, %v14394_v26  ;;  %v10119_v7 = vpop.f32.mrb[109].mxu0  ;;  %v3678_v32 = vpop.f32.mrb[126].mxu1  ;;  %v4492_v10 = vsub.f32 %v12414_v34, %v4340_v58  ;;  %v4569_v26 = vmul.f32 1.442695, %v4489_v61  ;;  %v4573_v58 = vmul.f32 1.442695, %v4491_v55 }
 0x480   : > { %v3628_v45 = vpop.f32.mrb[110].mxu0  ;;  %v4434_v51 = vsel %vm1114_vm5, %v12667_v35, -inf  ;;  %v10126_v27 = vpop.f32.mrb[127].mxu1  ;;  %v4494_v7 = vsub.f32 %v12442_v48, %v4346_v24 }
 0x481   : > { %v10120_v36 = vpop.f32.mrb[111].mxu0  ;;  %v4431_v33 = vsel %vm1114_vm5, %v12671_v43, -inf  ;;  %4435 = vmax.xlane.f32.xlu0 %v4434_v51  ;;  %v4343_v14 = vpop.xlane.xlu1 %4342  ;;  %v4575_v27 = vmul.f32 1.442695, %v4492_v10  ;;  %10723 = vpow2.f32 %v4569_v26 }
 0x482   : > { %4432 = vmax.xlane.f32.xlu1 %v4431_v33  ;;  %v4493_v1 = vsub.f32 %v12437_v28, %v4343_v14 }
 0x483   : > { %10725 = vpow2.f32 %v4575_v27 }
 0x484   : > { %10727 = vpow2.f32 %v4573_v58  ;;  %v4577_v24 = vmul.f32 1.442695, %v4493_v1 }
 0x485   : > { %v3775_v22 = vpop.f32.mrb[128].mxu1  ;;  %v4352_v56 = vpop.xlane.xlu0 %4351 }
 0x486   : > { %v3725_v45 = vpop.f32.mrb[112].mxu0  ;;  %v12681_v23 = vadd.f32 %v3775_v22, %v12077_v31  ;;  %v10137_v36 = vpop.f32.mrb[129].mxu1  ;;  %v4496_v48 = vsub.f32 %v12452_v44, %v4352_v56 }
 0x487   : > { %v12685_v32 = vadd.f32 %v3725_v45, %v12061_v62  ;;  %v10131_v53 = vpop.f32.mrb[113].mxu0  ;;  %v3778_v34 = vpop.f32.mrb[130].mxu1  ;;  %v4579_v62 = vmul.f32 1.442695, %v4494_v7 }
 0x488   : > { %14424 = vst [vmem:[#allocation106_spill] sm:$0xff] %v12681_v23  ;;  %v3728_v41 = vpop.f32.mrb[114].mxu0  ;;  %v10138_v61 = vpop.f32.mrb[131].mxu1  ;;  %v4440_v31 = vsel %vm1114_vm5, %v12681_v23, -inf  ;;  %v4583_v22 = vmul.f32 1.442695, %v4496_v48 }
 0x489   : > { %v4349_v51 = vpop.xlane.xlu1 %4348  ;;  %v10132_v33 = vpop.f32.mrb[115].mxu0  ;;  %v4437_v13 = vsel %vm1114_vm5, %v12685_v32, -inf  ;;  %4441 = vmax.xlane.f32.xlu0 %v4440_v31  ;;  %10729 = vpow2.f32 %v4579_v62 }
 0x48a   : > { %4438 = vmax.xlane.f32.xlu1 %v4437_v13  ;;  %v4495_v28 = vsub.f32 %v12445_v4, %v4349_v51  ;;  %10731 = vpow2.f32 %v4577_v24  ;;  %v12702_v53 = vpop.eup %10721 }
 0x48b   : > { %v12706_v58 = vpop.eup %10723  ;;  %10733 = vpow2.f32 %v4583_v22 }
 0x48c   : > { %v4581_v7 = vmul.f32 1.442695, %v4495_v28  ;;  %v4713_v61 = vsel %vm1114_vm5, %v12706_v58, 0.0 }
 0x48d   : > { %v3875_v10 = vpop.f32.mrb[132].mxu1  ;;  %v12710_v1 = vpop.eup %10725 }
 0x48e   : > { %v3825_v26 = vpop.f32.mrb[116].mxu0  ;;  %v12695_v55 = vadd.f32 %v3875_v10, %v12109_v54  ;;  %v10149_v14 = vpop.f32.mrb[133].mxu1  ;;  %10735 = vpow2.f32 %v4581_v7  ;;  %v4722_v10 = vsel %vm1114_vm5, %v12710_v1, 0.0 }
 0x48f   : > { %v12698_v45 = vadd.f32 %v3825_v26, %v12084_v30  ;;  %v10143_v36 = vpop.f32.mrb[117].mxu0  ;;  %v3878_v27 = vpop.f32.mrb[134].mxu1  ;;  %v4716_v30 = vsel %vm1114_vm5, %v12702_v53, 0.0 }
 0x490   : > { %14425 = vst [vmem:[#allocation72_spill] sm:$0xff] %v12695_v55  ;;  %v3828_v44 = vpop.f32.mrb[118].mxu0  ;;  %v10150_v56 = vpop.f32.mrb[135].mxu1  ;;  %v4446_v4 = vsel %vm1114_vm5, %v12695_v55, -inf }
 0x491   : > { %14426 = vst [vmem:[#allocation103_spill] sm:$0xff] %v12698_v45  ;;  %v10144_v34 = vpop.f32.mrb[119].mxu0  ;;  %v4443_v54 = vsel %vm1114_vm5, %v12698_v45, -inf  ;;  %4447 = vmax.xlane.f32.xlu0 %v4446_v4  ;;  %v12716_v31 = vpop.eup %10727  ;;  %v14428_v45 = vld [vmem:[#allocation20_spill] sm:$0xff] }
 0x492   : > { %4444 = vmax.xlane.f32.xlu1 %v4443_v54  ;;  %v4719_v36 = vsel %vm1114_vm5, %v12716_v31, 0.0  ;;  %v5200_v23 = vsel %vm5054_vm6, %v14428_v45, 0 }
 0x493   : > { %v12723_v26 = vpop.eup %10729 }
 0x494   : > { %v12727_v27 = vpop.eup %10731 }
 0x495   : > { %v12712_v41 = vpop.f32.mrb[136].mxu1  ;;  %4717 = vadd.xlane.f32.xlu0 %v4716_v30  ;;  %v12731_v44 = vpop.eup %10733  ;;  %v4725_v4 = vsel %vm1114_vm5, %v12727_v27, 0.0 }
 0x496   : > { %v12718_v51 = vpop.f32.mrb[120].mxu0  ;;  %4714 = vadd.xlane.f32.xlu1 %v4713_v61  ;;  %v10161_v33 = vpop.f32.mrb[137].mxu1 }
 0x497   : > { %v4355_v13 = vpop.xlane.xlu1 %4354  ;;  %v10155_v62 = vpop.f32.mrb[121].mxu0 }
 0x498   : > { %v4497_v48 = vsub.f32 %v12459_v46, %v4355_v13  ;;  %v3928_v24 = vpop.f32.mrb[122].mxu0  ;;  %v3978_v28 = vpop.f32.mrb[138].mxu1  ;;  %v4728_v46 = vsel %vm1114_vm5, %v12723_v26, 0.0 }
 0x499   : > { %v10156_v14 = vpop.f32.mrb[123].mxu0  ;;  %v10162_v22 = vpop.f32.mrb[139].mxu1  ;;  %4723 = vadd.xlane.f32.xlu0 %v4722_v10  ;;  %v4734_v24 = vsel %vm1114_vm5, %v12731_v44, 0.0 }
 0x49a   : > { %v4585_v7 = vmul.f32 1.442695, %v4497_v48  ;;  %4720 = vadd.xlane.f32.xlu1 %v4719_v36  ;;  %v12737_v34 = vpop.eup %10735 }
 0x49b   : > { %v4731_v22 = vsel %vm1114_vm5, %v12737_v34, 0.0 }
 0x49c   : > { %10737 = vpow2.f32 %v4585_v7 }
 0x49d   : > { %v12733_v56 = vpop.f32.mrb[140].mxu1  ;;  %4729 = vadd.xlane.f32.xlu0 %v4728_v46 }
 0x49e   : > { %v12739_v54 = vpop.f32.mrb[124].mxu0  ;;  %4726 = vadd.xlane.f32.xlu1 %v4725_v4  ;;  %v10173_v30 = vpop.f32.mrb[141].mxu1 }
 0x49f   : > { %v4361_v61 = vpop.xlane.xlu1 %4360  ;;  %v10167_v33 = vpop.f32.mrb[125].mxu0 }
 0x4a0   : > { %v4499_v13 = vsub.f32 %v12467_v3, %v4361_v61  ;;  %v4358_v62 = vpop.xlane.xlu0 %4357  ;;  %v4028_v48 = vpop.f32.mrb[126].mxu0 }
 0x4a1   : > { %v4498_v28 = vsub.f32 %v12464_v37, %v4358_v62  ;;  %v4078_v10 = vpop.f32.mrb[142].mxu1  ;;  %v10168_v14 = vpop.f32.mrb[127].mxu0  ;;  %4735 = vadd.xlane.f32.xlu0 %v4734_v24 }
 0x4a2   : > { %v4589_v36 = vmul.f32 1.442695, %v4499_v13  ;;  %v10174_v7 = vpop.f32.mrb[143].mxu1  ;;  %4732 = vadd.xlane.f32.xlu1 %v4731_v22 }
 0x4a3   : > { %v4587_v46 = vmul.f32 1.442695, %v4498_v28  ;;  %v4667_v4 = vpop.xlane.xlu1 %4666 }
 0x4a4   : > { %10739 = vpow2.f32 %v4589_v36 }
 0x4a5   : > { %10741 = vpow2.f32 %v4587_v46  ;;  %v12747_v3 = vpop.f32.mrb[144].mxu1 }
 0x4a6   : > { %v12749_v30 = vpop.eup %10737  ;;  %10743 = vrcp.f32 %v4667_v4  ;;  %v12751_v61 = vpop.f32.mrb[128].mxu0 }
 0x4a7   : > { %v10185_v37 = vpop.f32.mrb[145].mxu1  ;;  %v10179_v33 = vpop.f32.mrb[129].mxu0  ;;  %v4737_v48 = vsel %vm1114_vm5, %v12749_v30, 0.0 }
 0x4a8   : > { %v4364_v62 = vpop.xlane.xlu0 %4363  ;;  %v4128_v24 = vpop.f32.mrb[130].mxu0  ;;  %4738 = vadd.xlane.f32.xlu1 %v4737_v48 }
 0x4a9   : > { %v4500_v13 = vsub.f32 %v12478_v11, %v4364_v62  ;;  %v4178_v28 = vpop.f32.mrb[146].mxu1  ;;  %v10180_v10 = vpop.f32.mrb[131].mxu0 }
 0x4aa   : > { %v10186_v14 = vpop.f32.mrb[147].mxu1 }
 0x4ab   : > { %v4591_v22 = vmul.f32 1.442695, %v4500_v13 }
 0x4ac   : > { %v4670_v36 = vpop.xlane.xlu0 %4669 }
 0x4ad   : > { %10745 = vpow2.f32 %v4591_v22  ;;  %v12756_v7 = vpop.f32.mrb[148].mxu1 }
 0x4ae   : > { %10747 = vrcp.f32 %v4670_v36  ;;  %v12758_v46 = vpop.eup %10739  ;;  %v12760_v4 = vpop.f32.mrb[132].mxu0  ;;  %v14427_v36 = vld [vmem:[#allocation18_spill] sm:$0xff] }
 0x4af   : > { %v10197_v37 = vpop.f32.mrb[149].mxu1  ;;  %v12762_v33 = vpop.eup %10741  ;;  %v4743_v62 = vsel %vm1114_vm5, %v12758_v46, 0.0 }
 0x4b0   : > { %v10191_v55 = vpop.f32.mrb[133].mxu0  ;;  %v4278_v11 = vpop.f32.mrb[150].mxu1  ;;  %4744 = vadd.xlane.f32.xlu1 %v4743_v62  ;;  %v4740_v13 = vsel %vm1114_vm5, %v12762_v33, 0.0  ;;  %v5152_v37 = vsel %vm5054_vm6, %v14427_v36, 0 }
 0x4b1   : > { %v10744_v48 = vpop.eup %10743  ;;  %v4228_v24 = vpop.f32.mrb[134].mxu0  ;;  %4741 = vadd.xlane.f32.xlu0 %v4740_v13 }
 0x4b2   : > { %v10198_v28 = vpop.f32.mrb[151].mxu1  ;;  %v10192_v10 = vpop.f32.mrb[135].mxu0  ;;  %v4921_v14 = vmul.f32 %v10744_v48, %v12473_v52 }
 0x4b4   : > { %v4985_v22 = vpack.c.bf16 %v4921_v14, %v4921_v14 }
 0x4b6   : > { %10202 = vmatmul.mubr.msk.bf16.vlgmr.msra.gmra.mrb[136].mxu0 %vm1114_vm5, %v4985_v22  ;;  %v4370_v11 = vpop.xlane.xlu0 %4369 }
 0x4b7   : > { %v12772_v55 = vpop.eup %10745  ;;  %10212 = vmatpush3.bf16.msra.mxu0 %v5152_v37  ;;  %10213 = vmatprep.mubr.msk.bf16.mxu0 %vm10959_vm4, %v14304_v12  ;;  %v4367_v24 = vpop.xlane.xlu1 %4366  ;;  %v4502_v13 = vsub.f32 %v12491_v18, %v4370_v11 }
 0x4b8   : > { %v10748_v62 = vpop.eup %10747  ;;  %v4746_v52 = vsel %vm1114_vm5, %v12772_v55, 0.0  ;;  %10223 = vmatprep.subr.bf16.mxu0 %v14304_v12  ;;  %v4501_v48 = vsub.f32 %v12495_v50, %v4367_v24 }
 0x4b9   : > { %4747 = vadd.xlane.f32.xlu0 %v4746_v52  ;;  %v4922_v28 = vmul.f32 %v10748_v62, %v12484_v29  ;;  %v4595_v10 = vmul.f32 1.442695, %v4502_v13 }
 0x4ba   : > { %v4593_v14 = vmul.f32 1.442695, %v4501_v48  ;;  %v4676_v36 = vpop.xlane.xlu0 %4675  ;;  %v12796_v48 = vadd.f32 %v12712_v41, %v12186_v2 }
 0x4bb   : > { %v4986_v22 = vpack.c.bf16 %v4922_v28, %v4922_v28  ;;  %10749 = vpow2.f32 %v4595_v10  ;;  %v4673_v37 = vpop.xlane.xlu1 %4672  ;;  %v12802_v10 = vadd.f32 %v12718_v51, %v12165_v63 }
 0x4bc   : > { %10751 = vpow2.f32 %v4593_v14  ;;  %14429 = vst [vmem:[#allocation21_spill] sm:$0xff] %v12796_v48  ;;  %v4452_v51 = vsel %vm1114_vm5, %v12796_v48, -inf  ;;  %v14457_v48 = vld [vmem:[#allocation80_spill] sm:$0xff] }
 0x4bd   : > { %10208 = vmatmul.mubr.msk.bf16.vlgmr.msra.gmra.mrb[152].mxu1 %vm1114_vm5, %v4986_v22  ;;  %10753 = vrcp.f32 %v4673_v37  ;;  %14430 = vst [vmem:[#allocation65_spill] sm:$0xff] %v12802_v10 }
 0x4be   : > { %10218 = vmatpush3.bf16.msra.mxu1 %v5200_v23  ;;  %10219 = vmatprep.mubr.msk.bf16.mxu1 %vm10959_vm4, %v14304_v12  ;;  %10755 = vrcp.f32 %v4676_v36  ;;  %v4376_v18 = vpop.xlane.xlu0 %4375 }
 0x4bf   : > { %10229 = vmatprep.subr.bf16.mxu1 %v14304_v12  ;;  %v4373_v29 = vpop.xlane.xlu1 %4372  ;;  %v4504_v50 = vsub.f32 %v12511_v47, %v4376_v18 }
 0x4c0   : > { %v4503_v11 = vsub.f32 %v12515_v38, %v4373_v29 }
 0x4c1   : > { %v4599_v62 = vmul.f32 1.442695, %v4504_v50 }
 0x4c2   : > { %v4597_v24 = vmul.f32 1.442695, %v4503_v11  ;;  %v4682_v45 = vpop.xlane.xlu0 %4681 }
 0x4c3   : > { %10757 = vpow2.f32 %v4599_v62  ;;  %v4679_v13 = vpop.xlane.xlu1 %4678 }
 0x4c4   : > { %10759 = vpow2.f32 %v4597_v24  ;;  %v4449_v24 = vsel %vm1114_vm5, %v12802_v10, -inf  ;;  %v14458_v10 = vld [vmem:[#allocation84_spill] sm:$0xff] }
 0x4c5   : > { %v12790_v52 = vpop.eup %10749  ;;  %10761 = vrcp.f32 %v4679_v13 }
 0x4c6   : > { %v12792_v23 = vpop.eup %10751  ;;  %10763 = vrcp.f32 %v4682_v45  ;;  %v4382_v28 = vpop.xlane.xlu0 %4381  ;;  %v4752_v47 = vsel %vm1114_vm5, %v12790_v52, 0.0 }
 0x4c7   : > { %v10754_v38 = vpop.eup %10753  ;;  %v4379_v14 = vpop.xlane.xlu1 %4378  ;;  %v4506_v22 = vsub.f32 %v12531_v8, %v4382_v28  ;;  %v4749_v36 = vsel %vm1114_vm5, %v12792_v23, 0.0  ;;  %4753 = vadd.xlane.f32.xlu0 %v4752_v47 }
 0x4c8   : > { %v10756_v37 = vpop.eup %10755  ;;  %v4505_v2 = vsub.f32 %v12535_v60, %v4379_v14  ;;  %4750 = vadd.xlane.f32.xlu1 %v4749_v36  ;;  %v4923_v41 = vmul.f32 %v10754_v38, %v12504_v17  ;;  %v14431_v60 = vld [vmem:[#allocation23_spill] sm:$0xff]  ;;  %v14432_v17 = vld [vmem:[#allocation37_spill] sm:$0xff] }
 0x4c9   : > { %v4603_v18 = vmul.f32 1.442695, %v4506_v22  ;;  %v4924_v29 = vmul.f32 %v10756_v37, %v12500_v39  ;;  %v5248_v45 = vsel %vm5054_vm6, %v14431_v60, 0  ;;  %v5296_v13 = vsel %vm5054_vm6, %v14432_v17, 0 }
 0x4ca   : > { %v4601_v50 = vmul.f32 1.442695, %v4505_v2  ;;  %v4987_v11 = vpack.c.bf16 %v4923_v41, %v4923_v41  ;;  %v4688_v63 = vpop.xlane.xlu0 %4687 }
 0x4cb   : > { %10765 = vpow2.f32 %v4603_v18  ;;  %v4685_v8 = vpop.xlane.xlu1 %4684  ;;  %v4988_v62 = vpack.c.bf16 %v4924_v29, %v4924_v29  ;;  %4453 = vmax.xlane.f32.xlu0 %v4452_v51 }
 0x4cc   : > { %10767 = vpow2.f32 %v4601_v50  ;;  %10214 = vmatmul.mubr.msk.bf16.vlgmr.msra.gmra.mrb[140].mxu0 %vm1114_vm5, %v4987_v11  ;;  %4450 = vmax.xlane.f32.xlu1 %v4449_v24 }
 0x4cd   : > { %v12817_v39 = vpop.eup %10757  ;;  %10224 = vmatpush3.bf16.msra.mxu0 %v5248_v45  ;;  %10769 = vrcp.f32 %v4685_v8  ;;  %10220 = vmatmul.mubr.msk.bf16.vlgmr.msra.gmra.mrb[156].mxu1 %vm1114_vm5, %v4988_v62  ;;  %v14433_v62 = vld [vmem:[#allocation22_spill] sm:$0xff] }
 0x4ce   : > { %v12822_v28 = vpop.eup %10759  ;;  %10230 = vmatpush3.bf16.msra.mxu1 %v5296_v13  ;;  %10771 = vrcp.f32 %v4688_v63  ;;  %v4388_v47 = vpop.xlane.xlu0 %4387  ;;  %v4758_v38 = vsel %vm1114_vm5, %v12817_v39, 0.0  ;;  %10225 = vmatprep.mubr.msk.bf16.mxu0 %vm10959_vm4, %v14304_v12  ;;  %v5344_v24 = vsel %vm5054_vm6, %v14433_v62, 0 }
 0x4cf   : > { %v10762_v14 = vpop.eup %10761  ;;  %v4385_v22 = vpop.xlane.xlu1 %4384  ;;  %v4508_v36 = vsub.f32 %v12551_v21, %v4388_v47  ;;  %v4755_v37 = vsel %vm1114_vm5, %v12822_v28, 0.0  ;;  %4759 = vadd.xlane.f32.xlu0 %v4758_v38  ;;  %10231 = vmatprep.mubr.msk.bf16.mxu1 %vm10959_vm4, %v14304_v12 }
 0x4d0   : > { %v10764_v2 = vpop.eup %10763  ;;  %v4507_v41 = vsub.f32 %v12555_v42, %v4385_v22  ;;  %4756 = vadd.xlane.f32.xlu1 %v4755_v37  ;;  %10235 = vmatprep.subr.bf16.mxu0 %v14304_v12  ;;  %v4925_v18 = vmul.f32 %v10762_v14, %v12524_v59  ;;  %v14434_v59 = vld [vmem:[#allocation35_spill] sm:$0xff] }
 0x4d1   : > { %v4607_v29 = vmul.f32 1.442695, %v4508_v36  ;;  %10241 = vmatprep.subr.bf16.mxu1 %v14304_v12  ;;  %v4926_v21 = vmul.f32 %v10764_v2, %v12520_v57  ;;  %v5392_v60 = vsel %vm5054_vm6, %v14434_v59, 0 }
 0x4d2   : > { %v4605_v50 = vmul.f32 1.442695, %v4507_v41  ;;  %v4989_v11 = vpack.c.bf16 %v4925_v18, %v4925_v18  ;;  %v4694_v63 = vpop.xlane.xlu0 %4693 }
 0x4d3   : > { %10773 = vpow2.f32 %v4607_v29  ;;  %v4691_v51 = vpop.xlane.xlu1 %4690  ;;  %v4990_v8 = vpack.c.bf16 %v4926_v21, %v4926_v21  ;;  %v14435_v29 = vld [vmem:[#allocation40_spill] sm:$0xff] }
 0x4d4   : > { %10775 = vpow2.f32 %v4605_v50  ;;  %10226 = vmatmul.mubr.msk.bf16.vlgmr.msra.gmra.mrb[144].mxu0 %vm1114_vm5, %v4989_v11  ;;  %v5440_v21 = vsel %vm5054_vm6, %v14435_v29, 0  ;;  %v14436_v11 = vld [vmem:[#allocation54_spill] sm:$0xff] }
 0x4d5   : > { %v12841_v42 = vpop.eup %10765  ;;  %10236 = vmatpush3.bf16.msra.mxu0 %v5344_v24  ;;  %10777 = vrcp.f32 %v4691_v51  ;;  %10232 = vmatmul.mubr.msk.bf16.vlgmr.msra.gmra.mrb[160].mxu1 %vm1114_vm5, %v4990_v8 }
 0x4d6   : > { %v12846_v57 = vpop.eup %10767  ;;  %10242 = vmatpush3.bf16.msra.mxu1 %v5392_v60  ;;  %10779 = vrcp.f32 %v4694_v63  ;;  %v12848_v45 = vpop.xlane.xlu0 %4393  ;;  %v4764_v17 = vsel %vm1114_vm5, %v12841_v42, 0.0  ;;  %10237 = vmatprep.mubr.msk.bf16.mxu0 %vm10959_vm4, %v14304_v12  ;;  %v5488_v63 = vsel %vm5054_vm6, %v14436_v11, 0  ;;  %v14437_v60 = vld [vmem:[#allocation36_spill] sm:$0xff] }
 0x4d7   : > { %v10770_v13 = vpop.eup %10769  ;;  %v12854_v47 = vpop.xlane.xlu1 %4390  ;;  %v4761_v38 = vsel %vm1114_vm5, %v12846_v57, 0.0  ;;  %4765 = vadd.xlane.f32.xlu0 %v4764_v17  ;;  %10243 = vmatprep.mubr.msk.bf16.mxu1 %vm10959_vm4, %v14304_v12 }
 0x4d8   : > { %v10772_v14 = vpop.eup %10771  ;;  %4762 = vadd.xlane.f32.xlu1 %v4761_v38  ;;  %10247 = vmatprep.subr.bf16.mxu0 %v14304_v12  ;;  %v4927_v22 = vmul.f32 %v10770_v13, %v12544_v16  ;;  %v14438_v13 = vld [vmem:[#allocation89_spill] sm:$0xff] }
 0x4d9   : > { %10253 = vmatprep.subr.bf16.mxu1 %v14304_v12  ;;  %v4928_v36 = vmul.f32 %v10772_v14, %v12540_v20 }
 0x4da   : > { %v4991_v37 = vpack.c.bf16 %v4927_v22, %v4927_v22  ;;  %v4700_v2 = vpop.xlane.xlu0 %4699 }
 0x4db   : > { %v4697_v41 = vpop.xlane.xlu1 %4696  ;;  %v4992_v18 = vpack.c.bf16 %v4928_v36, %v4928_v36 }
 0x4dc   : > { %10238 = vmatmul.mubr.msk.bf16.vlgmr.msra.gmra.mrb[148].mxu0 %vm1114_vm5, %v4991_v37  ;;  %10781 = vrcp.f32 %v4697_v41 }
 0x4dd   : > { %v12867_v50 = vpop.eup %10773  ;;  %10248 = vmatpush3.bf16.msra.mxu0 %v5440_v21  ;;  %10244 = vmatmul.mubr.msk.bf16.vlgmr.msra.gmra.mrb[164].mxu1 %vm1114_vm5, %v4992_v18  ;;  %10783 = vrcp.f32 %v4700_v2  ;;  %v14439_v2 = vld [vmem:[#allocation38_spill] sm:$0xff]  ;;  %v14440_v18 = vld [vmem:[#allocation51_spill] sm:$0xff] }
 0x4de   : > { %v12872_v16 = vpop.eup %10775  ;;  %10254 = vmatpush3.bf16.msra.mxu1 %v5488_v63  ;;  %v12874_v20 = vpop.xlane.xlu0 %4399  ;;  %v4770_v51 = vsel %vm1114_vm5, %v12867_v50, 0.0  ;;  %10249 = vmatprep.mubr.msk.bf16.mxu0 %vm10959_vm4, %v14304_v12  ;;  %v5536_v41 = vsel %vm5054_vm6, %v14439_v2, 0  ;;  %v5584_v29 = vsel %vm5054_vm6, %v14440_v18, 0  ;;  %v14443_v2 = vld [vmem:[#allocation73_spill] sm:$0xff] }
 0x4df   : > { %v10778_v8 = vpop.eup %10777  ;;  %v12880_v62 = vpop.xlane.xlu1 %4396  ;;  %v4767_v24 = vsel %vm1114_vm5, %v12872_v16, 0.0  ;;  %4771 = vadd.xlane.f32.xlu0 %v4770_v51  ;;  %10255 = vmatprep.mubr.msk.bf16.mxu1 %vm10959_vm4, %v14304_v12 }
 0x4e0   : > { %v10780_v59 = vpop.eup %10779  ;;  %4768 = vadd.xlane.f32.xlu1 %v4767_v24  ;;  %10259 = vmatprep.subr.bf16.mxu0 %v14304_v12  ;;  %v4929_v17 = vmul.f32 %v10778_v8, %v14437_v60 }
 0x4e1   : > { %10265 = vmatprep.subr.bf16.mxu1 %v14304_v12  ;;  %v4930_v38 = vmul.f32 %v10780_v59, %v14438_v13 }
 0x4e2   : > { %v4993_v14 = vpack.c.bf16 %v4929_v17, %v4929_v17  ;;  %v4706_v22 = vpop.xlane.xlu0 %4705 }
 0x4e3   : > { %v4703_v36 = vpop.xlane.xlu1 %4702  ;;  %v4994_v37 = vpack.c.bf16 %v4930_v38, %v4930_v38  ;;  %v14441_v38 = vld [vmem:[#allocation58_spill] sm:$0xff] }
 0x4e4   : > { %10250 = vmatmul.mubr.msk.bf16.vlgmr.msra.gmra.mrb[152].mxu0 %vm1114_vm5, %v4993_v14  ;;  %10785 = vrcp.f32 %v4703_v36  ;;  %v5632_v14 = vsel %vm5054_vm6, %v14441_v38, 0 }
 0x4e5   : > { %10260 = vmatpush3.bf16.msra.mxu0 %v5536_v41  ;;  %10256 = vmatmul.mubr.msk.bf16.vlgmr.msra.gmra.mrb[168].mxu1 %vm1114_vm5, %v4994_v37  ;;  %10787 = vrcp.f32 %v4706_v22  ;;  %v14442_v22 = vld [vmem:[#allocation79_spill] sm:$0xff] }
 0x4e6   : > { %10266 = vmatpush3.bf16.msra.mxu1 %v5584_v29  ;;  %v12896_v21 = vpop.xlane.xlu0 %4405  ;;  %10261 = vmatprep.mubr.msk.bf16.mxu0 %vm10959_vm4, %v14304_v12  ;;  %v10782_v11 = vpop.eup %10781  ;;  %v5680_v36 = vsel %vm5054_vm6, %v14442_v22, 0 }
 0x4e7   : > { %v12900_v63 = vpop.xlane.xlu1 %4402  ;;  %10267 = vmatprep.mubr.msk.bf16.mxu1 %vm10959_vm4, %v14304_v12  ;;  %10271 = vmatprep.subr.bf16.mxu0 %v14304_v12  ;;  %v10784_v51 = vpop.eup %10783  ;;  %v4931_v8 = vmul.f32 %v10782_v11, %v12584_v49  ;;  %v14444_v11 = vld [vmem:[#allocation56_spill] sm:$0xff] }
 0x4e8   : > { %10277 = vmatprep.subr.bf16.mxu1 %v14304_v12  ;;  %v4932_v24 = vmul.f32 %v10784_v51, %v12580_v5  ;;  %v5728_v51 = vsel %vm5054_vm6, %v14444_v11, 0 }
 0x4e9   : > { %v4995_v59 = vpack.c.bf16 %v4931_v8, %v4931_v8  ;;  %v14445_v8 = vld [vmem:[#allocation75_spill] sm:$0xff] }
 0x4ea   : > { %v4996_v17 = vpack.c.bf16 %v4932_v24, %v4932_v24  ;;  %v4712_v13 = vpop.xlane.xlu0 %4711  ;;  %v5776_v24 = vsel %vm5054_vm6, %v14445_v8, 0 }
 0x4eb   : > { %v4709_v60 = vpop.xlane.xlu1 %4708 }
 0x4ec   : > { %10262 = vmatmul.mubr.msk.bf16.vlgmr.msra.gmra.mrb[156].mxu0 %vm1114_vm5, %v4995_v59  ;;  %10789 = vrcp.f32 %v4709_v60 }
 0x4ed   : > { %10272 = vmatpush3.bf16.msra.mxu0 %v5632_v14  ;;  %10268 = vmatmul.mubr.msk.bf16.vlgmr.msra.gmra.mrb[172].mxu1 %vm1114_vm5, %v4996_v17  ;;  %10791 = vrcp.f32 %v4712_v13  ;;  %v14447_v14 = vld [vmem:[#allocation83_spill] sm:$0xff] }
 0x4ee   : > { %10278 = vmatpush3.bf16.msra.mxu1 %v5680_v36  ;;  %10273 = vmatprep.mubr.msk.bf16.mxu0 %vm10959_vm4, %v14304_v12  ;;  %v10786_v5 = vpop.eup %10785  ;;  %v5824_v22 = vsel %vm5054_vm6, %v14447_v14, 0  ;;  %v14448_v36 = vld [vmem:[#allocation85_spill] sm:$0xff] }
 0x4ef   : > { %10279 = vmatprep.mubr.msk.bf16.mxu1 %vm10959_vm4, %v14304_v12  ;;  %10283 = vmatprep.subr.bf16.mxu0 %v14304_v12  ;;  %v10788_v49 = vpop.eup %10787  ;;  %v4933_v37 = vmul.f32 %v10786_v5, %v12602_v19  ;;  %v14446_v19 = vld [vmem:[#allocation74_spill] sm:$0xff]  ;;  %v5872_v5 = vsel %vm5054_vm6, %v14448_v36, 0 }
 0x4f0   : > { %10289 = vmatprep.subr.bf16.mxu1 %v14304_v12  ;;  %v4934_v41 = vmul.f32 %v10788_v49, %v12598_v15  ;;  %v14450_v49 = vld [vmem:[#allocation33_spill] sm:$0xff] }
 0x4f1   : > { %6394 = vrot.lane.b32.xlu1 %v14443_v2, %s10954_s20  ;;  %v4997_v18 = vpack.c.bf16 %v4933_v37, %v4933_v37  ;;  %v4509_v37 = vsub.f32 %v14450_v49, %v12854_v47  ;;  %v14452_v47 = vld [vmem:[#allocation107_spill] sm:$0xff] }
 0x4f2   : > { %v4998_v29 = vpack.c.bf16 %v4934_v41, %v4934_v41  ;;  %v12956_v41 = vpop.xlane.xlu0 %4411 }
 0x4f4   : > { %10274 = vmatmul.mubr.msk.bf16.vlgmr.msra.gmra.mrb[160].mxu0 %vm1114_vm5, %v4997_v18  ;;  %v4609_v18 = vmul.f32 1.442695, %v4509_v37 }
 0x4f5   : > { %10280 = vmatmul.mubr.msk.bf16.vlgmr.msra.gmra.mrb[176].mxu1 %vm1114_vm5, %v4998_v29  ;;  %10284 = vmatpush3.bf16.msra.mxu0 %v5728_v51  ;;  %v12958_v29 = vpop.xlane.xlu1 %4408 }
 0x4f6   : > { %10290 = vmatpush3.bf16.msra.mxu1 %v5776_v24  ;;  %6442 = vrot.lane.b32.xlu0 %v14446_v19, %s10954_s20  ;;  %v10790_v59 = vpop.eup %10789  ;;  %v12960_v11 = vpop.xlane.xlu0 %4417  ;;  %v12974_v19 = vadd.f32 %v12733_v56, %v14452_v47 }
 0x4f7   : > { %10285 = vmatprep.mubr.msk.bf16.mxu0 %vm10959_vm4, %v14304_v12  ;;  %10291 = vmatprep.mubr.msk.bf16.mxu1 %vm10959_vm4, %v14304_v12  ;;  %v10792_v15 = vpop.eup %10791  ;;  %v4935_v60 = vmul.f32 %v10790_v59, %v12620_v9 }
 0x4f8   : > { %10295 = vmatprep.subr.bf16.mxu0 %v14304_v12  ;;  %10301 = vmatprep.subr.bf16.mxu1 %v14304_v12  ;;  %v4936_v17 = vmul.f32 %v10792_v15, %v12616_v25  ;;  %v14449_v25 = vld [vmem:[#allocation88_spill] sm:$0xff]  ;;  %14453 = vst [vmem:[#allocation62_spill] sm:$0xff] %v12974_v19 }
 0x4f9   : > { %v4999_v13 = vpack.c.bf16 %v4935_v60, %v4935_v60  ;;  %v4510_v9 = vsub.f32 %v14449_v25, %v12848_v45  ;;  %v12962_v51 = vpop.xlane.xlu1 %4414  ;;  %v12970_v45 = vadd.f32 %v12739_v54, %v12193_v6 }
 0x4fa   : > { %v5000_v38 = vpack.c.bf16 %v4936_v17, %v4936_v17 }
 0x4fb   : > { %v4611_v2 = vmul.f32 1.442695, %v4510_v9  ;;  %14451 = vst [vmem:[#allocation19_spill] sm:$0xff] %v12970_v45  ;;  %v4455_v17 = vsel %vm1114_vm5, %v12970_v45, -inf }
 0x4fc   : > { %10286 = vmatmul.mubr.msk.bf16.vlgmr.msra.gmra.mrb[164].mxu0 %vm1114_vm5, %v4999_v13  ;;  %v4458_v13 = vsel %vm1114_vm5, %v12974_v19, -inf }
 0x4fd   : > { %10292 = vmatmul.mubr.msk.bf16.vlgmr.msra.gmra.mrb[180].mxu1 %vm1114_vm5, %v5000_v38  ;;  %10296 = vmatpush3.bf16.msra.mxu0 %v5824_v22  ;;  %10793 = vpow2.f32 %v4611_v2 }
 0x4fe   : > { %10302 = vmatpush3.bf16.msra.mxu1 %v5872_v5  ;;  %10297 = vmatprep.mubr.msk.bf16.mxu0 %vm10959_vm4, %v14304_v12  ;;  %10795 = vpow2.f32 %v4609_v18  ;;  %v12964_v8 = vpop.xlane.xlu0 %4423  ;;  %v14455_v18 = vld [vmem:[#allocation66_spill] sm:$0xff] }
 0x4ff   : > { %10303 = vmatprep.mubr.msk.bf16.mxu1 %vm10959_vm4, %v14304_v12  ;;  %10307 = vmatprep.subr.bf16.mxu0 %v14304_v12  ;;  %v12966_v24 = vpop.xlane.xlu1 %4420 }
 0x500   : > { %10313 = vmatprep.subr.bf16.mxu1 %v14304_v12 }
 0x506   : > { %v12976_v59 = vpop.xlane.xlu0 %4429 }
 0x507   : > { %v12978_v15 = vpop.xlane.xlu1 %4426  ;;  %v12980_v60 = vpop.eup %10793 }
 0x508   : > { %v12986_v38 = vpop.eup %10795  ;;  %v4776_v14 = vsel %vm1114_vm5, %v12980_v60, 0.0 }
 0x509   : > { %v4773_v54 = vsel %vm1114_vm5, %v12986_v38, 0.0 }
 0x50e   : > { %v12988_v6 = vpop.xlane.xlu0 %4435 }
 0x50f   : > { %v12990_v56 = vpop.xlane.xlu1 %4432 }
 0x515   : > { %4456 = vmax.xlane.f32.xlu1 %v4455_v17  ;;  %4459 = vmax.xlane.f32.xlu0 %v4458_v13 }
 0x516   : > { %v12996_v22 = vpop.xlane.xlu0 %4441 }
 0x517   : > { %v12998_v36 = vpop.xlane.xlu1 %4438 }
 0x519   : > { %4774 = vadd.xlane.f32.xlu1 %v4773_v54  ;;  %4777 = vadd.xlane.f32.xlu0 %v4776_v14  ;;  %v14456_v54 = vld [vmem:[#allocation67_spill] sm:$0xff] }
 0x51e   : > { %v13000_v5 = vpop.xlane.xlu0 %4447 }
 0x51f   : > { %14454 = vst [vmem:[#allocation96_spill] sm:$0xff] %v13000_v5  ;;  %v13002_v25 = vpop.xlane.xlu1 %4444  ;;  %v5968_v5 = vsel %vm5054_vm6, %v14458_v10, 0 }
 0x522   : > { %v4718_v9 = vpop.xlane.xlu0 %4717 }
 0x523   : > { %v4715_v49 = vpop.xlane.xlu1 %4714 }
 0x524   : > { %10797 = vrcp.f32 %v4715_v49 }
 0x525   : > { %10799 = vrcp.f32 %v4718_v9 }
 0x526   : > { %v4724_v2 = vpop.xlane.xlu0 %4723 }
 0x527   : > { %v4721_v37 = vpop.xlane.xlu1 %4720 }
 0x528   : > { %10801 = vrcp.f32 %v4721_v37 }
 0x529   : > { %10803 = vrcp.f32 %v4724_v2 }
 0x52a   : > { %6490 = vrot.lane.b32.xlu1 %v14455_v18, %s10954_s20  ;;  %v4730_v13 = vpop.xlane.xlu0 %4729  ;;  %v5920_v18 = vsel %vm5054_vm6, %v14457_v48, 0 }
 0x52b   : > { %v4727_v47 = vpop.xlane.xlu1 %4726 }
 0x52c   : > { %10805 = vrcp.f32 %v4727_v47 }
 0x52d   : > { %10807 = vrcp.f32 %v4730_v13  ;;  %v14459_v13 = vld [vmem:[#allocation87_spill] sm:$0xff] }
 0x52e   : > { %v10798_v17 = vpop.eup %10797 }
 0x52f   : > { %6538 = vrot.lane.b32.xlu0 %v14456_v54, %s10954_s20  ;;  %v10800_v14 = vpop.eup %10799  ;;  %v4937_v19 = vmul.f32 %v10798_v17, %v12706_v58  ;;  %v4733_v58 = vpop.xlane.xlu1 %4732  ;;  %v6016_v54 = vsel %vm5054_vm6, %v14459_v13, 0 }
 0x530   : > { %v4938_v49 = vmul.f32 %v10800_v14, %v12702_v53  ;;  %10809 = vrcp.f32 %v4733_v58  ;;  %v14461_v14 = vld [vmem:[#allocation91_spill] sm:$0xff] }
 0x531   : > { %v5001_v9 = vpack.c.bf16 %v4937_v19, %v4937_v19  ;;  %v4736_v19 = vpop.xlane.xlu0 %4735 }
 0x532   : > { %v10802_v45 = vpop.eup %10801  ;;  %v5002_v37 = vpack.c.bf16 %v4938_v49, %v4938_v49  ;;  %10811 = vrcp.f32 %v4736_v19  ;;  %v6064_v49 = vsel %vm5054_vm6, %v14461_v14, 0  ;;  %v13062_v14 = vadd.f32 %v12747_v3, %v12291_v40 }
 0x533   : > { %v10804_v2 = vpop.eup %10803  ;;  %10298 = vmatmul.mubr.msk.bf16.vlgmr.msra.gmra.mrb[168].mxu0 %vm1114_vm5, %v5001_v9  ;;  %v4939_v53 = vmul.f32 %v10802_v45, %v12716_v31  ;;  %v14460_v31 = vld [vmem:[#allocation25_spill] sm:$0xff] }
 0x534   : > { %10304 = vmatmul.mubr.msk.bf16.vlgmr.msra.gmra.mrb[184].mxu1 %vm1114_vm5, %v5002_v37  ;;  %10308 = vmatpush3.bf16.msra.mxu0 %v5920_v18  ;;  %v4940_v48 = vmul.f32 %v10804_v2, %v12710_v1  ;;  %v4511_v45 = vsub.f32 %v14460_v31, %v12880_v62  ;;  %v14462_v1 = vld [vmem:[#allocation29_spill] sm:$0xff]  ;;  %v4464_v3 = vsel %vm1114_vm5, %v13062_v14, -inf }
 0x535   : > { %10314 = vmatpush3.bf16.msra.mxu1 %v5968_v5  ;;  %10309 = vmatprep.mubr.msk.bf16.mxu0 %vm10959_vm4, %v14304_v12  ;;  %v5003_v10 = vpack.c.bf16 %v4939_v53, %v4939_v53  ;;  %v4512_v9 = vsub.f32 %v14462_v1, %v12874_v20  ;;  %v4739_v37 = vpop.xlane.xlu1 %4738 }
 0x536   : > { %10315 = vmatprep.mubr.msk.bf16.mxu1 %vm10959_vm4, %v14304_v12  ;;  %10319 = vmatprep.subr.bf16.mxu0 %v14304_v12  ;;  %v10806_v47 = vpop.eup %10805  ;;  %v5004_v5 = vpack.c.bf16 %v4940_v48, %v4940_v48  ;;  %v4613_v58 = vmul.f32 1.442695, %v4511_v45  ;;  %10813 = vrcp.f32 %v4739_v37  ;;  %v13058_v45 = vadd.f32 %v12751_v61, %v12270_v0  ;;  %v14465_v37 = vld [vmem:[#allocation93_spill] sm:$0xff] }
 0x537   : > { %10325 = vmatprep.subr.bf16.mxu1 %v14304_v12  ;;  %v10808_v17 = vpop.eup %10807  ;;  %v4941_v2 = vmul.f32 %v10806_v47, %v12727_v27  ;;  %v4615_v20 = vmul.f32 1.442695, %v4512_v9  ;;  %v14464_v47 = vld [vmem:[#allocation90_spill] sm:$0xff] }
 0x538   : > { %v4942_v62 = vmul.f32 %v10808_v17, %v12723_v26  ;;  %v6160_v13 = vsel %vm5054_vm6, %v14464_v47, 0  ;;  %v4461_v0 = vsel %vm1114_vm5, %v13058_v45, -inf }
 0x539   : > { %v5005_v53 = vpack.c.bf16 %v4941_v2, %v4941_v2  ;;  %v6208_v2 = vsel %vm5054_vm6, %v14465_v37, 0 }
 0x53a   : > { %v10810_v19 = vpop.eup %10809  ;;  %v5006_v48 = vpack.c.bf16 %v4942_v62, %v4942_v62 }
 0x53b   : > { %10310 = vmatmul.mubr.msk.bf16.vlgmr.msra.gmra.mrb[172].mxu0 %vm1114_vm5, %v5003_v10  ;;  %v4943_v17 = vmul.f32 %v10810_v19, %v12737_v34 }
 0x53c   : > { %10316 = vmatmul.mubr.msk.bf16.vlgmr.msra.gmra.mrb[188].mxu1 %vm1114_vm5, %v5004_v5  ;;  %10320 = vmatpush3.bf16.msra.mxu0 %v6016_v54  ;;  %v10812_v10 = vpop.eup %10811  ;;  %v14463_v5 = vld [vmem:[#allocation86_spill] sm:$0xff] }
 0x53d   : > { %10326 = vmatpush3.bf16.msra.mxu1 %v6064_v49  ;;  %10321 = vmatprep.mubr.msk.bf16.mxu0 %vm10959_vm4, %v14304_v12  ;;  %v6112_v27 = vsel %vm5054_vm6, %v14463_v5, 0  ;;  %v4745_v26 = vpop.xlane.xlu1 %4744  ;;  %v4944_v31 = vmul.f32 %v10812_v10, %v12731_v44  ;;  %v5007_v34 = vpack.c.bf16 %v4943_v17, %v4943_v17  ;;  %v14466_v44 = vld [vmem:[#allocation102_spill] sm:$0xff] }
 0x53e   : > { %v4742_v18 = vpop.xlane.xlu0 %4741  ;;  %10327 = vmatprep.mubr.msk.bf16.mxu1 %vm10959_vm4, %v14304_v12  ;;  %10331 = vmatprep.subr.bf16.mxu0 %v14304_v12 }
 0x53f   : > { %10337 = vmatprep.subr.bf16.mxu1 %v14304_v12  ;;  %10815 = vrcp.f32 %v4742_v18  ;;  %v5008_v1 = vpack.c.bf16 %v4944_v31, %v4944_v31  ;;  %v6256_v18 = vsel %vm5054_vm6, %v14466_v44, 0  ;;  %v14470_v44 = vld [vmem:[#allocation32_spill] sm:$0xff] }
 0x540   : > { %10817 = vpow2.f32 %v4613_v58  ;;  %v10814_v49 = vpop.eup %10813 }
 0x541   : > { %10819 = vpow2.f32 %v4615_v20  ;;  %v4945_v61 = vmul.f32 %v10814_v49, %v12749_v30  ;;  %v14469_v49 = vld [vmem:[#allocation30_spill] sm:$0xff] }
 0x542   : > { %10821 = vrcp.f32 %v4745_v26 }
 0x543   : > { %10322 = vmatmul.mubr.msk.bf16.vlgmr.msra.gmra.mrb[176].mxu0 %vm1114_vm5, %v5005_v53  ;;  %v5009_v53 = vpack.c.bf16 %v4945_v61, %v4945_v61 }
 0x544   : > { %10328 = vmatmul.mubr.msk.bf16.vlgmr.msra.gmra.mrb[192].mxu1 %vm1114_vm5, %v5006_v48  ;;  %10332 = vmatpush3.bf16.msra.mxu0 %v6112_v27  ;;  %v14468_v27 = vld [vmem:[#allocation99_spill] sm:$0xff] }
 0x545   : > { %10338 = vmatpush3.bf16.msra.mxu1 %v6160_v13  ;;  %10333 = vmatprep.mubr.msk.bf16.mxu0 %vm10959_vm4, %v14304_v12  ;;  %v6352_v47 = vsel %vm5054_vm6, %v14468_v27, 0 }
 0x546   : > { %v4748_v54 = vpop.xlane.xlu0 %4747  ;;  %10339 = vmatprep.mubr.msk.bf16.mxu1 %vm10959_vm4, %v14304_v12  ;;  %10343 = vmatprep.subr.bf16.mxu0 %v14304_v12 }
 0x547   : > { %10349 = vmatprep.subr.bf16.mxu1 %v14304_v12  ;;  %10823 = vrcp.f32 %v4748_v54 }
 0x549   : > { %v10816_v9 = vpop.eup %10815 }
 0x54a   : > { %v13072_v40 = vpop.eup %10817  ;;  %v4946_v58 = vmul.f32 %v10816_v9, %v12762_v33  ;;  %v14467_v33 = vld [vmem:[#allocation92_spill] sm:$0xff] }
 0x54b   : > { %10334 = vmatmul.mubr.msk.bf16.vlgmr.msra.gmra.mrb[180].mxu0 %vm1114_vm5, %v5007_v34  ;;  %v13077_v62 = vpop.eup %10819  ;;  %v4779_v20 = vsel %vm1114_vm5, %v13072_v40, 0.0  ;;  %v6304_v5 = vsel %vm5054_vm6, %v14467_v33, 0 }
 0x54c   : > { %10340 = vmatmul.mubr.msk.bf16.vlgmr.msra.gmra.mrb[196].mxu1 %vm1114_vm5, %v5008_v1  ;;  %10344 = vmatpush3.bf16.msra.mxu0 %v6208_v2  ;;  %v4782_v30 = vsel %vm1114_vm5, %v13077_v62, 0.0  ;;  %v10822_v19 = vpop.eup %10821  ;;  %v5010_v48 = vpack.c.bf16 %v4946_v58, %v4946_v58 }
 0x54d   : > { %10350 = vmatpush3.bf16.msra.mxu1 %v6256_v18  ;;  %10345 = vmatprep.mubr.msk.bf16.mxu0 %vm10959_vm4, %v14304_v12  ;;  %v4947_v13 = vmul.f32 %v10822_v19, %v12758_v46 }
 0x54e   : > { %4462 = vmax.xlane.f32.xlu1 %v4461_v0  ;;  %4465 = vmax.xlane.f32.xlu0 %v4464_v3 }
 0x54f   : > { %10355 = vmatprep.subr.bf16.mxu0 %v14304_v12  ;;  %10351 = vmatprep.mubr.msk.bf16.mxu1 %vm10959_vm4, %v14304_v12  ;;  %v5011_v31 = vpack.c.bf16 %v4947_v13, %v4947_v13 }
 0x550   : > { %10361 = vmatprep.subr.bf16.mxu1 %v14304_v12 }
 0x551   : > { %v10824_v10 = vpop.eup %10823 }
 0x552   : > { %4780 = vadd.xlane.f32.xlu1 %v4779_v20  ;;  %4783 = vadd.xlane.f32.xlu0 %v4782_v30  ;;  %v4948_v26 = vmul.f32 %v10824_v10, %v12772_v55 }
 0x553   : > { %10346 = vmatmul.mubr.msk.bf16.vlgmr.msra.gmra.mrb[184].mxu0 %vm1114_vm5, %v5009_v53 }
 0x554   : > { %10352 = vmatmul.mubr.msk.bf16.vlgmr.msra.gmra.mrb[200].mxu1 %vm1114_vm5, %v5010_v48  ;;  %10356 = vmatpush3.bf16.msra.mxu0 %v6304_v5  ;;  %v4754_v17 = vpop.xlane.xlu0 %4753  ;;  %v5012_v34 = vpack.c.bf16 %v4948_v26, %v4948_v26  ;;  %v14471_v5 = vld [vmem:[#allocation94_spill] sm:$0xff]  ;;  %v14473_v26 = vld [vmem:[#allocation108_spill] sm:$0xff] }
 0x555   : > { %10362 = vmatpush3.bf16.msra.mxu1 %v6352_v47  ;;  %10357 = vmatprep.mubr.msk.bf16.mxu0 %vm10959_vm4, %v14304_v12  ;;  %v4751_v54 = vpop.xlane.xlu1 %4750  ;;  %10825 = vrcp.f32 %v4754_v17  ;;  %v4513_v27 = vsub.f32 %v14471_v5, %v12900_v63  ;;  %v13144_v63 = vadd.f32 %v12760_v4, %v14473_v26  ;;  %v14474_v17 = vld [vmem:[#allocation109_spill] sm:$0xff] }
 0x556   : > { %10363 = vmatprep.mubr.msk.bf16.mxu1 %vm10959_vm4, %v14304_v12  ;;  %10367 = vmatprep.subr.bf16.mxu0 %v14304_v12  ;;  %10827 = vrcp.f32 %v4751_v54  ;;  %v13148_v54 = vadd.f32 %v12756_v7, %v14474_v17 }
 0x557   : > { %10373 = vmatprep.subr.bf16.mxu1 %v14304_v12  ;;  %v4617_v47 = vmul.f32 1.442695, %v4513_v27 }
 0x558   : > { %v13108_v46 = vpop.xlane.xlu0 %4453 }
 0x559   : > { %v13112_v55 = vpop.xlane.xlu1 %4450  ;;  %10829 = vpow2.f32 %v4617_v47 }
 0x55b   : > { %10358 = vmatmul.mubr.msk.bf16.vlgmr.msra.gmra.mrb[188].mxu0 %vm1114_vm5, %v5011_v31 }
 0x55c   : > { %10364 = vmatmul.mubr.msk.bf16.vlgmr.msra.gmra.mrb[204].mxu1 %vm1114_vm5, %v5012_v34  ;;  %10369 = vmatprep.mubr.msk.bf16.mxu0 %vm10959_vm4, %v14304_v12  ;;  %v4760_v1 = vpop.xlane.xlu0 %4759  ;;  %v4470_v34 = vsel %vm1114_vm5, %v13148_v54, -inf }
 0x55d   : > { %10375 = vmatprep.mubr.msk.bf16.mxu1 %vm10959_vm4, %v14304_v12  ;;  %v4757_v9 = vpop.xlane.xlu1 %4756 }
 0x55f   : > { %v10826_v18 = vpop.eup %10825 }
 0x560   : > { %v10828_v3 = vpop.eup %10827  ;;  %v4950_v58 = vmul.f32 %v10826_v18, %v12790_v52  ;;  %v14472_v52 = vld [vmem:[#allocation53_spill] sm:$0xff] }
 0x561   : > { %v4949_v30 = vmul.f32 %v10828_v3, %v12792_v23  ;;  %v4514_v23 = vsub.f32 %v14472_v52, %v12896_v21  ;;  %v4467_v21 = vsel %vm1114_vm5, %v13144_v63, -inf }
 0x562   : > { %v5014_v10 = vpack.c.bf16 %v4950_v58, %v4950_v58 }
 0x563   : > { %6586 = vrot.lane.b32.xlu1 %v14469_v49, %s10954_s20  ;;  %v5013_v33 = vpack.c.bf16 %v4949_v30, %v4949_v30  ;;  %v4619_v13 = vmul.f32 1.442695, %v4514_v23  ;;  %v13152_v31 = vpop.eup %10829 }
 0x564   : > { %v13116_v37 = vpop.xlane.xlu0 %4765  ;;  %v4785_v7 = vsel %vm1114_vm5, %v13152_v31, 0.0 }
 0x565   : > { %v13118_v2 = vpop.xlane.xlu1 %4762  ;;  %10831 = vpow2.f32 %v4619_v13  ;;  %v14480_v13 = vld [vmem:[#allocation27_spill] sm:$0xff] }
 0x566   : > { %10833 = vrcp.f32 %v4757_v9 }
 0x567   : > { %10835 = vrcp.f32 %v4760_v1 }
 0x568   : > { %6634 = vrot.lane.b32.xlu0 %v14470_v44, %s10954_s20 }
 0x56c   : > { %v13122_v0 = vpop.xlane.xlu0 %4771 }
 0x56d   : > { %v13124_v61 = vpop.xlane.xlu1 %4768 }
 0x56f   : > { %v13156_v49 = vpop.eup %10831 }
 0x570   : > { %v6443_v20 = vpop.permute.xlu0 %6442  ;;  %v4788_v58 = vsel %vm1114_vm5, %v13156_v49, 0.0 }
 0x571   : > { %v6395_v53 = vpop.permute.xlu1 %6394  ;;  %v6448_v19 = vsel %vm5054_vm6, %v6443_v20, 0 }
 0x572   : > { %v6400_v48 = vsel %vm5054_vm6, %v6395_v53, 0  ;;  %10374 = vmatpush3.bf16.msra.mxu1 %v6448_v19 }
 0x573   : > { %10368 = vmatpush3.bf16.msra.mxu0 %v6400_v48  ;;  %10385 = vmatprep.subr.bf16.mxu1 %v14304_v12  ;;  %v14477_v48 = vld [vmem:[#allocation24_spill] sm:$0xff] }
 0x574   : > { %10379 = vmatprep.subr.bf16.mxu0 %v14304_v12 }
 0x575   : > { %10376 = vmatmul.mubr.msk.bf16.vlgmr.msra.gmra.mrb[208].mxu1 %vm1114_vm5, %v5014_v10 }
 0x576   : > { %10370 = vmatmul.mubr.msk.bf16.vlgmr.msra.gmra.mrb[192].mxu0 %vm1114_vm5, %v5013_v33  ;;  %10387 = vmatprep.mubr.msk.bf16.mxu1 %vm10959_vm4, %v14304_v12 }
 0x577   : > { %10381 = vmatprep.mubr.msk.bf16.mxu0 %vm10959_vm4, %v14304_v12 }
 0x587   : > { %4468 = vmax.xlane.f32.xlu1 %v4467_v21  ;;  %4471 = vmax.xlane.f32.xlu0 %v4470_v34  ;;  %v10834_v34 = vpop.eup %10833 }
 0x589   : > { %v13158_v44 = vpop.f32.mrb[136].mxu0 }
 0x58a   : > { %14475 = vst [vmem:[#allocation101_spill] sm:$0xff] %v13158_v44  ;;  %v10203_v4 = vpop.f32.mrb[137].mxu0 }
 0x58b   : > { %v5095_v18 = vpop.f32.mrb[138].mxu0  ;;  %4786 = vadd.xlane.f32.xlu1 %v4785_v7  ;;  %4789 = vadd.xlane.f32.xlu0 %v4788_v58  ;;  %v10836_v4 = vpop.eup %10835 }
 0x58c   : > { %v10204_v3 = vpop.f32.mrb[139].mxu0 }
 0x590   : > { %v13164_v20 = vpop.f32.mrb[152].mxu1 }
 0x591   : > { %14476 = vst [vmem:[#allocation104_spill] sm:$0xff] %v13164_v20  ;;  %v10209_v30 = vpop.f32.mrb[153].mxu1  ;;  %v14507_v20 = vld [vmem:[#allocation60_spill] sm:$0xff] }
 0x592   : > { %v5143_v53 = vpop.f32.mrb[154].mxu1  ;;  %v14483_v30 = vld [vmem:[#allocation95_spill] sm:$0xff] }
 0x593   : > { %v10210_v19 = vpop.f32.mrb[155].mxu1  ;;  %v4515_v53 = vsub.f32 %v14483_v30, %v12958_v29 }
 0x59c   : > { %6682 = vrot.lane.b32.xlu1 %v14477_v48, %s10954_s20 }
 0x59f   : > { %v13168_v10 = vpop.f32.mrb[140].mxu0 }
 0x5a0   : > { %14478 = vst [vmem:[#allocation98_spill] sm:$0xff] %v13168_v10  ;;  %v13170_v33 = vpop.f32.mrb[156].mxu1  ;;  %v10215_v5 = vpop.f32.mrb[141].mxu0 }
 0x5a1   : > { %14479 = vst [vmem:[#allocation18_spill] sm:$0xff] %v13170_v33  ;;  %v10221_v27 = vpop.f32.mrb[157].mxu1  ;;  %v5191_v52 = vpop.f32.mrb[142].mxu0  ;;  %6730 = vrot.lane.b32.xlu0 %v14480_v13, %s10954_s20  ;;  %v14484_v5 = vld [vmem:[#allocation50_spill] sm:$0xff]  ;;  %v4952_v13 = vmul.f32 %v10836_v4, %v12817_v39 }
 0x5a2   : > { %v5239_v23 = vpop.f32.mrb[158].mxu1  ;;  %v10216_v47 = vpop.f32.mrb[143].mxu0  ;;  %v4516_v27 = vsub.f32 %v14484_v5, %v12956_v41 }
 0x5a3   : > { %v10222_v26 = vpop.f32.mrb[159].mxu1  ;;  %v13174_v17 = vpop.xlane.xlu1 %4456  ;;  %v4951_v47 = vmul.f32 %v10834_v34, %v12822_v28  ;;  %v5016_v41 = vpack.c.bf16 %v4952_v13, %v4952_v13 }
 0x5a4   : > { %v13176_v21 = vpop.xlane.xlu0 %4459  ;;  %v4623_v29 = vmul.f32 1.442695, %v4516_v27 }
 0x5a7   : > { %v13178_v9 = vpop.f32.mrb[144].mxu0  ;;  %v13180_v1 = vpop.xlane.xlu1 %4774 }
 0x5a8   : > { %14481 = vst [vmem:[#allocation20_spill] sm:$0xff] %v13178_v9  ;;  %v13182_v18 = vpop.f32.mrb[160].mxu1  ;;  %v13184_v7 = vpop.xlane.xlu0 %4777 }
 0x5a9   : > { %14482 = vst [vmem:[#allocation23_spill] sm:$0xff] %v13182_v18  ;;  %v10227_v3 = vpop.f32.mrb[145].mxu0  ;;  %v10233_v58 = vpop.f32.mrb[161].mxu1 }
 0x5aa   : > { %v5287_v19 = vpop.f32.mrb[146].mxu0  ;;  %v5335_v48 = vpop.f32.mrb[162].mxu1  ;;  %v4621_v58 = vmul.f32 1.442695, %v4515_v53 }
 0x5ab   : > { %v10228_v52 = vpop.f32.mrb[147].mxu0  ;;  %v10234_v23 = vpop.f32.mrb[163].mxu1  ;;  %v5015_v19 = vpack.c.bf16 %v4951_v47, %v4951_v47 }
 0x5ac   : > { %v6491_v26 = vpop.permute.xlu1 %6490  ;;  %v6539_v9 = vpop.permute.xlu0 %6538  ;;  %10837 = vpow2.f32 %v4621_v58 }
 0x5ad   : > { %v6496_v18 = vsel %vm5054_vm6, %v6491_v26, 0  ;;  %v6544_v3 = vsel %vm5054_vm6, %v6539_v9, 0  ;;  %10839 = vpow2.f32 %v4623_v29 }
 0x5ae   : > { %10380 = vmatpush3.bf16.msra.mxu0 %v6496_v18  ;;  %10386 = vmatpush3.bf16.msra.mxu1 %v6544_v3  ;;  %10841 = vrcp.f32 %v13118_v2 }
 0x5af   : > { %v13194_v30 = vpop.f32.mrb[148].mxu0  ;;  %10391 = vmatprep.subr.bf16.mxu0 %v14304_v12  ;;  %10397 = vmatprep.subr.bf16.mxu1 %v14304_v12  ;;  %10843 = vrcp.f32 %v13116_v37 }
 0x5b0   : > { %14485 = vst [vmem:[#allocation37_spill] sm:$0xff] %v13194_v30  ;;  %v13198_v28 = vpop.f32.mrb[164].mxu1  ;;  %v10239_v39 = vpop.f32.mrb[149].mxu0 }
 0x5b1   : > { %14486 = vst [vmem:[#allocation22_spill] sm:$0xff] %v13198_v28  ;;  %v10245_v34 = vpop.f32.mrb[165].mxu1  ;;  %10382 = vmatmul.mubr.msk.bf16.vlgmr.msra.gmra.mrb[196].mxu0 %vm1114_vm5, %v5015_v19  ;;  %10388 = vmatmul.mubr.msk.bf16.vlgmr.msra.gmra.mrb[212].mxu1 %vm1114_vm5, %v5016_v41  ;;  %v5383_v9 = vpop.f32.mrb[150].mxu0 }
 0x5b2   : > { %v5431_v4 = vpop.f32.mrb[166].mxu1  ;;  %v10240_v18 = vpop.f32.mrb[151].mxu0  ;;  %10393 = vmatprep.mubr.msk.bf16.mxu0 %vm10959_vm4, %v14304_v12  ;;  %10399 = vmatprep.mubr.msk.bf16.mxu1 %vm10959_vm4, %v14304_v12 }
 0x5b3   : > { %v10246_v53 = vpop.f32.mrb[167].mxu1 }
 0x5b6   : > { %v13210_v3 = vpop.eup %10837 }
 0x5b7   : > { %v13206_v48 = vpop.f32.mrb[152].mxu0  ;;  %v13212_v58 = vpop.eup %10839  ;;  %v4791_v29 = vsel %vm1114_vm5, %v13210_v3, 0.0 }
 0x5b8   : > { %14487 = vst [vmem:[#allocation35_spill] sm:$0xff] %v13206_v48  ;;  %v13208_v5 = vpop.f32.mrb[168].mxu1  ;;  %v10251_v27 = vpop.f32.mrb[153].mxu0  ;;  %v4794_v34 = vsel %vm1114_vm5, %v13212_v58, 0.0 }
 0x5b9   : > { %14488 = vst [vmem:[#allocation40_spill] sm:$0xff] %v13208_v5  ;;  %v10257_v52 = vpop.f32.mrb[169].mxu1  ;;  %v5479_v23 = vpop.f32.mrb[154].mxu0 }
 0x5ba   : > { %v5527_v47 = vpop.f32.mrb[170].mxu1  ;;  %v10252_v13 = vpop.f32.mrb[155].mxu0 }
 0x5bb   : > { %v10258_v26 = vpop.f32.mrb[171].mxu1 }
 0x5bf   : > { %v13214_v19 = vpop.f32.mrb[156].mxu0 }
 0x5c0   : > { %14489 = vst [vmem:[#allocation54_spill] sm:$0xff] %v13214_v19  ;;  %v13218_v41 = vpop.f32.mrb[172].mxu1  ;;  %v10263_v39 = vpop.f32.mrb[157].mxu0  ;;  %4792 = vadd.xlane.f32.xlu1 %v4791_v29  ;;  %4795 = vadd.xlane.f32.xlu0 %v4794_v34 }
 0x5c1   : > { %14490 = vst [vmem:[#allocation36_spill] sm:$0xff] %v13218_v41  ;;  %v10269_v9 = vpop.f32.mrb[173].mxu1  ;;  %v5575_v4 = vpop.f32.mrb[158].mxu0 }
 0x5c2   : > { %v5623_v18 = vpop.f32.mrb[174].mxu1  ;;  %v10264_v53 = vpop.f32.mrb[159].mxu0 }
 0x5c3   : > { %v10270_v27 = vpop.f32.mrb[175].mxu1  ;;  %v14495_v18 = vld [vmem:[#allocation45_spill] sm:$0xff] }
 0x5c7   : > { %v13222_v52 = vpop.f32.mrb[160].mxu0 }
 0x5c8   : > { %14491 = vst [vmem:[#allocation89_spill] sm:$0xff] %v13222_v52  ;;  %v13224_v23 = vpop.f32.mrb[176].mxu1  ;;  %v10275_v47 = vpop.f32.mrb[161].mxu0 }
 0x5c9   : > { %14492 = vst [vmem:[#allocation38_spill] sm:$0xff] %v13224_v23  ;;  %v10281_v13 = vpop.f32.mrb[177].mxu1  ;;  %v5671_v26 = vpop.f32.mrb[162].mxu0 }
 0x5ca   : > { %v5719_v19 = vpop.f32.mrb[178].mxu1  ;;  %v10276_v41 = vpop.f32.mrb[163].mxu0  ;;  %v14497_v26 = vld [vmem:[#allocation44_spill] sm:$0xff] }
 0x5cb   : > { %v10282_v39 = vpop.f32.mrb[179].mxu1  ;;  %v14496_v19 = vld [vmem:[#allocation47_spill] sm:$0xff]  ;;  %v10842_v13 = vpop.eup %10841 }
 0x5cc   : > { %v4517_v39 = vsub.f32 %v14497_v26, %v12962_v51  ;;  %v4953_v37 = vmul.f32 %v10842_v13, %v12846_v57  ;;  %v14499_v13 = vld [vmem:[#allocation39_spill] sm:$0xff] }
 0x5ce   : > { %v5017_v26 = vpack.c.bf16 %v4953_v37, %v4953_v37 }
 0x5cf   : > { %v13226_v29 = vpop.f32.mrb[164].mxu0 }
 0x5d0   : > { %14493 = vst [vmem:[#allocation51_spill] sm:$0xff] %v13226_v29  ;;  %v13228_v5 = vpop.f32.mrb[180].mxu1  ;;  %v10287_v9 = vpop.f32.mrb[165].mxu0 }
 0x5d1   : > { %14494 = vst [vmem:[#allocation58_spill] sm:$0xff] %v13228_v5  ;;  %v10293_v4 = vpop.f32.mrb[181].mxu1  ;;  %v5767_v34 = vpop.f32.mrb[166].mxu0  ;;  %6778 = vrot.lane.b32.xlu1 %v14495_v18, %s10954_s20  ;;  %v4625_v18 = vmul.f32 1.442695, %v4517_v39 }
 0x5d2   : > { %v5815_v53 = vpop.f32.mrb[182].mxu1  ;;  %v10288_v27 = vpop.f32.mrb[167].mxu0 }
 0x5d3   : > { %v10294_v52 = vpop.f32.mrb[183].mxu1  ;;  %v10844_v4 = vpop.eup %10843  ;;  %10845 = vpow2.f32 %v4625_v18 }
 0x5d4   : > { %v14498_v52 = vld [vmem:[#allocation48_spill] sm:$0xff]  ;;  %v4954_v27 = vmul.f32 %v10844_v4, %v12841_v42 }
 0x5d5   : > { %v4518_v34 = vsub.f32 %v14498_v52, %v12960_v11 }
 0x5d6   : > { %6826 = vrot.lane.b32.xlu0 %v14496_v19, %s10954_s20  ;;  %v5018_v11 = vpack.c.bf16 %v4954_v27, %v4954_v27 }
 0x5d7   : > { %v4627_v19 = vmul.f32 1.442695, %v4518_v34 }
 0x5d9   : > { %10847 = vpow2.f32 %v4627_v19  ;;  %v14500_v19 = vld [vmem:[#allocation42_spill] sm:$0xff] }
 0x5da   : > { %10849 = vrcp.f32 %v13124_v61 }
 0x5db   : > { %v13236_v41 = vpop.xlane.xlu1 %4462  ;;  %v13238_v47 = vpop.xlane.xlu0 %4465  ;;  %10851 = vrcp.f32 %v13122_v0 }
 0x5dd   : > { %v13260_v42 = vpop.eup %10845 }
 0x5df   : > { %v13242_v9 = vpop.xlane.xlu1 %4780  ;;  %v13246_v2 = vpop.xlane.xlu0 %4783 }
 0x5e3   : > { %v6587_v53 = vpop.permute.xlu1 %6586  ;;  %v6635_v29 = vpop.permute.xlu0 %6634 }
 0x5e4   : > { %v6592_v5 = vsel %vm5054_vm6, %v6587_v53, 0  ;;  %v6640_v51 = vsel %vm5054_vm6, %v6635_v29, 0  ;;  %v13262_v57 = vpop.eup %10847 }
 0x5e5   : > { %10392 = vmatpush3.bf16.msra.mxu0 %v6592_v5  ;;  %10398 = vmatpush3.bf16.msra.mxu1 %v6640_v51  ;;  %v4797_v5 = vsel %vm1114_vm5, %v13260_v42, 0.0  ;;  %v4800_v29 = vsel %vm1114_vm5, %v13262_v57, 0.0 }
 0x5e6   : > { %10403 = vmatprep.subr.bf16.mxu0 %v14304_v12  ;;  %10409 = vmatprep.subr.bf16.mxu1 %v14304_v12 }
 0x5e8   : > { %10394 = vmatmul.mubr.msk.bf16.vlgmr.msra.gmra.mrb[200].mxu0 %vm1114_vm5, %v5017_v26  ;;  %10400 = vmatmul.mubr.msk.bf16.vlgmr.msra.gmra.mrb[216].mxu1 %vm1114_vm5, %v5018_v11 }
 0x5e9   : > { %10405 = vmatprep.mubr.msk.bf16.mxu0 %vm10959_vm4, %v14304_v12  ;;  %10411 = vmatprep.mubr.msk.bf16.mxu1 %vm10959_vm4, %v14304_v12 }
 0x5f5   : > { %4798 = vadd.xlane.f32.xlu1 %v4797_v5  ;;  %4801 = vadd.xlane.f32.xlu0 %v4800_v29 }
 0x606   : > { %6874 = vrot.lane.b32.xlu1 %v14499_v13, %s10954_s20  ;;  %v13270_v39 = vpop.f32.mrb[168].mxu0 }
 0x607   : > { %v13272_v4 = vpop.f32.mrb[184].mxu1  ;;  %v10299_v52 = vpop.f32.mrb[169].mxu0 }
 0x608   : > { %v10305_v34 = vpop.f32.mrb[185].mxu1  ;;  %v5863_v37 = vpop.f32.mrb[170].mxu0 }
 0x609   : > { %v5911_v18 = vpop.f32.mrb[186].mxu1  ;;  %v10300_v53 = vpop.f32.mrb[171].mxu0  ;;  %v14501_v37 = vld [vmem:[#allocation97_spill] sm:$0xff] }
 0x60a   : > { %v10306_v27 = vpop.f32.mrb[187].mxu1  ;;  %v4519_v18 = vsub.f32 %v14501_v37, %v12966_v24 }
 0x60b   : > { %6922 = vrot.lane.b32.xlu0 %v14500_v19, %s10954_s20  ;;  %v14502_v27 = vld [vmem:[#allocation100_spill] sm:$0xff] }
 0x60c   : > { %v4520_v19 = vsub.f32 %v14502_v27, %v12964_v8 }
 0x60e   : > { %v13276_v51 = vpop.f32.mrb[172].mxu0 }
 0x60f   : > { %v13279_v26 = vpop.f32.mrb[188].mxu1  ;;  %v10311_v11 = vpop.f32.mrb[173].mxu0 }
 0x610   : > { %v10317_v5 = vpop.f32.mrb[189].mxu1  ;;  %v5959_v29 = vpop.f32.mrb[174].mxu0  ;;  %v4629_v11 = vmul.f32 1.442695, %v4519_v18 }
 0x611   : > { %v6007_v13 = vpop.f32.mrb[190].mxu1  ;;  %v10312_v52 = vpop.f32.mrb[175].mxu0  ;;  %v4631_v5 = vmul.f32 1.442695, %v4520_v19 }
 0x612   : > { %v10318_v34 = vpop.f32.mrb[191].mxu1  ;;  %v10850_v52 = vpop.eup %10849  ;;  %10853 = vpow2.f32 %v4629_v11 }
 0x613   : > { %v10852_v37 = vpop.eup %10851  ;;  %10855 = vpow2.f32 %v4631_v5  ;;  %v4955_v27 = vmul.f32 %v10850_v52, %v12872_v16 }
 0x614   : > { %v13284_v53 = vpop.xlane.xlu1 %4468  ;;  %v13288_v23 = vpop.xlane.xlu0 %4471  ;;  %v4956_v33 = vmul.f32 %v10852_v37, %v12867_v50  ;;  %10857 = vrcp.f32 %v13180_v1 }
 0x615   : > { %v5019_v5 = vpack.c.bf16 %v4955_v27, %v4955_v27  ;;  %10859 = vrcp.f32 %v13184_v7 }
 0x616   : > { %v13290_v61 = vpop.f32.mrb[176].mxu0  ;;  %v5020_v50 = vpack.c.bf16 %v4956_v33, %v4956_v33 }
 0x617   : > { %v13292_v48 = vpop.f32.mrb[192].mxu1  ;;  %v10323_v0 = vpop.f32.mrb[177].mxu0 }
 0x618   : > { %v10329_v29 = vpop.f32.mrb[193].mxu1  ;;  %v6055_v13 = vpop.f32.mrb[178].mxu0 }
 0x619   : > { %v13294_v34 = vpop.xlane.xlu1 %4786  ;;  %v6103_v24 = vpop.f32.mrb[194].mxu1 }
 0x61a   : > { %v13296_v28 = vpop.xlane.xlu0 %4789  ;;  %v10324_v30 = vpop.f32.mrb[179].mxu0 }
 0x61b   : > { %v10330_v8 = vpop.f32.mrb[195].mxu1 }
 0x61d   : > { %v6683_v18 = vpop.permute.xlu1 %6682 }
 0x61e   : > { %v6688_v19 = vsel %vm5054_vm6, %v6683_v18, 0  ;;  %v6731_v0 = vpop.permute.xlu0 %6730  ;;  %v13301_v29 = vpop.f32.mrb[180].mxu0 }
 0x61f   : > { %v6736_v13 = vsel %vm5054_vm6, %v6731_v0, 0  ;;  %v13304_v24 = vpop.f32.mrb[196].mxu1  ;;  %10404 = vmatpush3.bf16.msra.mxu0 %v6688_v19  ;;  %v10335_v10 = vpop.f32.mrb[181].mxu0 }
 0x620   : > { %10410 = vmatpush3.bf16.msra.mxu1 %v6736_v13  ;;  %v10341_v30 = vpop.f32.mrb[197].mxu1  ;;  %v6151_v11 = vpop.f32.mrb[182].mxu0  ;;  %10415 = vmatprep.subr.bf16.mxu0 %v14304_v12 }
 0x621   : > { %v6199_v16 = vpop.f32.mrb[198].mxu1  ;;  %v10336_v52 = vpop.f32.mrb[183].mxu0  ;;  %10421 = vmatprep.subr.bf16.mxu1 %v14304_v12 }
 0x622   : > { %v10342_v37 = vpop.f32.mrb[199].mxu1  ;;  %10406 = vmatmul.mubr.msk.bf16.vlgmr.msra.gmra.mrb[204].mxu0 %vm1114_vm5, %v5019_v5  ;;  %v13314_v10 = vpop.eup %10853 }
 0x623   : > { %10412 = vmatmul.mubr.msk.bf16.vlgmr.msra.gmra.mrb[220].mxu1 %vm1114_vm5, %v5020_v50  ;;  %10417 = vmatprep.mubr.msk.bf16.mxu0 %vm10959_vm4, %v14304_v12  ;;  %v13316_v8 = vpop.eup %10855  ;;  %v4803_v13 = vsel %vm1114_vm5, %v13314_v10, 0.0 }
 0x624   : > { %10423 = vmatprep.mubr.msk.bf16.mxu1 %vm10959_vm4, %v14304_v12  ;;  %v4806_v5 = vsel %vm1114_vm5, %v13316_v8, 0.0 }
 0x626   : > { %v13318_v27 = vpop.f32.mrb[184].mxu0 }
 0x627   : > { %14503 = vst [vmem:[#allocation79_spill] sm:$0xff] %v13318_v27  ;;  %v13320_v33 = vpop.f32.mrb[200].mxu1  ;;  %v10347_v18 = vpop.f32.mrb[185].mxu0 }
 0x628   : > { %14504 = vst [vmem:[#allocation73_spill] sm:$0xff] %v13320_v33  ;;  %v10353_v19 = vpop.f32.mrb[201].mxu1  ;;  %v6247_v0 = vpop.f32.mrb[186].mxu0 }
 0x629   : > { %v6295_v30 = vpop.f32.mrb[202].mxu1  ;;  %v10348_v11 = vpop.f32.mrb[187].mxu0 }
 0x62a   : > { %4804 = vadd.xlane.f32.xlu1 %v4803_v13  ;;  %v10354_v16 = vpop.f32.mrb[203].mxu1  ;;  %4807 = vadd.xlane.f32.xlu0 %v4806_v5  ;;  %v14508_v13 = vld [vmem:[#allocation63_spill] sm:$0xff]  ;;  %v14510_v11 = vld [vmem:[#allocation76_spill] sm:$0xff] }
 0x62b   : > { %v4521_v5 = vsub.f32 %v14510_v11, %v12978_v15 }
 0x62d   : > { %v4633_v1 = vmul.f32 1.442695, %v4521_v5 }
 0x62e   : > { %v13326_v52 = vpop.f32.mrb[188].mxu0 }
 0x62f   : > { %14505 = vst [vmem:[#allocation56_spill] sm:$0xff] %v13326_v52  ;;  %v13328_v50 = vpop.f32.mrb[204].mxu1  ;;  %v10359_v37 = vpop.f32.mrb[189].mxu0  ;;  %10861 = vpow2.f32 %v4633_v1 }
 0x630   : > { %14506 = vst [vmem:[#allocation75_spill] sm:$0xff] %v13328_v50  ;;  %v10365_v33 = vpop.f32.mrb[205].mxu1  ;;  %v6343_v18 = vpop.f32.mrb[190].mxu0 }
 0x631   : > { %v6391_v19 = vpop.f32.mrb[206].mxu1  ;;  %v10360_v0 = vpop.f32.mrb[191].mxu0 }
 0x632   : > { %v10366_v27 = vpop.f32.mrb[207].mxu1  ;;  %v10858_v50 = vpop.eup %10857 }
 0x633   : > { %v14511_v27 = vld [vmem:[#allocation105_spill] sm:$0xff]  ;;  %v10860_v7 = vpop.eup %10859  ;;  %v4957_v15 = vmul.f32 %v10858_v50, %v12986_v38 }
 0x634   : > { %v4522_v37 = vsub.f32 %v14511_v27, %v12976_v59 }
 0x635   : > { %v5021_v5 = vpack.c.bf16 %v4957_v15, %v4957_v15 }
 0x63b   : > { %6970 = vrot.lane.b32.xlu1 %v14507_v20, %s10954_s20 }
 0x640   : > { %7018 = vrot.lane.b32.xlu0 %v14508_v13, %s10954_s20 }
 0x648   : > { %v13336_v30 = vpop.f32.mrb[208].mxu1 }
 0x649   : > { %14509 = vst [vmem:[#allocation74_spill] sm:$0xff] %v13336_v30  ;;  %v13340_v33 = vpop.f32.mrb[192].mxu0  ;;  %v10377_v16 = vpop.f32.mrb[209].mxu1  ;;  %v4635_v30 = vmul.f32 1.442695, %v4522_v37 }
 0x64a   : > { %v10371_v18 = vpop.f32.mrb[193].mxu0  ;;  %v6487_v20 = vpop.f32.mrb[210].mxu1  ;;  %v4958_v16 = vmul.f32 %v10860_v7, %v12980_v60 }
 0x64b   : > { %v6439_v19 = vpop.f32.mrb[194].mxu0  ;;  %v10378_v0 = vpop.f32.mrb[211].mxu1  ;;  %10863 = vpow2.f32 %v4635_v30  ;;  %v14512_v20 = vld [vmem:[#allocation52_spill] sm:$0xff] }
 0x64c   : > { %v10372_v13 = vpop.f32.mrb[195].mxu0  ;;  %v5022_v37 = vpack.c.bf16 %v4958_v16, %v4958_v16  ;;  %v13360_v60 = vpop.eup %10861  ;;  %v14513_v19 = vld [vmem:[#allocation57_spill] sm:$0xff]  ;;  %10865 = vrcp.f32 %v13242_v9  ;;  %v4523_v0 = vsub.f32 %v12671_v43, %v12990_v56 }
 0x64d   : > { %v13344_v52 = vpop.xlane.xlu1 %4792  ;;  %v13346_v44 = vpop.xlane.xlu0 %4795  ;;  %v4809_v50 = vsel %vm1114_vm5, %v13360_v60, 0.0  ;;  %10867 = vrcp.f32 %v13246_v2  ;;  %v4524_v13 = vsub.f32 %v12667_v35, %v12988_v6 }
 0x64e   : > { %v4637_v1 = vmul.f32 1.442695, %v4523_v0 }
 0x650   : > { %10869 = vpow2.f32 %v4637_v1 }
 0x651   : > { %v6779_v11 = vpop.permute.xlu1 %6778  ;;  %v6827_v27 = vpop.permute.xlu0 %6826 }
 0x652   : > { %v6784_v59 = vsel %vm5054_vm6, %v6779_v11, 0  ;;  %v6832_v18 = vsel %vm5054_vm6, %v6827_v27, 0  ;;  %v4639_v11 = vmul.f32 1.442695, %v4524_v13 }
 0x653   : > { %10416 = vmatpush3.bf16.msra.mxu0 %v6784_v59  ;;  %10422 = vmatpush3.bf16.msra.mxu1 %v6832_v18 }
 0x654   : > { %10427 = vmatprep.subr.bf16.mxu0 %v14304_v12  ;;  %10433 = vmatprep.subr.bf16.mxu1 %v14304_v12  ;;  %10871 = vpow2.f32 %v4639_v11  ;;  %v14514_v11 = vld [vmem:[#allocation77_spill] sm:$0xff] }
 0x655   : > { %v13362_v38 = vpop.eup %10863  ;;  %10873 = vrcp.f32 %v13294_v34 }
 0x656   : > { %10418 = vmatmul.mubr.msk.bf16.vlgmr.msra.gmra.mrb[208].mxu0 %vm1114_vm5, %v5021_v5  ;;  %10424 = vmatmul.mubr.msk.bf16.vlgmr.msra.gmra.mrb[224].mxu1 %vm1114_vm5, %v5022_v37  ;;  %v4812_v30 = vsel %vm1114_vm5, %v13362_v38, 0.0  ;;  %v10866_v15 = vpop.eup %10865  ;;  %10875 = vrcp.f32 %v13296_v28 }
 0x657   : > { %10429 = vmatprep.mubr.msk.bf16.mxu0 %vm10959_vm4, %v14304_v12  ;;  %10435 = vmatprep.mubr.msk.bf16.mxu1 %vm10959_vm4, %v14304_v12  ;;  %v10868_v59 = vpop.eup %10867  ;;  %v4959_v6 = vmul.f32 %v10866_v15, %v13072_v40 }
 0x658   : > { %v4960_v37 = vmul.f32 %v10868_v59, %v13077_v62  ;;  %v14515_v59 = vld [vmem:[#allocation78_spill] sm:$0xff] }
 0x659   : > { %v5023_v0 = vpack.c.bf16 %v4959_v6, %v4959_v6 }
 0x65a   : > { %v5024_v13 = vpack.c.bf16 %v4960_v37, %v4960_v37  ;;  %v13398_v40 = vpop.eup %10869 }
 0x65b   : > { %v4815_v1 = vsel %vm1114_vm5, %v13398_v40, 0.0 }
 0x65e   : > { %v13400_v62 = vpop.eup %10871 }
 0x65f   : > { %4810 = vadd.xlane.f32.xlu1 %v4809_v50  ;;  %4813 = vadd.xlane.f32.xlu0 %v4812_v30  ;;  %v4818_v15 = vsel %vm1114_vm5, %v13400_v62, 0.0 }
 0x670   : > { %7066 = vrot.lane.b32.xlu1 %v14512_v20, %s10954_s20 }
 0x675   : > { %7114 = vrot.lane.b32.xlu0 %v14513_v19, %s10954_s20 }
 0x682   : > { %v13378_v7 = vpop.xlane.xlu1 %4798  ;;  %v13380_v16 = vpop.xlane.xlu0 %4801 }
 0x684   : > { %v13382_v27 = vpop.f32.mrb[196].mxu0  ;;  %v13384_v18 = vpop.f32.mrb[212].mxu1 }
 0x685   : > { %v10383_v9 = vpop.f32.mrb[197].mxu0  ;;  %v10389_v2 = vpop.f32.mrb[213].mxu1 }
 0x686   : > { %v6535_v5 = vpop.f32.mrb[198].mxu0  ;;  %v6583_v43 = vpop.f32.mrb[214].mxu1  ;;  %v4525_v9 = vsub.f32 %v12685_v32, %v12998_v36  ;;  %v14516_v2 = vld [vmem:[#allocation106_spill] sm:$0xff] }
 0x687   : > { %v10384_v56 = vpop.f32.mrb[199].mxu0  ;;  %v10390_v35 = vpop.f32.mrb[215].mxu1  ;;  %v4526_v5 = vsub.f32 %v14516_v2, %v12996_v22 }
 0x688   : > { %v6875_v50 = vpop.permute.xlu1 %6874  ;;  %v6923_v30 = vpop.permute.xlu0 %6922  ;;  %v4641_v56 = vmul.f32 1.442695, %v4525_v9 }
 0x689   : > { %v6880_v20 = vsel %vm5054_vm6, %v6875_v50, 0  ;;  %v6928_v19 = vsel %vm5054_vm6, %v6923_v30, 0  ;;  %v10874_v43 = vpop.eup %10873  ;;  %v4643_v37 = vmul.f32 1.442695, %v4526_v5 }
 0x68a   : > { %10428 = vmatpush3.bf16.msra.mxu0 %v6880_v20  ;;  %10434 = vmatpush3.bf16.msra.mxu1 %v6928_v19  ;;  %v10876_v6 = vpop.eup %10875  ;;  %v4961_v30 = vmul.f32 %v10874_v43, %v13152_v31  ;;  %10877 = vpow2.f32 %v4641_v56  ;;  %v14517_v56 = vld [vmem:[#allocation68_spill] sm:$0xff] }
 0x68b   : > { %10439 = vmatprep.subr.bf16.mxu0 %v14304_v12  ;;  %10445 = vmatprep.subr.bf16.mxu1 %v14304_v12  ;;  %v4962_v20 = vmul.f32 %v10876_v6, %v13156_v49  ;;  %10879 = vpow2.f32 %v4643_v37  ;;  %v14518_v6 = vld [vmem:[#allocation69_spill] sm:$0xff]  ;;  %v14519_v37 = vld [vmem:[#allocation103_spill] sm:$0xff] }
 0x68c   : > { %v5025_v31 = vpack.c.bf16 %v4961_v30, %v4961_v30  ;;  %10881 = vrcp.f32 %v13344_v52  ;;  %v4527_v30 = vsub.f32 %v14519_v37, %v13002_v25 }
 0x68d   : > { %10430 = vmatmul.mubr.msk.bf16.vlgmr.msra.gmra.mrb[212].mxu0 %vm1114_vm5, %v5023_v0  ;;  %10436 = vmatmul.mubr.msk.bf16.vlgmr.msra.gmra.mrb[228].mxu1 %vm1114_vm5, %v5024_v13  ;;  %v5026_v49 = vpack.c.bf16 %v4962_v20, %v4962_v20  ;;  %10883 = vrcp.f32 %v13346_v44  ;;  %v14521_v20 = vld [vmem:[#allocation72_spill] sm:$0xff] }
 0x68e   : > { %10441 = vmatprep.mubr.msk.bf16.mxu0 %vm10959_vm4, %v14304_v12  ;;  %10447 = vmatprep.mubr.msk.bf16.mxu1 %vm10959_vm4, %v14304_v12 }
 0x694   : > { %4816 = vadd.xlane.f32.xlu1 %v4815_v1  ;;  %4819 = vadd.xlane.f32.xlu0 %v4818_v15  ;;  %v13436_v9 = vpop.eup %10877 }
 0x695   : > { %v13438_v2 = vpop.eup %10879  ;;  %v4821_v5 = vsel %vm1114_vm5, %v13436_v9, 0.0 }
 0x696   : > { %v4824_v43 = vsel %vm1114_vm5, %v13438_v2, 0.0 }
 0x6a5   : > { %7162 = vrot.lane.b32.xlu1 %v14514_v11, %s10954_s20 }
 0x6aa   : > { %7210 = vrot.lane.b32.xlu0 %v14515_v59, %s10954_s20 }
 0x6b7   : > { %v13416_v35 = vpop.xlane.xlu1 %4804  ;;  %v13418_v50 = vpop.xlane.xlu0 %4807 }
 0x6bb   : > { %v13421_v34 = vpop.f32.mrb[200].mxu0  ;;  %v6971_v28 = vpop.permute.xlu1 %6970 }
 0x6bc   : > { %v6976_v32 = vsel %vm5054_vm6, %v6971_v28, 0  ;;  %v13425_v22 = vpop.f32.mrb[216].mxu1  ;;  %v7019_v36 = vpop.permute.xlu0 %7018  ;;  %v14520_v28 = vld [vmem:[#allocation96_spill] sm:$0xff] }
 0x6bd   : > { %v7024_v19 = vsel %vm5054_vm6, %v7019_v36, 0  ;;  %v10395_v0 = vpop.f32.mrb[201].mxu0  ;;  %v10401_v13 = vpop.f32.mrb[217].mxu1  ;;  %10440 = vmatpush3.bf16.msra.mxu0 %v6976_v32  ;;  %v4528_v32 = vsub.f32 %v14521_v20, %v14520_v28 }
 0x6be   : > { %v6631_v1 = vpop.f32.mrb[202].mxu0  ;;  %v6679_v15 = vpop.f32.mrb[218].mxu1  ;;  %10446 = vmatpush3.bf16.msra.mxu1 %v7024_v19  ;;  %10451 = vmatprep.subr.bf16.mxu0 %v14304_v12  ;;  %v4645_v19 = vmul.f32 1.442695, %v4527_v30 }
 0x6bf   : > { %v10396_v11 = vpop.f32.mrb[203].mxu0  ;;  %v10402_v59 = vpop.f32.mrb[219].mxu1  ;;  %10457 = vmatprep.subr.bf16.mxu1 %v14304_v12  ;;  %v4647_v1 = vmul.f32 1.442695, %v4528_v32 }
 0x6c0   : > { %10442 = vmatmul.mubr.msk.bf16.vlgmr.msra.gmra.mrb[216].mxu0 %vm1114_vm5, %v5025_v31  ;;  %v10882_v36 = vpop.eup %10881  ;;  %10885 = vpow2.f32 %v4645_v19 }
 0x6c1   : > { %10448 = vmatmul.mubr.msk.bf16.vlgmr.msra.gmra.mrb[232].mxu1 %vm1114_vm5, %v5026_v49  ;;  %10453 = vmatprep.mubr.msk.bf16.mxu0 %vm10959_vm4, %v14304_v12  ;;  %v10884_v13 = vpop.eup %10883  ;;  %v4963_v31 = vmul.f32 %v10882_v36, %v13210_v3  ;;  %10887 = vpow2.f32 %v4647_v1  ;;  %v14523_v1 = vld [vmem:[#allocation34_spill] sm:$0xff] }
 0x6c2   : > { %10459 = vmatprep.mubr.msk.bf16.mxu1 %vm10959_vm4, %v14304_v12  ;;  %v4964_v52 = vmul.f32 %v10884_v13, %v13212_v58  ;;  %v14522_v13 = vld [vmem:[#allocation31_spill] sm:$0xff]  ;;  %10889 = vrcp.f32 %v13378_v7 }
 0x6c3   : > { %v5027_v49 = vpack.c.bf16 %v4963_v31, %v4963_v31  ;;  %10891 = vrcp.f32 %v13380_v16  ;;  %v14524_v31 = vld [vmem:[#allocation65_spill] sm:$0xff] }
 0x6c9   : > { %4822 = vadd.xlane.f32.xlu1 %v4821_v5  ;;  %4825 = vadd.xlane.f32.xlu0 %v4824_v43  ;;  %v5028_v5 = vpack.c.bf16 %v4964_v52, %v4964_v52  ;;  %v4529_v52 = vsub.f32 %v14524_v31, %v13112_v55 }
 0x6ca   : > { %v13474_v28 = vpop.eup %10885 }
 0x6cb   : > { %v13476_v32 = vpop.eup %10887  ;;  %v4827_v36 = vsel %vm1114_vm5, %v13474_v28, 0.0 }
 0x6cc   : > { %v4830_v19 = vsel %vm1114_vm5, %v13476_v32, 0.0 }
 0x6da   : > { %7258 = vrot.lane.b32.xlu1 %v14517_v56, %s10954_s20 }
 0x6df   : > { %7306 = vrot.lane.b32.xlu0 %v14518_v6, %s10954_s20 }
 0x6ec   : > { %v13454_v0 = vpop.xlane.xlu1 %4810  ;;  %v13456_v15 = vpop.xlane.xlu0 %4813 }
 0x6f0   : > { %v7067_v44 = vpop.permute.xlu1 %7066  ;;  %v7115_v11 = vpop.permute.xlu0 %7114 }
 0x6f1   : > { %v7072_v25 = vsel %vm5054_vm6, %v7067_v44, 0  ;;  %v7120_v59 = vsel %vm5054_vm6, %v7115_v11, 0  ;;  %v14525_v44 = vld [vmem:[#allocation21_spill] sm:$0xff]  ;;  %v10890_v11 = vpop.eup %10889 }
 0x6f2   : > { %10452 = vmatpush3.bf16.msra.mxu0 %v7072_v25  ;;  %10458 = vmatpush3.bf16.msra.mxu1 %v7120_v59  ;;  %v4530_v25 = vsub.f32 %v14525_v44, %v13108_v46  ;;  %v4649_v59 = vmul.f32 1.442695, %v4529_v52 }
 0x6f3   : > { %10463 = vmatprep.subr.bf16.mxu0 %v14304_v12  ;;  %10469 = vmatprep.subr.bf16.mxu1 %v14304_v12 }
 0x6f4   : > { %10893 = vpow2.f32 %v4649_v59 }
 0x6f5   : > { %10454 = vmatmul.mubr.msk.bf16.vlgmr.msra.gmra.mrb[220].mxu0 %vm1114_vm5, %v5027_v49  ;;  %v13465_v3 = vpop.f32.mrb[204].mxu0  ;;  %10460 = vmatmul.mubr.msk.bf16.vlgmr.msra.gmra.mrb[236].mxu1 %vm1114_vm5, %v5028_v5  ;;  %v10892_v5 = vpop.eup %10891 }
 0x6f6   : > { %10465 = vmatprep.mubr.msk.bf16.mxu0 %vm10959_vm4, %v14304_v12  ;;  %v13470_v58 = vpop.f32.mrb[220].mxu1  ;;  %v10407_v43 = vpop.f32.mrb[205].mxu0  ;;  %10471 = vmatprep.mubr.msk.bf16.mxu1 %vm10959_vm4, %v14304_v12  ;;  %v4966_v7 = vmul.f32 %v10892_v5, %v13262_v57  ;;  %v14526_v5 = vld [vmem:[#allocation26_spill] sm:$0xff] }
 0x6f7   : > { %v10413_v56 = vpop.f32.mrb[221].mxu1  ;;  %v6727_v6 = vpop.f32.mrb[206].mxu0  ;;  %v4651_v43 = vmul.f32 1.442695, %v4530_v25 }
 0x6f8   : > { %v6775_v37 = vpop.f32.mrb[222].mxu1  ;;  %v10408_v30 = vpop.f32.mrb[207].mxu0  ;;  %v4965_v6 = vmul.f32 %v10890_v11, %v13260_v42 }
 0x6f9   : > { %v10414_v20 = vpop.f32.mrb[223].mxu1  ;;  %10895 = vpow2.f32 %v4651_v43  ;;  %v14527_v43 = vld [vmem:[#allocation28_spill] sm:$0xff] }
 0x6fa   : > { %v5029_v30 = vpack.c.bf16 %v4965_v6, %v4965_v6  ;;  %10897 = vrcp.f32 %v13416_v35  ;;  %v14528_v6 = vld [vmem:[#allocation19_spill] sm:$0xff] }
 0x6fb   : > { %10899 = vrcp.f32 %v13418_v50 }
 0x6fe   : > { %4828 = vadd.xlane.f32.xlu1 %v4827_v36  ;;  %4831 = vadd.xlane.f32.xlu0 %v4830_v19  ;;  %v5030_v36 = vpack.c.bf16 %v4966_v7, %v4966_v7  ;;  %v13512_v44 = vpop.eup %10893  ;;  %v4531_v7 = vsub.f32 %v14528_v6, %v13174_v17 }
 0x6ff   : > { %v4833_v11 = vsel %vm1114_vm5, %v13512_v44, 0.0 }
 0x703   : > { %v13514_v25 = vpop.eup %10895 }
 0x704   : > { %v4836_v59 = vsel %vm1114_vm5, %v13514_v25, 0.0 }
 0x70f   : > { %7354 = vrot.lane.b32.xlu1 %v14522_v13, %s10954_s20 }
 0x714   : > { %7402 = vrot.lane.b32.xlu0 %v14523_v1, %s10954_s20 }
 0x721   : > { %v13492_v49 = vpop.xlane.xlu1 %4816  ;;  %v13494_v56 = vpop.xlane.xlu0 %4819 }
 0x725   : > { %v7163_v16 = vpop.permute.xlu1 %7162  ;;  %v7211_v37 = vpop.permute.xlu0 %7210 }
 0x726   : > { %v7168_v55 = vsel %vm5054_vm6, %v7163_v16, 0  ;;  %v7216_v46 = vsel %vm5054_vm6, %v7211_v37, 0  ;;  %v14529_v16 = vld [vmem:[#allocation62_spill] sm:$0xff]  ;;  %v10898_v37 = vpop.eup %10897 }
 0x727   : > { %10464 = vmatpush3.bf16.msra.mxu0 %v7168_v55  ;;  %10470 = vmatpush3.bf16.msra.mxu1 %v7216_v46  ;;  %v4532_v55 = vsub.f32 %v14529_v16, %v13176_v21  ;;  %v4653_v46 = vmul.f32 1.442695, %v4531_v7 }
 0x728   : > { %10475 = vmatprep.subr.bf16.mxu0 %v14304_v12  ;;  %10481 = vmatprep.subr.bf16.mxu1 %v14304_v12 }
 0x729   : > { %v13501_v20 = vpop.f32.mrb[208].mxu0  ;;  %v13504_v42 = vpop.f32.mrb[224].mxu1  ;;  %10901 = vpow2.f32 %v4653_v46 }
 0x72a   : > { %v10419_v57 = vpop.f32.mrb[209].mxu0  ;;  %10466 = vmatmul.mubr.msk.bf16.vlgmr.msra.gmra.mrb[224].mxu0 %vm1114_vm5, %v5029_v30  ;;  %v10425_v19 = vpop.f32.mrb[225].mxu1  ;;  %10472 = vmatmul.mubr.msk.bf16.vlgmr.msra.gmra.mrb[240].mxu1 %vm1114_vm5, %v5030_v36 }
 0x72b   : > { %v6823_v13 = vpop.f32.mrb[210].mxu0  ;;  %10477 = vmatprep.mubr.msk.bf16.mxu0 %vm10959_vm4, %v14304_v12  ;;  %v6871_v1 = vpop.f32.mrb[226].mxu1  ;;  %10483 = vmatprep.mubr.msk.bf16.mxu1 %vm10959_vm4, %v14304_v12  ;;  %v4655_v57 = vmul.f32 1.442695, %v4532_v55 }
 0x72c   : > { %v10420_v31 = vpop.f32.mrb[211].mxu0  ;;  %v10426_v52 = vpop.f32.mrb[227].mxu1  ;;  %v4967_v13 = vmul.f32 %v10898_v37, %v13314_v10 }
 0x72d   : > { %v10900_v36 = vpop.eup %10899  ;;  %10903 = vpow2.f32 %v4655_v57  ;;  %v14531_v57 = vld [vmem:[#allocation49_spill] sm:$0xff] }
 0x72e   : > { %v4968_v35 = vmul.f32 %v10900_v36, %v13316_v8  ;;  %v5031_v31 = vpack.c.bf16 %v4967_v13, %v4967_v13  ;;  %v14530_v36 = vld [vmem:[#allocation46_spill] sm:$0xff]  ;;  %10905 = vrcp.f32 %v13454_v0  ;;  %v4533_v13 = vsub.f32 %v13058_v45, %v13236_v41 }
 0x72f   : > { %10907 = vrcp.f32 %v13456_v15 }
 0x730   : > { %v5032_v52 = vpack.c.bf16 %v4968_v35, %v4968_v35  ;;  %v4534_v35 = vsub.f32 %v13062_v14, %v13238_v47 }
 0x733   : > { %4834 = vadd.xlane.f32.xlu1 %v4833_v11  ;;  %4837 = vadd.xlane.f32.xlu0 %v4836_v59  ;;  %v13550_v16 = vpop.eup %10901 }
 0x734   : > { %v4839_v37 = vsel %vm1114_vm5, %v13550_v16, 0.0 }
 0x737   : > { %v13552_v55 = vpop.eup %10903 }
 0x738   : > { %v4842_v46 = vsel %vm1114_vm5, %v13552_v55, 0.0 }
 0x744   : > { %7450 = vrot.lane.b32.xlu1 %v14526_v5, %s10954_s20 }
 0x749   : > { %7498 = vrot.lane.b32.xlu0 %v14527_v43, %s10954_s20 }
 0x756   : > { %v13530_v30 = vpop.xlane.xlu1 %4822  ;;  %v13532_v19 = vpop.xlane.xlu0 %4825 }
 0x75a   : > { %v7259_v50 = vpop.permute.xlu1 %7258  ;;  %v7307_v1 = vpop.permute.xlu0 %7306 }
 0x75b   : > { %v7264_v17 = vsel %vm5054_vm6, %v7259_v50, 0  ;;  %v7312_v21 = vsel %vm5054_vm6, %v7307_v1, 0  ;;  %v10906_v50 = vpop.eup %10905 }
 0x75c   : > { %10476 = vmatpush3.bf16.msra.mxu0 %v7264_v17  ;;  %10482 = vmatpush3.bf16.msra.mxu1 %v7312_v21  ;;  %v4657_v17 = vmul.f32 1.442695, %v4533_v13  ;;  %v10908_v21 = vpop.eup %10907 }
 0x75d   : > { %10487 = vmatprep.subr.bf16.mxu0 %v14304_v12  ;;  %10493 = vmatprep.subr.bf16.mxu1 %v14304_v12  ;;  %v4970_v0 = vmul.f32 %v10908_v21, %v13362_v38  ;;  %v4535_v21 = vsub.f32 %v13144_v63, %v13284_v53 }
 0x75e   : > { %10909 = vpow2.f32 %v4657_v17  ;;  %v14533_v17 = vld [vmem:[#allocation43_spill] sm:$0xff] }
 0x75f   : > { %10478 = vmatmul.mubr.msk.bf16.vlgmr.msra.gmra.mrb[228].mxu0 %vm1114_vm5, %v5031_v31  ;;  %10484 = vmatmul.mubr.msk.bf16.vlgmr.msra.gmra.mrb[244].mxu1 %vm1114_vm5, %v5032_v52  ;;  %v4659_v31 = vmul.f32 1.442695, %v4534_v35 }
 0x760   : > { %v13541_v10 = vpop.f32.mrb[212].mxu0  ;;  %v13543_v8 = vpop.f32.mrb[228].mxu1  ;;  %10489 = vmatprep.mubr.msk.bf16.mxu0 %vm10959_vm4, %v14304_v12  ;;  %10495 = vmatprep.mubr.msk.bf16.mxu1 %vm10959_vm4, %v14304_v12 }
 0x761   : > { %v10431_v11 = vpop.f32.mrb[213].mxu0  ;;  %v10437_v59 = vpop.f32.mrb[229].mxu1  ;;  %10911 = vpow2.f32 %v4659_v31  ;;  %v4536_v31 = vsub.f32 %v13148_v54, %v13288_v23 }
 0x762   : > { %v6919_v5 = vpop.f32.mrb[214].mxu0  ;;  %v6967_v43 = vpop.f32.mrb[230].mxu1  ;;  %v4969_v11 = vmul.f32 %v10906_v50, %v13360_v60  ;;  %v14532_v50 = vld [vmem:[#allocation41_spill] sm:$0xff]  ;;  %10913 = vrcp.f32 %v13492_v49 }
 0x763   : > { %v10432_v6 = vpop.f32.mrb[215].mxu0  ;;  %v10438_v7 = vpop.f32.mrb[231].mxu1  ;;  %v5034_v5 = vpack.c.bf16 %v4970_v0, %v4970_v0  ;;  %10915 = vrcp.f32 %v13494_v56  ;;  %v4661_v0 = vmul.f32 1.442695, %v4535_v21  ;;  %v14534_v21 = vld [vmem:[#allocation61_spill] sm:$0xff] }
 0x764   : > { %v5033_v47 = vpack.c.bf16 %v4969_v11, %v4969_v11 }
 0x765   : > { %10917 = vpow2.f32 %v4661_v0  ;;  %v14537_v0 = vld [vmem:[#allocation59_spill] sm:$0xff] }
 0x768   : > { %4840 = vadd.xlane.f32.xlu1 %v4839_v37  ;;  %4843 = vadd.xlane.f32.xlu0 %v4842_v46 }
 0x779   : > { %7546 = vrot.lane.b32.xlu1 %v14530_v36, %s10954_s20  ;;  %v13588_v36 = vpop.eup %10909 }
 0x77a   : > { %v4845_v13 = vsel %vm1114_vm5, %v13588_v36, 0.0 }
 0x77e   : > { %7594 = vrot.lane.b32.xlu0 %v14531_v57, %s10954_s20  ;;  %v13590_v57 = vpop.eup %10911 }
 0x77f   : > { %v4848_v35 = vsel %vm1114_vm5, %v13590_v57, 0.0  ;;  %v10914_v11 = vpop.eup %10913 }
 0x78b   : > { %v13568_v1 = vpop.xlane.xlu1 %4828  ;;  %v13570_v52 = vpop.xlane.xlu0 %4831 }
 0x78f   : > { %v7355_v15 = vpop.permute.xlu1 %7354  ;;  %v7403_v41 = vpop.permute.xlu0 %7402 }
 0x790   : > { %v7360_v45 = vsel %vm5054_vm6, %v7355_v15, 0  ;;  %v7408_v14 = vsel %vm5054_vm6, %v7403_v41, 0  ;;  %v4663_v41 = vmul.f32 1.442695, %v4536_v31  ;;  %v14535_v31 = vld [vmem:[#allocation55_spill] sm:$0xff] }
 0x791   : > { %10488 = vmatpush3.bf16.msra.mxu0 %v7360_v45  ;;  %10494 = vmatpush3.bf16.msra.mxu1 %v7408_v14  ;;  %v10916_v45 = vpop.eup %10915 }
 0x792   : > { %10499 = vmatprep.subr.bf16.mxu0 %v14304_v12  ;;  %10505 = vmatprep.subr.bf16.mxu1 %v14304_v12  ;;  %v4972_v49 = vmul.f32 %v10916_v45, %v13400_v62  ;;  %10919 = vpow2.f32 %v4663_v41  ;;  %v14538_v45 = vld [vmem:[#allocation81_spill] sm:$0xff]  ;;  %v14539_v41 = vld [vmem:[#allocation82_spill] sm:$0xff] }
 0x793   : > { %v13577_v59 = vpop.f32.mrb[216].mxu0  ;;  %10921 = vrcp.f32 %v13530_v30 }
 0x794   : > { %v13580_v60 = vpop.f32.mrb[232].mxu1  ;;  %v10443_v38 = vpop.f32.mrb[217].mxu0  ;;  %10490 = vmatmul.mubr.msk.bf16.vlgmr.msra.gmra.mrb[232].mxu0 %vm1114_vm5, %v5033_v47  ;;  %10496 = vmatmul.mubr.msk.bf16.vlgmr.msra.gmra.mrb[248].mxu1 %vm1114_vm5, %v5034_v5  ;;  %v4971_v47 = vmul.f32 %v10914_v11, %v13398_v40  ;;  %v14536_v11 = vld [vmem:[#allocation64_spill] sm:$0xff]  ;;  %10923 = vrcp.f32 %v13532_v19 }
 0x795   : > { %v10449_v43 = vpop.f32.mrb[233].mxu1  ;;  %v7015_v6 = vpop.f32.mrb[218].mxu0  ;;  %10501 = vmatprep.mubr.msk.bf16.mxu0 %vm10959_vm4, %v14304_v12  ;;  %10507 = vmatprep.mubr.msk.bf16.mxu1 %vm10959_vm4, %v14304_v12  ;;  %v5036_v38 = vpack.c.bf16 %v4972_v49, %v4972_v49  ;;  %v8138_v49 = vpack.c.bf16 %v13270_v39, %v13270_v39  ;;  %10925 = vrcp.f32 %v13568_v1 }
 0x796   : > { %v7063_v7 = vpop.f32.mrb[234].mxu1  ;;  %v10444_v37 = vpop.f32.mrb[219].mxu0  ;;  %v5035_v23 = vpack.c.bf16 %v4971_v47, %v4971_v47  ;;  %v14540_v47 = vld [vmem:[#allocation70_spill] sm:$0xff]  ;;  %10927 = vrcp.f32 %v13570_v52 }
 0x797   : > { %v10450_v46 = vpop.f32.mrb[235].mxu1 }
 0x79d   : > { %4846 = vadd.xlane.f32.xlu1 %v4845_v13  ;;  %4849 = vadd.xlane.f32.xlu0 %v4848_v35  ;;  %v13626_v13 = vpop.eup %10917 }
 0x79e   : > { %v13628_v35 = vpop.eup %10919 }
 0x79f   : > { %v10922_v30 = vpop.eup %10921 }
 0x7a0   : > { %v4973_v39 = vmul.f32 %v10922_v30, %v13436_v9 }
 0x7a2   : > { %v5037_v9 = vpack.c.bf16 %v4973_v39, %v4973_v39 }
 0x7ae   : > { %7642 = vrot.lane.b32.xlu1 %v14532_v50, %s10954_s20  ;;  %v4851_v50 = vsel %vm1114_vm5, %v13626_v13, 0.0 }
 0x7b3   : > { %7690 = vrot.lane.b32.xlu0 %v14533_v17, %s10954_s20  ;;  %v4854_v17 = vsel %vm1114_vm5, %v13628_v35, 0.0 }
 0x7c0   : > { %v13606_v15 = vpop.xlane.xlu1 %4834  ;;  %v13608_v14 = vpop.xlane.xlu0 %4837 }
 0x7c1   : > { %10929 = vrcp.f32 %v13606_v15 }
 0x7c2   : > { %10931 = vrcp.f32 %v13608_v14 }
 0x7c4   : > { %v7451_v56 = vpop.permute.xlu1 %7450  ;;  %v7499_v53 = vpop.permute.xlu0 %7498 }
 0x7c5   : > { %v7456_v63 = vsel %vm5054_vm6, %v7451_v56, 0  ;;  %v7504_v54 = vsel %vm5054_vm6, %v7499_v53, 0  ;;  %v14541_v56 = vld [vmem:[#allocation71_spill] sm:$0xff]  ;;  %v10924_v53 = vpop.eup %10923 }
 0x7c6   : > { %10500 = vmatpush3.bf16.msra.mxu0 %v7456_v63  ;;  %10506 = vmatpush3.bf16.msra.mxu1 %v7504_v54  ;;  %v8139_v63 = vpack.c.bf16 %v13272_v4, %v13272_v4  ;;  %v4974_v4 = vmul.f32 %v10924_v53, %v13438_v2 }
 0x7c7   : > { %10511 = vmatprep.subr.bf16.mxu0 %v14304_v12  ;;  %10517 = vmatprep.subr.bf16.mxu1 %v14304_v12 }
 0x7c8   : > { %v13615_v5 = vpop.f32.mrb[220].mxu0  ;;  %v13618_v40 = vpop.f32.mrb[236].mxu1  ;;  %v5038_v2 = vpack.c.bf16 %v4974_v4, %v4974_v4 }
 0x7c9   : > { %v10455_v62 = vpop.f32.mrb[221].mxu0  ;;  %10502 = vmatmul.mubr.msk.bf16.vlgmr.msra.gmra.mrb[236].mxu0 %vm1114_vm5, %v5035_v23  ;;  %v10461_v43 = vpop.f32.mrb[237].mxu1  ;;  %10508 = vmatmul.mubr.msk.bf16.vlgmr.msra.gmra.mrb[252].mxu1 %vm1114_vm5, %v5036_v38  ;;  %v8140_v23 = vpack.c.bf16 %v13276_v51, %v13276_v51  ;;  %v8141_v38 = vpack.c.bf16 %v13279_v26, %v13279_v26  ;;  %v8155_v26 = vpack.c.bf16 %v13425_v22, %v13425_v22 }
 0x7ca   : > { %v7111_v6 = vpop.f32.mrb[222].mxu0  ;;  %10513 = vmatprep.mubr.msk.bf16.mxu0 %vm10959_vm4, %v14304_v12  ;;  %v7159_v7 = vpop.f32.mrb[238].mxu1  ;;  %10519 = vmatprep.mubr.msk.bf16.mxu1 %vm10959_vm4, %v14304_v12 }
 0x7cb   : > { %v10456_v37 = vpop.f32.mrb[223].mxu0  ;;  %v10462_v46 = vpop.f32.mrb[239].mxu1  ;;  %v8154_v7 = vpack.c.bf16 %v13421_v34, %v13421_v34 }
 0x7d2   : > { %4852 = vadd.xlane.f32.xlu1 %v4851_v50  ;;  %4855 = vadd.xlane.f32.xlu0 %v4854_v17  ;;  %v8156_v50 = vpack.c.bf16 %v13465_v3, %v13465_v3 }
 0x7e3   : > { %7738 = vrot.lane.b32.xlu1 %v14534_v21, %s10954_s20 }
 0x7e7   : > { %7834 = vrot.lane.b32.xlu1 %v14535_v31, %s10954_s20 }
 0x7e8   : > { %7786 = vrot.lane.b32.xlu0 %v14536_v11, %s10954_s20  ;;  %v8157_v11 = vpack.c.bf16 %v13470_v58, %v13470_v58 }
 0x7eb   : > { %7882 = vrot.lane.b32.xlu1 %v14537_v0, %s10954_s20  ;;  %v10926_v0 = vpop.eup %10925 }
 0x7ec   : > { %7930 = vrot.lane.b32.xlu0 %v14538_v45, %s10954_s20 }
 0x7ef   : > { %7978 = vrot.lane.b32.xlu1 %v14539_v41, %s10954_s20  ;;  %v10928_v41 = vpop.eup %10927 }
 0x7f0   : > { %8026 = vrot.lane.b32.xlu0 %v14540_v47, %s10954_s20 }
 0x7f3   : > { %8074 = vrot.lane.b32.xlu1 %v14541_v56, %s10954_s20  ;;  %v4976_v56 = vmul.f32 %v10928_v41, %v13476_v32 }
 0x7f4   : > { %8202 = vrot.lane.b32.xlu0 %v8138_v49, %s10962_s15  ;;  %v4975_v49 = vmul.f32 %v10926_v0, %v13474_v28 }
 0x7f5   : > { %v13657_v19 = vpop.xlane.xlu1 %4840  ;;  %v13659_v54 = vpop.xlane.xlu0 %4843  ;;  %v5040_v1 = vpack.c.bf16 %v4976_v56, %v4976_v56 }
 0x7f6   : > { %10933 = vrcp.f32 %v13657_v19 }
 0x7f7   : > { %8204 = vrot.lane.b32.xlu1 %v8139_v63, %s10962_s15  ;;  %10935 = vrcp.f32 %v13659_v54 }
 0x7f8   : > { %8206 = vrot.lane.b32.xlu0 %v8140_v23, %s10962_s15  ;;  %v5039_v23 = vpack.c.bf16 %v4975_v49, %v4975_v49 }
 0x7f9   : > { %v7547_v62 = vpop.permute.xlu1 %7546  ;;  %v7595_v6 = vpop.permute.xlu0 %7594 }
 0x7fa   : > { %v7552_v43 = vsel %vm5054_vm6, %v7547_v62, 0  ;;  %v7600_v51 = vsel %vm5054_vm6, %v7595_v6, 0  ;;  %v10930_v6 = vpop.eup %10929 }
 0x7fb   : > { %10512 = vmatpush3.bf16.msra.mxu0 %v7552_v43  ;;  %8208 = vrot.lane.b32.xlu1 %v8141_v38, %s10962_s15 }
 0x7fc   : > { %10518 = vmatpush3.bf16.msra.mxu1 %v7600_v51  ;;  %10523 = vmatprep.subr.bf16.mxu0 %v14304_v12  ;;  %v10932_v51 = vpop.eup %10931 }
 0x7fd   : > { %8250 = vrot.lane.b32.xlu0 %v8154_v7, %s10963_s16  ;;  %v13678_v37 = vpop.f32.mrb[224].mxu0  ;;  %10529 = vmatprep.subr.bf16.mxu1 %v14304_v12  ;;  %v13681_v34 = vpop.f32.mrb[240].mxu1 }
 0x7fe   : > { %v10467_v46 = vpop.f32.mrb[225].mxu0  ;;  %10514 = vmatmul.mubr.msk.bf16.vlgmr.msra.gmra.mrb[240].mxu0 %vm1114_vm5, %v5037_v9  ;;  %v10473_v17 = vpop.f32.mrb[241].mxu1 }
 0x7ff   : > { %10520 = vmatmul.mubr.msk.bf16.vlgmr.msra.gmra.mrb[0].mxu1 %vm1114_vm5, %v5038_v2  ;;  %v7207_v22 = vpop.f32.mrb[226].mxu0  ;;  %8252 = vrot.lane.b32.xlu1 %v8155_v26, %s10963_s16  ;;  %v7255_v21 = vpop.f32.mrb[242].mxu1  ;;  %v4977_v26 = vmul.f32 %v10930_v6, %v13512_v44  ;;  %v4978_v2 = vmul.f32 %v10932_v51, %v13514_v25 }
 0x800   : > { %v10468_v31 = vpop.f32.mrb[227].mxu0  ;;  %10525 = vmatprep.mubr.msk.bf16.mxu0 %vm10959_vm4, %v14304_v12  ;;  %10531 = vmatprep.mubr.msk.bf16.mxu1 %vm10959_vm4, %v14304_v12  ;;  %v10474_v3 = vpop.f32.mrb[243].mxu1 }
 0x801   : > { %8254 = vrot.lane.b32.xlu0 %v8156_v50, %s10963_s16  ;;  %v5041_v14 = vpack.c.bf16 %v4977_v26, %v4977_v26  ;;  %v10934_v19 = vpop.eup %10933  ;;  %v5042_v54 = vpack.c.bf16 %v4978_v2, %v4978_v2 }
 0x802   : > { %v10936_v44 = vpop.eup %10935  ;;  %v4979_v41 = vmul.f32 %v10934_v19, %v13550_v16 }
 0x803   : > { %8256 = vrot.lane.b32.xlu1 %v8157_v11, %s10963_s16  ;;  %v4980_v56 = vmul.f32 %v10936_v44, %v13552_v55 }
 0x82a   : > { %v4847_v45 = vpop.xlane.xlu1 %4846  ;;  %v4850_v47 = vpop.xlane.xlu0 %4849 }
 0x82b   : > { %10937 = vrcp.f32 %v4847_v45 }
 0x82c   : > { %10939 = vrcp.f32 %v4850_v47 }
 0x82e   : > { %v7643_v30 = vpop.permute.xlu1 %7642  ;;  %v7691_v63 = vpop.permute.xlu0 %7690 }
 0x82f   : > { %v7648_v58 = vsel %vm5054_vm6, %v7643_v30, 0  ;;  %v7696_v53 = vsel %vm5054_vm6, %v7691_v63, 0 }
 0x830   : > { %10524 = vmatpush3.bf16.msra.mxu0 %v7648_v58  ;;  %10530 = vmatpush3.bf16.msra.mxu1 %v7696_v53 }
 0x831   : > { %10535 = vmatprep.subr.bf16.mxu0 %v14304_v12  ;;  %10541 = vmatprep.subr.bf16.mxu1 %v14304_v12 }
 0x832   : > { %v13703_v52 = vpop.f32.mrb[228].mxu0  ;;  %v13706_v39 = vpop.f32.mrb[244].mxu1 }
 0x833   : > { %v10479_v28 = vpop.f32.mrb[229].mxu0  ;;  %10526 = vmatmul.mubr.msk.bf16.vlgmr.msra.gmra.mrb[244].mxu0 %vm1114_vm5, %v5039_v23  ;;  %v10485_v32 = vpop.f32.mrb[245].mxu1  ;;  %10532 = vmatmul.mubr.msk.bf16.vlgmr.msra.gmra.mrb[4].mxu1 %vm1114_vm5, %v5040_v1  ;;  %v5043_v23 = vpack.c.bf16 %v4979_v41, %v4979_v41  ;;  %v8145_v41 = vpack.c.bf16 %v13304_v24, %v13304_v24  ;;  %v8161_v24 = vpack.c.bf16 %v13543_v8, %v13543_v8 }
 0x834   : > { %v7303_v38 = vpop.f32.mrb[230].mxu0  ;;  %10537 = vmatprep.mubr.msk.bf16.mxu0 %vm10959_vm4, %v14304_v12  ;;  %v7351_v4 = vpop.f32.mrb[246].mxu1  ;;  %10543 = vmatprep.mubr.msk.bf16.mxu1 %vm10959_vm4, %v14304_v12  ;;  %v5044_v28 = vpack.c.bf16 %v4980_v56, %v4980_v56 }
 0x835   : > { %v10480_v62 = vpop.f32.mrb[231].mxu0  ;;  %v10486_v43 = vpop.f32.mrb[247].mxu1 }
 0x836   : > { %v10938_v1 = vpop.eup %10937 }
 0x837   : > { %v10940_v55 = vpop.eup %10939  ;;  %v4981_v62 = vmul.f32 %v10938_v1, %v13588_v36 }
 0x838   : > { %v4982_v43 = vmul.f32 %v10940_v55, %v13590_v57 }
 0x83a   : > { %v5046_v26 = vpack.c.bf16 %v4982_v43, %v4982_v43  ;;  %v14543_v43 = vld [vmem:[#allocation104_spill] sm:$0xff] }
 0x85f   : > { %v4853_v7 = vpop.xlane.xlu1 %4852  ;;  %v4856_v9 = vpop.xlane.xlu0 %4855 }
 0x860   : > { %10941 = vrcp.f32 %v4853_v7  ;;  %v5045_v7 = vpack.c.bf16 %v4981_v62, %v4981_v62 }
 0x861   : > { %10943 = vrcp.f32 %v4856_v9 }
 0x863   : > { %v7739_v46 = vpop.permute.xlu1 %7738  ;;  %v7787_v17 = vpop.permute.xlu0 %7786 }
 0x864   : > { %v7744_v50 = vsel %vm5054_vm6, %v7739_v46, 0  ;;  %v7792_v15 = vsel %vm5054_vm6, %v7787_v17, 0 }
 0x865   : > { %10536 = vmatpush3.bf16.msra.mxu0 %v7744_v50  ;;  %10542 = vmatpush3.bf16.msra.mxu1 %v7792_v15 }
 0x866   : > { %10547 = vmatprep.subr.bf16.mxu0 %v14304_v12  ;;  %10553 = vmatprep.subr.bf16.mxu1 %v14304_v12 }
 0x867   : > { %v7396_v22 = vpop.f32.mrb[232].mxu0  ;;  %v7835_v21 = vpop.permute.xlu1 %7834 }
 0x868   : > { %v8170_v25 = vpack.c.bf16 %v7396_v22, %v7396_v22  ;;  %v7840_v31 = vsel %vm5054_vm6, %v7835_v21, 0  ;;  %v7444_v11 = vpop.f32.mrb[248].mxu1  ;;  %10538 = vmatmul.mubr.msk.bf16.vlgmr.msra.gmra.mrb[248].mxu0 %vm1114_vm5, %v5041_v14  ;;  %v10491_v0 = vpop.f32.mrb[233].mxu0  ;;  %10544 = vmatmul.mubr.msk.bf16.vlgmr.msra.gmra.mrb[8].mxu1 %vm1114_vm5, %v5042_v54  ;;  %v10681_v14 = vld [vmem:[%s14161_s6] sm:$0xff]  }
 0x869   : > { %v8171_v3 = vpack.c.bf16 %v7444_v11, %v7444_v11  ;;  %v10497_v45 = vpop.f32.mrb[249].mxu1  ;;  %10548 = vmatpush3.bf16.msra.mxu0 %v7840_v31  ;;  %v7399_v47 = vpop.f32.mrb[234].mxu0  ;;  %10549 = vmatprep.mubr.msk.bf16.mxu0 %vm10959_vm4, %v14304_v12  ;;  %v8143_v0 = vpack.c.bf16 %v13292_v48, %v13292_v48  ;;  %v8159_v48 = vpack.c.bf16 %v13504_v42, %v13504_v42 }
 0x86a   : > { %v7447_v49 = vpop.f32.mrb[250].mxu1  ;;  %8298 = vrot.lane.b32.xlu0 %v8170_v25, %s10964_s17  ;;  %v10492_v30 = vpop.f32.mrb[235].mxu0  ;;  %10559 = vmatprep.subr.bf16.mxu0 %v14304_v12  ;;  %v8144_v45 = vpack.c.bf16 %v13301_v29, %v13301_v29  ;;  %v8160_v29 = vpack.c.bf16 %v13541_v10, %v13541_v10 }
 0x86b   : > { %8300 = vrot.lane.b32.xlu1 %v8171_v3, %s10964_s17  ;;  %v10498_v58 = vpop.f32.mrb[251].mxu1  ;;  %v7883_v63 = vpop.permute.xlu1 %7882  ;;  %10555 = vmatprep.mubr.msk.bf16.mxu1 %vm10959_vm4, %v14304_v12  ;;  %v8142_v3 = vpack.c.bf16 %v13290_v61, %v13290_v61  ;;  %v8158_v61 = vpack.c.bf16 %v13501_v20, %v13501_v20 }
 0x86c   : > { %v7931_v16 = vpop.permute.xlu0 %7930  ;;  %v7888_v53 = vsel %vm5054_vm6, %v7883_v63, 0  ;;  %v10942_v9 = vpop.eup %10941 }
 0x86d   : > { %10554 = vmatpush3.bf16.msra.mxu1 %v7888_v53  ;;  %v7936_v32 = vsel %vm5054_vm6, %v7931_v16, 0  ;;  %v10944_v2 = vpop.eup %10943  ;;  %v4983_v57 = vmul.f32 %v10942_v9, %v13626_v13  ;;  %v10682_v13 = vld [vmem:[%s14161_s6 + $0x8] sm:$0xff]  }
 0x86e   : > { %10565 = vmatprep.subr.bf16.mxu1 %v14304_v12  ;;  %v4984_v50 = vmul.f32 %v10944_v2, %v13628_v35 }
 0x86f   : > { %v7979_v38 = vpop.permute.xlu1 %7978  ;;  %v5047_v17 = vpack.c.bf16 %v4983_v57, %v4983_v57 }
 0x870   : > { %10550 = vmatmul.mubr.msk.bf16.vlgmr.msra.gmra.mrb[252].mxu0 %vm1114_vm5, %v5043_v23  ;;  %v7984_v4 = vsel %vm5054_vm6, %v7979_v38, 0  ;;  %10556 = vmatmul.mubr.msk.bf16.vlgmr.msra.gmra.mrb[12].mxu1 %vm1114_vm5, %v5044_v28  ;;  %v8027_v6 = vpop.permute.xlu0 %8026  ;;  %v5048_v15 = vpack.c.bf16 %v4984_v50, %v4984_v50  ;;  %v14542_v38 = vld [vmem:[#allocation101_spill] sm:$0xff] }
 0x871   : > { %10560 = vmatpush3.bf16.msra.mxu0 %v7936_v32  ;;  %10566 = vmatpush3.bf16.msra.mxu1 %v7984_v4  ;;  %v8032_v36 = vsel %vm5054_vm6, %v8027_v6, 0  ;;  %v8122_v4 = vpack.c.bf16 %v14542_v38, %v14542_v38  ;;  %v8123_v6 = vpack.c.bf16 %v14543_v43, %v14543_v43 }
 0x872   : > { %10561 = vmatprep.mubr.msk.bf16.mxu0 %vm10959_vm4, %v14304_v12  ;;  %10567 = vmatprep.mubr.msk.bf16.mxu1 %vm10959_vm4, %v14304_v12 }
 0x873   : > { %10571 = vmatprep.subr.bf16.mxu0 %v14304_v12  ;;  %10577 = vmatprep.subr.bf16.mxu1 %v14304_v12  ;;  %v8075_v51 = vpop.permute.xlu1 %8074 }
 0x874   : > { %v8080_v46 = vsel %vm5054_vm6, %v8075_v51, 0  ;;  %v8203_v47 = vpop.permute.xlu0 %8202 }
 0x877   : > { %v8205_v49 = vpop.permute.xlu1 %8204 }
 0x878   : > { %10562 = vmatmul.mubr.msk.bf16.vlgmr.msra.gmra.mrb[0].mxu0 %vm1114_vm5, %v5045_v7  ;;  %10568 = vmatmul.mubr.msk.bf16.vlgmr.msra.gmra.mrb[16].mxu1 %vm1114_vm5, %v5046_v26  ;;  %v8207_v20 = vpop.permute.xlu0 %8206  ;;  %v8332_v7 = vsel %vm1114_vm5, %v8122_v4, %v8203_v47  ;;  %v8335_v51 = vsel %vm1114_vm5, %v8123_v6, %v8205_v49 }
 0x879   : > { %10572 = vmatpush3.bf16.msra.mxu0 %v8032_v36  ;;  %10578 = vmatpush3.bf16.msra.mxu1 %v8080_v46 }
 0x87a   : > { %10573 = vmatprep.mubr.msk.bf16.mxu0 %vm10959_vm4, %v14304_v12  ;;  %10579 = vmatprep.mubr.msk.bf16.mxu1 %vm10959_vm4, %v14304_v12 }
 0x87b   : > { %10583 = vmatprep.subr.bf16.mxu0 %v10681_v14  ;;  %v8209_v56 = vpop.permute.xlu1 %8208 }
 0x87c   : > { %v8251_v30 = vpop.permute.xlu0 %8250 }
 0x87d   : > { %v8380_v9 = vsel %vm8378_vm7, %v8332_v7, %v8251_v30 }
 0x87f   : > { %v8253_v42 = vpop.permute.xlu1 %8252 }
 0x880   : > { %10574 = vmatmul.mubr.msk.bf16.vlgmr.msra.gmra.mrb[4].mxu0 %vm1114_vm5, %v5047_v17  ;;  %10580 = vmatmul.mubr.msk.bf16.vlgmr.msra.gmra.mrb[20].mxu1 %vm1114_vm5, %v5048_v15  ;;  %v8255_v32 = vpop.permute.xlu0 %8254  ;;  %v8382_v2 = vsel %vm8378_vm7, %v8335_v51, %v8253_v42 }
 0x881   : > { %10584 = vmatpush3.bf16.msra.mxu0 %v10681_v14 }
 0x882   : > { %10585 = vmatprep.subr.bf16.mxu0 %v10682_v13 }
 0x883   : > { %v8257_v62 = vpop.permute.xlu1 %8256 }
 0x885   : > { %10586 = vmatpush3.bf16.msra.mxu0 %v10682_v13 }
 0x89c   : > { %v7492_v35 = vpop.f32.mrb[236].mxu0  ;;  %v7540_v19 = vpop.f32.mrb[252].mxu1 }
 0x89d   : > { %v8172_v12 = vpack.c.bf16 %v7492_v35, %v7492_v35  ;;  %v10503_v54 = vpop.f32.mrb[237].mxu0  ;;  %v8173_v22 = vpack.c.bf16 %v7540_v19, %v7540_v19  ;;  %v10509_v21 = vpop.f32.mrb[253].mxu1 }
 0x89e   : > { %v7495_v44 = vpop.f32.mrb[238].mxu0  ;;  %v7543_v25 = vpop.f32.mrb[254].mxu1 }
 0x89f   : > { %v10504_v31 = vpop.f32.mrb[239].mxu0  ;;  %8302 = vrot.lane.b32.xlu0 %v8172_v12, %s10964_s17  ;;  %8304 = vrot.lane.b32.xlu1 %v8173_v22, %s10964_s17  ;;  %v10510_v11 = vpop.f32.mrb[255].mxu1  ;;  %v14544_v44 = vld [vmem:[#allocation79_spill] sm:$0xff] }
 0x8a0   : > { %v8146_v25 = vpack.c.bf16 %v14544_v44, %v14544_v44  ;;  %v14545_v31 = vld [vmem:[#allocation73_spill] sm:$0xff] }
 0x8a1   : > { %v8147_v11 = vpack.c.bf16 %v14545_v31, %v14545_v31 }
 0x8a3   : > { %8210 = vrot.lane.b32.xlu0 %v8142_v3, %s10962_s15  ;;  %8212 = vrot.lane.b32.xlu1 %v8143_v0, %s10962_s15  ;;  %v14546_v3 = vld [vmem:[#allocation98_spill] sm:$0xff] }
 0x8a4   : > { %v8124_v0 = vpack.c.bf16 %v14546_v3, %v14546_v3  ;;  %v8150_v3 = vpack.c.bf16 %v13340_v33, %v13340_v33 }
 0x8a6   : > { %v8338_v47 = vsel %vm1114_vm5, %v8124_v0, %v8207_v20  ;;  %v8163_v20 = vpack.c.bf16 %v13580_v60, %v13580_v60 }
 0x8a7   : > { %8214 = vrot.lane.b32.xlu0 %v8144_v45, %s10962_s15  ;;  %8216 = vrot.lane.b32.xlu1 %v8145_v41, %s10962_s15  ;;  %v14547_v45 = vld [vmem:[#allocation18_spill] sm:$0xff]  ;;  %v8384_v30 = vsel %vm8378_vm7, %v8338_v47, %v8255_v32 }
 0x8a8   : > { %v8125_v41 = vpack.c.bf16 %v14547_v45, %v14547_v45 }
 0x8aa   : > { %v8341_v49 = vsel %vm1114_vm5, %v8125_v41, %v8209_v56 }
 0x8ab   : > { %8258 = vrot.lane.b32.xlu0 %v8158_v61, %s10963_s16  ;;  %8260 = vrot.lane.b32.xlu1 %v8159_v48, %s10963_s16  ;;  %v14548_v61 = vld [vmem:[#allocation56_spill] sm:$0xff] }
 0x8ac   : > { %v8148_v48 = vpack.c.bf16 %v14548_v61, %v14548_v61  ;;  %v14552_v61 = vld [vmem:[#allocation74_spill] sm:$0xff] }
 0x8af   : > { %8262 = vrot.lane.b32.xlu0 %v8160_v29, %s10963_s16  ;;  %8264 = vrot.lane.b32.xlu1 %v8161_v24, %s10963_s16  ;;  %v14549_v29 = vld [vmem:[#allocation75_spill] sm:$0xff] }
 0x8b0   : > { %v8149_v24 = vpack.c.bf16 %v14549_v29, %v14549_v29 }
 0x8d1   : > { %v7588_v58 = vpop.f32.mrb[240].mxu0 }
 0x8d2   : > { %v8174_v63 = vpack.c.bf16 %v7588_v58, %v7588_v58  ;;  %v7636_v16 = vpop.f32.mrb[0].mxu1  ;;  %v10515_v53 = vpop.f32.mrb[241].mxu0  ;;  %v8386_v58 = vsel %vm8378_vm7, %v8341_v49, %v8257_v62  ;;  %v8152_v49 = vpack.c.bf16 %v13382_v27, %v13382_v27  ;;  %v8167_v27 = vpack.c.bf16 %v13681_v34, %v13681_v34 }
 0x8d3   : > { %v8175_v23 = vpack.c.bf16 %v7636_v16, %v7636_v16  ;;  %v10521_v1 = vpop.f32.mrb[1].mxu1  ;;  %v7591_v10 = vpop.f32.mrb[242].mxu0  ;;  %v8162_v53 = vpack.c.bf16 %v13577_v59, %v13577_v59 }
 0x8d4   : > { %v7639_v28 = vpop.f32.mrb[2].mxu1  ;;  %v10516_v55 = vpop.f32.mrb[243].mxu0  ;;  %8306 = vrot.lane.b32.xlu0 %v8174_v63, %s10964_s17  ;;  %v8164_v1 = vpack.c.bf16 %v13615_v5, %v13615_v5  ;;  %v8165_v10 = vpack.c.bf16 %v13618_v40, %v13618_v40 }
 0x8d5   : > { %8308 = vrot.lane.b32.xlu1 %v8175_v23, %s10964_s17  ;;  %v10522_v8 = vpop.f32.mrb[3].mxu1 }
 0x8dc   : > { %v8299_v26 = vpop.permute.xlu0 %8298 }
 0x8dd   : > { %v8301_v36 = vpop.permute.xlu1 %8300  ;;  %v8413_v46 = vsel %vm8411_vm8, %v8380_v9, %v8299_v26 }
 0x8de   : > { %v8415_v57 = vsel %vm8411_vm8, %v8382_v2, %v8301_v36 }
 0x8df   : > { %v9378_v50 = vcombine.low %v8413_v46, %v8415_v57  ;;  %v14550_v46 = vld [vmem:[#allocation23_spill] sm:$0xff] }
 0x8e0   : > { %v8127_v57 = vpack.c.bf16 %v14550_v46, %v14550_v46 }
 0x8e1   : > { %10587 = vmatprep.mubr.msk.bf16.mxu0 %vm664_vm3, %v9378_v50 }
 0x906   : > { %v7684_v17 = vpop.f32.mrb[244].mxu0  ;;  %v7732_v14 = vpop.f32.mrb[4].mxu1 }
 0x907   : > { %v8176_v15 = vpack.c.bf16 %v7684_v17, %v7684_v17  ;;  %v10527_v13 = vpop.f32.mrb[245].mxu0  ;;  %v8177_v35 = vpack.c.bf16 %v7732_v14, %v7732_v14  ;;  %v10533_v12 = vpop.f32.mrb[5].mxu1  ;;  %v14551_v14 = vld [vmem:[#allocation20_spill] sm:$0xff] }
 0x908   : > { %v7687_v19 = vpop.f32.mrb[246].mxu0  ;;  %v7735_v54 = vpop.f32.mrb[6].mxu1  ;;  %v8126_v13 = vpack.c.bf16 %v14551_v14, %v14551_v14 }
 0x909   : > { %v10528_v22 = vpop.f32.mrb[247].mxu0  ;;  %8310 = vrot.lane.b32.xlu0 %v8176_v15, %s10964_s17  ;;  %8312 = vrot.lane.b32.xlu1 %v8177_v35, %s10964_s17  ;;  %v10534_v21 = vpop.f32.mrb[7].mxu1 }
 0x90d   : > { %8218 = vrot.lane.b32.xlu0 %v8146_v25, %s10962_s15  ;;  %8220 = vrot.lane.b32.xlu1 %v8147_v11, %s10962_s15 }
 0x911   : > { %8222 = vrot.lane.b32.xlu0 %v8148_v48, %s10962_s15  ;;  %v8303_v42 = vpop.permute.xlu0 %8302  ;;  %v8305_v63 = vpop.permute.xlu1 %8304  ;;  %8224 = vrot.lane.b32.xlu1 %v8149_v24, %s10962_s15  ;;  %v8151_v48 = vpack.c.bf16 %v14552_v61, %v14552_v61 }
 0x912   : > { %v8417_v16 = vsel %vm8411_vm8, %v8384_v30, %v8303_v42  ;;  %v8419_v23 = vsel %vm8411_vm8, %v8386_v58, %v8305_v63  ;;  %v8153_v42 = vpack.c.bf16 %v13384_v18, %v13384_v18 }
 0x913   : > { %v9379_v56 = vcombine.low %v8417_v16, %v8419_v23 }
 0x915   : > { %8266 = vrot.lane.b32.xlu0 %v8162_v53, %s10963_s16  ;;  %8268 = vrot.lane.b32.xlu1 %v8163_v20, %s10963_s16  ;;  %v8211_v59 = vpop.permute.xlu0 %8210  ;;  %v8213_v28 = vpop.permute.xlu1 %8212  ;;  %v8166_v20 = vpack.c.bf16 %v13678_v37, %v13678_v37 }
 0x916   : > { %10588 = vmatmul.mubr.msk.bf16.vlgmr.msra.gmra.mrb[8].mxu0 %vm664_vm3, %v9379_v56  ;;  %v8347_v54 = vsel %vm1114_vm5, %v8127_v57, %v8213_v28  ;;  %v8344_v44 = vsel %vm1114_vm5, %v8126_v13, %v8211_v59  ;;  %v8168_v56 = vpack.c.bf16 %v13703_v52, %v13703_v52  ;;  %v8169_v59 = vpack.c.bf16 %v13706_v39, %v13706_v39  ;;  %v10683_v39 = vld [vmem:[%s14163_s8] sm:$0xff]  }
 0x917   : > { %10603 = vmatprep.subr.bf16.mxu1 %v10683_v39 }
 0x918   : > { %10604 = vmatpush3.bf16.msra.mxu1 %v10683_v39 }
 0x919   : > { %8270 = vrot.lane.b32.xlu0 %v8164_v1, %s10963_s16  ;;  %8272 = vrot.lane.b32.xlu1 %v8165_v10, %s10963_s16  ;;  %v13844_v60 = vpop.permute.xlu0 %8214  ;;  %v13846_v55 = vpop.permute.xlu1 %8216 }
 0x91d   : > { %v8259_v8 = vpop.permute.xlu0 %8258  ;;  %v8261_v32 = vpop.permute.xlu1 %8260 }
 0x91e   : > { %v8390_v25 = vsel %vm8378_vm7, %v8347_v54, %v8261_v32  ;;  %v8388_v0 = vsel %vm8378_vm7, %v8344_v44, %v8259_v8 }
 0x921   : > { %v13850_v26 = vpop.permute.xlu0 %8262  ;;  %v13852_v2 = vpop.permute.xlu1 %8264 }
 0x93b   : > { %v7780_v38 = vpop.f32.mrb[248].mxu0  ;;  %v7828_v62 = vpop.f32.mrb[8].mxu1 }
 0x93c   : > { %v8178_v4 = vpack.c.bf16 %v7780_v38, %v7780_v38  ;;  %v10539_v43 = vpop.f32.mrb[249].mxu0  ;;  %v8179_v5 = vpack.c.bf16 %v7828_v62, %v7828_v62  ;;  %v10545_v6 = vpop.f32.mrb[9].mxu1 }
 0x93d   : > { %v7783_v7 = vpop.f32.mrb[250].mxu0  ;;  %v7831_v40 = vpop.f32.mrb[10].mxu1  ;;  %v10684_v43 = vld [vmem:[%s14163_s8 + $0x8] sm:$0xff]  }
 0x93e   : > { %v10540_v51 = vpop.f32.mrb[251].mxu0  ;;  %8314 = vrot.lane.b32.xlu0 %v8178_v4, %s10964_s17  ;;  %8316 = vrot.lane.b32.xlu1 %v8179_v5, %s10964_s17  ;;  %v10546_v9 = vpop.f32.mrb[11].mxu1  ;;  %v14553_v5 = vld [vmem:[#allocation37_spill] sm:$0xff]  ;;  %v14554_v7 = vld [vmem:[#allocation22_spill] sm:$0xff] }
 0x93f   : > { %10605 = vmatprep.subr.bf16.mxu1 %v10684_v43  ;;  %v8128_v6 = vpack.c.bf16 %v14553_v5, %v14553_v5  ;;  %v8129_v40 = vpack.c.bf16 %v14554_v7, %v14554_v7 }
 0x940   : > { %10606 = vmatpush3.bf16.msra.mxu1 %v10684_v43  ;;  %v14561_v43 = vld [vmem:[#allocation51_spill] sm:$0xff] }
 0x941   : > { %v8350_v51 = vsel %vm1114_vm5, %v8128_v6, %v13844_v60  ;;  %v8353_v9 = vsel %vm1114_vm5, %v8129_v40, %v13846_v55  ;;  %v8136_v5 = vpack.c.bf16 %v14561_v43, %v14561_v43 }
 0x942   : > { %v8394_v57 = vsel %vm8378_vm7, %v8353_v9, %v13852_v2  ;;  %v14556_v2 = vld [vmem:[#allocation40_spill] sm:$0xff] }
 0x943   : > { %v7876_v36 = vpop.f32.mrb[252].mxu0  ;;  %v7924_v17 = vpop.f32.mrb[12].mxu1  ;;  %v8131_v44 = vpack.c.bf16 %v14556_v2, %v14556_v2 }
 0x944   : > { %v8180_v50 = vpack.c.bf16 %v7876_v36, %v7876_v36  ;;  %v10551_v15 = vpop.f32.mrb[253].mxu0  ;;  %v8181_v35 = vpack.c.bf16 %v7924_v17, %v7924_v17  ;;  %v10557_v12 = vpop.f32.mrb[13].mxu1  ;;  %v8392_v36 = vsel %vm8378_vm7, %v8350_v51, %v13850_v26  ;;  %v14555_v26 = vld [vmem:[#allocation35_spill] sm:$0xff]  ;;  %v14562_v51 = vld [vmem:[#allocation58_spill] sm:$0xff] }
 0x945   : > { %v7879_v19 = vpop.f32.mrb[254].mxu0  ;;  %v7927_v22 = vpop.f32.mrb[14].mxu1  ;;  %v8137_v9 = vpack.c.bf16 %v14562_v51, %v14562_v51  ;;  %v14572_v51 = vld [vmem:[#allocation8_spill] sm:$0xff] }
 0x946   : > { %v10552_v21 = vpop.f32.mrb[255].mxu0  ;;  %8318 = vrot.lane.b32.xlu0 %v8180_v50, %s10964_s17  ;;  %8320 = vrot.lane.b32.xlu1 %v8181_v35, %s10964_s17  ;;  %v10558_v11 = vpop.f32.mrb[15].mxu1  ;;  %v8130_v22 = vpack.c.bf16 %v14555_v26, %v14555_v26 }
 0x947   : > { %v8309_v31 = vpop.permute.xlu1 %8308  ;;  %v8307_v41 = vpop.permute.xlu0 %8306 }
 0x948   : > { %v8423_v45 = vsel %vm8411_vm8, %v8390_v25, %v8309_v31  ;;  %v8421_v29 = vsel %vm8411_vm8, %v8388_v0, %v8307_v41 }
 0x949   : > { %v9380_v24 = vcombine.low %v8421_v29, %v8423_v45  ;;  %v14557_v29 = vld [vmem:[#allocation54_spill] sm:$0xff] }
 0x94a   : > { %8226 = vrot.lane.b32.xlu0 %v8150_v3, %s10962_s15  ;;  %8228 = vrot.lane.b32.xlu1 %v8151_v48, %s10962_s15 }
 0x94b   : > { %v7972_v47 = vpop.f32.mrb[0].mxu0  ;;  %10591 = vmatprep.mubr.msk.bf16.mxu0 %vm664_vm3, %v9380_v24  ;;  %v8020_v33 = vpop.f32.mrb[16].mxu1  ;;  %v8132_v24 = vpack.c.bf16 %v14557_v29, %v14557_v29 }
 0x94c   : > { %v10563_v30 = vpop.f32.mrb[1].mxu0  ;;  %v10569_v58 = vpop.f32.mrb[17].mxu1  ;;  %v8182_v38 = vpack.c.bf16 %v7972_v47, %v7972_v47  ;;  %v8183_v4 = vpack.c.bf16 %v8020_v33, %v8020_v33  ;;  %v14558_v47 = vld [vmem:[#allocation36_spill] sm:$0xff] }
 0x94d   : > { %v7975_v63 = vpop.f32.mrb[2].mxu0  ;;  %v8023_v16 = vpop.f32.mrb[18].mxu1 }
 0x94e   : > { %8230 = vrot.lane.b32.xlu0 %v8152_v49, %s10962_s15  ;;  %v10564_v53 = vpop.f32.mrb[3].mxu0  ;;  %8232 = vrot.lane.b32.xlu1 %v8153_v42, %s10962_s15  ;;  %v10570_v23 = vpop.f32.mrb[19].mxu1  ;;  %v8133_v49 = vpack.c.bf16 %v14558_v47, %v14558_v47  ;;  %v10685_v47 = vld [vmem:[%s14165_s10] sm:$0xff]  }
 0x94f   : > { %10623 = vmatprep.subr.bf16.mxu0 %v10685_v47 }
 0x950   : > { %10624 = vmatpush3.bf16.msra.mxu0 %v10685_v47 }
 0x952   : > { %8274 = vrot.lane.b32.xlu0 %v8166_v20, %s10963_s16  ;;  %8276 = vrot.lane.b32.xlu1 %v8167_v27, %s10963_s16 }
 0x953   : > { %v8068_v18 = vpop.f32.mrb[4].mxu0  ;;  %v8116_v1 = vpop.f32.mrb[20].mxu1 }
 0x954   : > { %v10575_v10 = vpop.f32.mrb[5].mxu0  ;;  %v10581_v28 = vpop.f32.mrb[21].mxu1  ;;  %v8184_v52 = vpack.c.bf16 %v8068_v18, %v8068_v18  ;;  %v8185_v62 = vpack.c.bf16 %v8116_v1, %v8116_v1 }
 0x955   : > { %v8071_v8 = vpop.f32.mrb[6].mxu0  ;;  %v8119_v32 = vpop.f32.mrb[22].mxu1 }
 0x956   : > { %8278 = vrot.lane.b32.xlu0 %v8168_v56, %s10963_s16  ;;  %v10576_v37 = vpop.f32.mrb[7].mxu0  ;;  %8280 = vrot.lane.b32.xlu1 %v8169_v59, %s10963_s16  ;;  %v10582_v34 = vpop.f32.mrb[23].mxu1  ;;  %v14559_v8 = vld [vmem:[#allocation89_spill] sm:$0xff] }
 0x957   : > { %v8134_v32 = vpack.c.bf16 %v14559_v8, %v14559_v8  ;;  %v14560_v34 = vld [vmem:[#allocation38_spill] sm:$0xff] }
 0x958   : > { %v14570_v8 = vld [vmem:[#allocation6_spill] sm:$0xff] }
 0x95a   : > { %8322 = vrot.lane.b32.xlu0 %v8182_v38, %s10964_s17  ;;  %8324 = vrot.lane.b32.xlu1 %v8183_v4, %s10964_s17  ;;  %v8135_v38 = vpack.c.bf16 %v14560_v34, %v14560_v34 }
 0x95e   : > { %8326 = vrot.lane.b32.xlu0 %v8184_v52, %s10964_s17  ;;  %8328 = vrot.lane.b32.xlu1 %v8185_v62, %s10964_s17 }
 0x97b   : > { %v8311_v46 = vpop.permute.xlu0 %8310  ;;  %v8313_v50 = vpop.permute.xlu1 %8312 }
 0x97c   : > { %v8425_v17 = vsel %vm8411_vm8, %v8392_v36, %v8311_v46  ;;  %v8427_v15 = vsel %vm8411_vm8, %v8394_v57, %v8313_v50 }
 0x97d   : > { %v9381_v14 = vcombine.low %v8425_v17, %v8427_v15 }
 0x97f   : > { %10592 = vmatmul.mubr.msk.bf16.gmra.mrb[12].mxu0 %vm664_vm3, %v9381_v14  ;;  %v8219_v13 = vpop.permute.xlu0 %8218  ;;  %v8221_v60 = vpop.permute.xlu1 %8220 }
 0x980   : > { %v8356_v25 = vsel %vm1114_vm5, %v8130_v22, %v8219_v13  ;;  %v8359_v31 = vsel %vm1114_vm5, %v8131_v44, %v8221_v60 }
 0x983   : > { %v8223_v35 = vpop.permute.xlu0 %8222  ;;  %v8225_v12 = vpop.permute.xlu1 %8224 }
 0x984   : > { %v8362_v33 = vsel %vm1114_vm5, %v8132_v24, %v8223_v35  ;;  %v8365_v30 = vsel %vm1114_vm5, %v8133_v49, %v8225_v12  ;;  %v10686_v49 = vld [vmem:[%s14165_s10 + $0x8] sm:$0xff]  }
 0x985   : > { %10625 = vmatprep.subr.bf16.mxu0 %v10686_v49 }
 0x986   : > { %10626 = vmatpush3.bf16.msra.mxu0 %v10686_v49 }
 0x987   : > { %v8267_v55 = vpop.permute.xlu0 %8266  ;;  %v8269_v19 = vpop.permute.xlu1 %8268 }
 0x988   : > { %v8396_v11 = vsel %vm8378_vm7, %v8356_v25, %v8267_v55  ;;  %v8398_v0 = vsel %vm8378_vm7, %v8359_v31, %v8269_v19  ;;  %v13963_v55 = vld [vmem:[%s14162_s7] ss:$0 sm:$0xff] }
 0x989   : > { %v14563_v31 = vld [vmem:[#allocation2_spill] sm:$0xff] }
 0x98b   : > { %v8271_v54 = vpop.permute.xlu0 %8270  ;;  %v8273_v21 = vpop.permute.xlu1 %8272 }
 0x98c   : > { %v8400_v42 = vsel %vm8378_vm7, %v8362_v33, %v8271_v54  ;;  %v8402_v63 = vsel %vm8378_vm7, %v8365_v30, %v8273_v21  ;;  %v10687_v33 = vld [vmem:[%s14165_s10 + $0x10] sm:$0xff]   ;;  %v10688_v30 = vld [vmem:[%s14165_s10 + $0x18] sm:$0xff]  }
 0x98d   : > { %10627 = vmatprep.subr.bf16.mxu0 %v10687_v33 }
 0x98e   : > { %10628 = vmatpush3.bf16.msra.mxu0 %v10687_v33 }
 0x98f   : > { %10629 = vmatprep.subr.bf16.mxu0 %v10688_v30 }
 0x992   : > { %10630 = vmatpush3.bf16.msra.mxu0 %v10688_v30 }
 0x9b0   : > { %v8315_v3 = vpop.permute.xlu0 %8314  ;;  %v8317_v45 = vpop.permute.xlu1 %8316 }
 0x9b1   : > { %v8429_v41 = vsel %vm8411_vm8, %v8396_v11, %v8315_v3  ;;  %v8431_v61 = vsel %vm8411_vm8, %v8398_v0, %v8317_v45  ;;  %v14564_v3 = vld [vmem:[#allocation3_spill] sm:$0xff]  ;;  %v14565_v45 = vld [vmem:[#allocation4_spill] sm:$0xff] }
 0x9b2   : > { %v9382_v48 = vcombine.low %v8429_v41, %v8431_v61  ;;  %v14566_v61 = vld [vmem:[#allocation5_spill] sm:$0xff] }
 0x9b4   : > { %10595 = vmatprep.mubr.msk.bf16.mxu0 %vm664_vm3, %v9382_v48 }
 0x9b8   : > { %v8319_v58 = vpop.permute.xlu0 %8318  ;;  %v8321_v16 = vpop.permute.xlu1 %8320 }
 0x9b9   : > { %v8433_v53 = vsel %vm8411_vm8, %v8400_v42, %v8319_v58  ;;  %v8435_v23 = vsel %vm8411_vm8, %v8402_v63, %v8321_v16 }
 0x9ba   : > { %v9383_v20 = vcombine.low %v8433_v53, %v8435_v23 }
 0x9bc   : > { %v8227_v27 = vpop.permute.xlu0 %8226  ;;  %v8229_v18 = vpop.permute.xlu1 %8228  ;;  %10596 = vmatmul.mubr.msk.bf16.gmra.mrb[16].mxu0 %vm664_vm3, %v9383_v20 }
 0x9bd   : > { %v8368_v4 = vsel %vm1114_vm5, %v8134_v32, %v8227_v27  ;;  %v8371_v52 = vsel %vm1114_vm5, %v8135_v38, %v8229_v18  ;;  %v14567_v18 = vld [vmem:[#allocation10_spill] sm:$0xff] }
 0x9c0   : > { %v8231_v56 = vpop.permute.xlu0 %8230  ;;  %v8233_v1 = vpop.permute.xlu1 %8232 }
 0x9c1   : > { %v8374_v46 = vsel %vm1114_vm5, %v8136_v5, %v8231_v56  ;;  %v8377_v50 = vsel %vm1114_vm5, %v8137_v9, %v8233_v1  ;;  %v14568_v1 = vld [vmem:[#allocation7_spill] sm:$0xff] }
 0x9c4   : > { %v8275_v10 = vpop.permute.xlu0 %8274  ;;  %v8277_v59 = vpop.permute.xlu1 %8276 }
 0x9c5   : > { %v8404_v62 = vsel %vm8378_vm7, %v8368_v4, %v8275_v10  ;;  %v8406_v6 = vsel %vm8378_vm7, %v8371_v52, %v8277_v59  ;;  %v14569_v59 = vld [vmem:[#allocation11_spill] sm:$0xff] }
 0x9c8   : > { %v8279_v28 = vpop.permute.xlu0 %8278  ;;  %v8281_v37 = vpop.permute.xlu1 %8280 }
 0x9c9   : > { %v8408_v17 = vsel %vm8378_vm7, %v8374_v46, %v8279_v28  ;;  %v8410_v14 = vsel %vm8378_vm7, %v8377_v50, %v8281_v37 }
 0x9cc   : > { %v8323_v39 = vpop.permute.xlu0 %8322  ;;  %v8325_v7 = vpop.permute.xlu1 %8324 }
 0x9cd   : > { %v8437_v40 = vsel %vm8411_vm8, %v8404_v62, %v8323_v39  ;;  %v8439_v36 = vsel %vm8411_vm8, %v8406_v6, %v8325_v7  ;;  %v14571_v7 = vld [vmem:[#allocation13_spill] sm:$0xff] }
 0x9ce   : > { %v9384_v57 = vcombine.low %v8437_v40, %v8439_v36  ;;  %v14573_v36 = vld [vmem:[#allocation9_spill] sm:$0xff] }
 0x9d0   : > { %v8327_v15 = vpop.permute.xlu0 %8326  ;;  %v8329_v13 = vpop.permute.xlu1 %8328  ;;  %10599 = vmatprep.mubr.msk.bf16.mxu0 %vm664_vm3, %v9384_v57  ;;  %v14574_v57 = vld [vmem:[#allocation12_spill] sm:$0xff] }
 0x9d1   : > { %v8441_v60 = vsel %vm8411_vm8, %v8408_v17, %v8327_v15  ;;  %v8443_v35 = vsel %vm8411_vm8, %v8410_v14, %v8329_v13 }
 0x9d2   : > { %v9385_v12 = vcombine.low %v8441_v60, %v8443_v35 }
 0x9d4   : > { %10600 = vmatmul.mubr.msk.bf16.gmra.mrb[20].mxu0 %vm664_vm3, %v9385_v12 }
 0x9e9   : > { %v10589_v19 = vpop.f32.mrb[8].mxu0 }
 0x9ea   : > { %v8565_v54 = vpop.f32.mrb[9].mxu0  ;;  %v8574_v21 = vadd.f32 %v10589_v19, %v13963_v55 }
 0x9eb   : > { %v8566_v26 = vadd.f32 %v13963_v55, %v8565_v54  ;;  %v10590_v22 = vpop.f32.mrb[10].mxu0 }
 0x9ec   : > { %v8577_v2 = vadd.f32 %v10590_v22, %v13963_v55  ;;  %v8568_v44 = vpop.f32.mrb[11].mxu0  ;;  %v13979_v48 = vadd.f32 %v8574_v21, %v14566_v61  ;;  %v14575_v22 = vld [vmem:[#allocation17_spill] sm:$0xff] }
 0x9ed   : > { %v8569_v25 = vadd.f32 %v13963_v55, %v8568_v44  ;;  %v13973_v0 = vadd.f32 %v8566_v26, %v14564_v3  ;;  %v14578_v3 = vld [vmem:[#allocation16_spill] sm:$0xff] }
 0x9ee   : > { %v13970_v11 = vadd.f32 %v8577_v2, %v14563_v31  ;;  %v14576_v2 = vld [vmem:[#allocation14_spill] sm:$0xff] }
 0x9ef   : > { %v13976_v41 = vadd.f32 %v8569_v25, %v14565_v45  ;;  %v14577_v25 = vld [vmem:[#allocation15_spill] sm:$0xff] }
 0x9f0   : > { %v8645_v24 = vpack.c.bf16 %v13970_v11, %v13979_v48 }
 0x9f1   : > { %v8644_v29 = vpack.c.bf16 %v13976_v41, %v13973_v0 }
 0x9f3   : > { %10607 = vmatprep.mubr.msk.bf16.mxu1 %vm664_vm3, %v8644_v29 }
 0x9f4   : > { %10608 = vmatmul.mubr.msk.bf16.vlgmr.msra.gmra.mrb[24].mxu1 %vm664_vm3, %v8645_v24 }
 0xa52   : > { %v10593_v42 = vpop.f32.mrb[12].mxu0 }
 0xa53   : > { %v8581_v58 = vpop.f32.mrb[13].mxu0  ;;  %v8590_v53 = vadd.f32 %v10593_v42, %v13963_v55 }
 0xa54   : > { %v8582_v63 = vadd.f32 %v13963_v55, %v8581_v58  ;;  %v10594_v16 = vpop.f32.mrb[14].mxu0 }
 0xa55   : > { %v8593_v23 = vadd.f32 %v10594_v16, %v13963_v55  ;;  %v8584_v20 = vpop.f32.mrb[15].mxu0  ;;  %v14013_v32 = vadd.f32 %v8590_v53, %v14570_v8 }
 0xa56   : > { %v8585_v27 = vadd.f32 %v13963_v55, %v8584_v20  ;;  %v14007_v10 = vadd.f32 %v8582_v63, %v14568_v1 }
 0xa57   : > { %v14004_v56 = vadd.f32 %v8593_v23, %v14567_v18 }
 0xa58   : > { %v14010_v28 = vadd.f32 %v8585_v27, %v14569_v59 }
 0xa59   : > { %v8647_v34 = vpack.c.bf16 %v14004_v56, %v14013_v32 }
 0xa5a   : > { %v8646_v37 = vpack.c.bf16 %v14010_v28, %v14007_v10 }
 0xa5c   : > { %10611 = vmatprep.mubr.msk.bf16.mxu1 %vm664_vm3, %v8646_v37 }
 0xa5d   : > { %10612 = vmatmul.mubr.msk.bf16.gmra.mrb[28].mxu1 %vm664_vm3, %v8647_v34 }
 0xa8f   : > { %v10597_v38 = vpop.f32.mrb[16].mxu0 }
 0xa90   : > { %v8597_v4 = vpop.f32.mrb[17].mxu0  ;;  %v8606_v39 = vadd.f32 %v10597_v38, %v13963_v55 }
 0xa91   : > { %v8598_v52 = vadd.f32 %v13963_v55, %v8597_v4  ;;  %v10598_v62 = vpop.f32.mrb[18].mxu0 }
 0xa92   : > { %v8609_v43 = vadd.f32 %v10598_v62, %v13963_v55  ;;  %v8600_v5 = vpop.f32.mrb[19].mxu0  ;;  %v14035_v50 = vadd.f32 %v8606_v39, %v14574_v57 }
 0xa93   : > { %v8601_v6 = vadd.f32 %v13963_v55, %v8600_v5  ;;  %v14029_v9 = vadd.f32 %v8598_v52, %v14572_v51 }
 0xa94   : > { %v14026_v40 = vadd.f32 %v8609_v43, %v14571_v7 }
 0xa95   : > { %v14032_v46 = vadd.f32 %v8601_v6, %v14573_v36 }
 0xa96   : > { %v8649_v15 = vpack.c.bf16 %v14026_v40, %v14035_v50 }
 0xa97   : > { %v8648_v17 = vpack.c.bf16 %v14032_v46, %v14029_v9 }
 0xa99   : > { %10615 = vmatprep.mubr.msk.bf16.mxu1 %vm664_vm3, %v8648_v17 }
 0xa9a   : > { %10616 = vmatmul.mubr.msk.bf16.gmra.mrb[32].mxu1 %vm664_vm3, %v8649_v15 }
 0xaa7   : > { %v10601_v14 = vpop.f32.mrb[20].mxu0 }
 0xaa8   : > { %v8613_v13 = vpop.f32.mrb[21].mxu0  ;;  %v8622_v12 = vadd.f32 %v10601_v14, %v13963_v55 }
 0xaa9   : > { %v8614_v60 = vadd.f32 %v13963_v55, %v8613_v13  ;;  %v10602_v35 = vpop.f32.mrb[22].mxu0 }
 0xaaa   : > { %v8625_v19 = vadd.f32 %v10602_v35, %v13963_v55  ;;  %v8616_v54 = vpop.f32.mrb[23].mxu0  ;;  %v14057_v45 = vadd.f32 %v8622_v12, %v14578_v3 }
 0xaab   : > { %v8617_v26 = vadd.f32 %v13963_v55, %v8616_v54  ;;  %v14051_v44 = vadd.f32 %v8614_v60, %v14576_v2  ;;  %v9396_v55 = vld [vmem:[%s14164_s9] ss:$0 sm:$0xff] }
 0xaac   : > { %v14048_v21 = vadd.f32 %v8625_v19, %v14575_v22 }
 0xaad   : > { %v14054_v31 = vadd.f32 %v8617_v26, %v14577_v25 }
 0xaae   : > { %v8651_v29 = vpack.c.bf16 %v14048_v21, %v14057_v45 }
 0xaaf   : > { %v8650_v61 = vpack.c.bf16 %v14054_v31, %v14051_v44 }
 0xab1   : > { %10619 = vmatprep.mubr.msk.bf16.mxu1 %vm664_vm3, %v8650_v61 }
 0xab2   : > { %10620 = vmatmul.mubr.msk.bf16.gmra.mrb[36].mxu1 %vm664_vm3, %v8651_v29 }
 0xac7   : > { %v10609_v24 = vpop.f32.mrb[24].mxu1 }
 0xac8   : > { %v8742_v47 = vadd.f32 %v10609_v24, %v9396_v55  ;;  %v8733_v49 = vpop.f32.mrb[25].mxu1 }
 0xac9   : > { %v8734_v33 = vadd.f32 %v9396_v55, %v8733_v49  ;;  %v10610_v30 = vpop.f32.mrb[26].mxu1 }
 0xaca   : > { %v8745_v42 = vadd.f32 %v10610_v30, %v9396_v55  ;;  %v8736_v58 = vpop.f32.mrb[27].mxu1  ;;  %v8798_v16 = vmax.f32 %v8742_v47, 0.0 }
 0xacb   : > { %v8737_v63 = vadd.f32 %v9396_v55, %v8736_v58  ;;  %v8796_v23 = vmax.f32 %v8734_v33, 0.0 }
 0xacc   : > { %v8799_v53 = vmax.f32 %v8745_v42, 0.0 }
 0xacd   : > { %v8797_v20 = vmax.f32 %v8737_v63, 0.0 }
 0xace   : > { %v8813_v27 = vpack.c.bf16 %v8799_v53, %v8798_v16  ;;  %v14079_v53 = vld [vmem:[%s14166_s11] ss:$0 sm:$0xff] }
 0xacf   : > { %v8812_v18 = vpack.c.bf16 %v8797_v20, %v8796_v23 }
 0xad1   : > { %10631 = vmatprep.mubr.msk.bf16.mxu0 %vm8859_vm9, %v8812_v18 }
 0xad2   : > { %10632 = vmatmul.mubr.msk.bf16.vlgmr.msra.gmra.mrb[24].mxu0 %vm8859_vm9, %v8813_v27 }
 0xb30   : > { %v10613_v1 = vpop.f32.mrb[28].mxu1 }
 0xb31   : > { %v8758_v59 = vadd.f32 %v10613_v1, %v9396_v55  ;;  %v8749_v8 = vpop.f32.mrb[29].mxu1 }
 0xb32   : > { %v8750_v37 = vadd.f32 %v9396_v55, %v8749_v8  ;;  %v10614_v34 = vpop.f32.mrb[30].mxu1 }
 0xb33   : > { %v8761_v38 = vadd.f32 %v10614_v34, %v9396_v55  ;;  %v8752_v4 = vpop.f32.mrb[31].mxu1  ;;  %v8802_v62 = vmax.f32 %v8758_v59, 0.0 }
 0xb34   : > { %v8753_v52 = vadd.f32 %v9396_v55, %v8752_v4  ;;  %v8800_v43 = vmax.f32 %v8750_v37, 0.0 }
 0xb35   : > { %v8803_v39 = vmax.f32 %v8761_v38, 0.0 }
 0xb36   : > { %v8801_v5 = vmax.f32 %v8753_v52, 0.0 }
 0xb37   : > { %v8815_v6 = vpack.c.bf16 %v8803_v39, %v8802_v62 }
 0xb38   : > { %v8814_v7 = vpack.c.bf16 %v8801_v5, %v8800_v43 }
 0xb3a   : > { %10635 = vmatprep.mubr.msk.bf16.mxu0 %vm8859_vm9, %v8814_v7 }
 0xb3b   : > { %10636 = vmatmul.mubr.msk.bf16.gmra.mrb[28].mxu0 %vm8859_vm9, %v8815_v6 }
 0xb6d   : > { %v10617_v51 = vpop.f32.mrb[32].mxu1 }
 0xb6e   : > { %v8774_v36 = vadd.f32 %v10617_v51, %v9396_v55  ;;  %v8765_v57 = vpop.f32.mrb[33].mxu1 }
 0xb6f   : > { %v8766_v17 = vadd.f32 %v9396_v55, %v8765_v57  ;;  %v10618_v15 = vpop.f32.mrb[34].mxu1 }
 0xb70   : > { %v8777_v14 = vadd.f32 %v10618_v15, %v9396_v55  ;;  %v8768_v13 = vpop.f32.mrb[35].mxu1  ;;  %v8806_v35 = vmax.f32 %v8774_v36, 0.0 }
 0xb71   : > { %v8769_v60 = vadd.f32 %v9396_v55, %v8768_v13  ;;  %v8804_v19 = vmax.f32 %v8766_v17, 0.0 }
 0xb72   : > { %v8807_v12 = vmax.f32 %v8777_v14, 0.0 }
 0xb73   : > { %v8805_v54 = vmax.f32 %v8769_v60, 0.0 }
 0xb74   : > { %v8817_v26 = vpack.c.bf16 %v8807_v12, %v8806_v35 }
 0xb75   : > { %v8816_v22 = vpack.c.bf16 %v8805_v54, %v8804_v19 }
 0xb77   : > { %10639 = vmatprep.mubr.msk.bf16.mxu0 %vm8859_vm9, %v8816_v22 }
 0xb78   : > { %10640 = vmatmul.mubr.msk.bf16.gmra.mrb[32].mxu0 %vm8859_vm9, %v8817_v26 }
 0xb85   : > { %v10621_v2 = vpop.f32.mrb[36].mxu1 }
 0xb86   : > { %v8790_v25 = vadd.f32 %v10621_v2, %v9396_v55  ;;  %v8781_v3 = vpop.f32.mrb[37].mxu1 }
 0xb87   : > { %v8782_v61 = vadd.f32 %v9396_v55, %v8781_v3  ;;  %v10622_v29 = vpop.f32.mrb[38].mxu1 }
 0xb88   : > { %v8793_v24 = vadd.f32 %v10622_v29, %v9396_v55  ;;  %v8784_v47 = vpop.f32.mrb[39].mxu1  ;;  %v8810_v33 = vmax.f32 %v8790_v25, 0.0 }
 0xb89   : > { %v8785_v49 = vadd.f32 %v9396_v55, %v8784_v47  ;;  %v8808_v42 = vmax.f32 %v8782_v61, 0.0 }
 0xb8a   : > { %v8811_v30 = vmax.f32 %v8793_v24, 0.0 }
 0xb8b   : > { %v8809_v58 = vmax.f32 %v8785_v49, 0.0 }
 0xb8c   : > { %v8819_v63 = vpack.c.bf16 %v8811_v30, %v8810_v33 }
 0xb8d   : > { %v8818_v16 = vpack.c.bf16 %v8809_v58, %v8808_v42 }
 0xb8f   : > { %10643 = vmatprep.mubr.msk.bf16.mxu0 %vm8859_vm9, %v8818_v16 }
 0xb90   : > { %10644 = vmatmul.mubr.msk.bf16.gmra.mrb[36].mxu0 %vm8859_vm9, %v8819_v63 }
 0xba5   : > { %v10633_v23 = vpop.f32.mrb[24].mxu0 }
 0xba6   : > { %v8927_v20 = vadd.f32 %v10633_v23, %v14079_v53  ;;  %v8918_v55 = vpop.f32.mrb[25].mxu0 }
 0xba7   : > { %v8919_v27 = vadd.f32 %v14079_v53, %v8918_v55  ;;  %v10634_v18 = vpop.f32.mrb[26].mxu0 }
 0xba8   : > { %v8983_v1 = vadd.f32 %v8927_v20, %v13979_v48  ;;  %v8930_v59 = vadd.f32 %v10634_v18, %v14079_v53  ;;  %v8921_v8 = vpop.f32.mrb[27].mxu0 }
 0xba9   : > { %v8981_v37 = vadd.f32 %v8919_v27, %v13973_v0  ;;  %v8922_v34 = vadd.f32 %v14079_v53, %v8921_v8 }
 0xbaa   : > { %v9456_v38 = vpack.c.bf16 %v8983_v1, %v8983_v1  ;;  %v8984_v48 = vadd.f32 %v8930_v59, %v13970_v11 }
 0xbab   : > { %v9454_v4 = vpack.c.bf16 %v8981_v37, %v8981_v37  ;;  %v8982_v52 = vadd.f32 %v8922_v34, %v13976_v41 }
 0xbac   : > { %9064 = vst.msk [vmem:[%s14090_s30 + $0x8] sm:$0xf] %vm9061_vm10, %v9456_v38  ;;  %v9457_v62 = vpack.c.bf16 %v8984_v48, %v8984_v48 }
 0xbad   : > { %9062 = vst.msk [vmem:[%s14090_s30] sm:$0xf] %vm9061_vm10, %v9454_v4  ;;  %v9455_v39 = vpack.c.bf16 %v8982_v52, %v8982_v52 }
 0xbae   : > { %9065 = vst.msk [vmem:[%s14090_s30 + $0xc] sm:$0xf] %vm9061_vm10, %v9457_v62 }
 0xbaf   : > { %9063 = vst.msk [vmem:[%s14090_s30 + $0x4] sm:$0xf] %vm9061_vm10, %v9455_v39 }
 0xc0e   : > { %v10637_v0 = vpop.f32.mrb[28].mxu0 }
 0xc0f   : > { %v8943_v43 = vadd.f32 %v10637_v0, %v14079_v53  ;;  %v8934_v5 = vpop.f32.mrb[29].mxu0 }
 0xc10   : > { %v8935_v11 = vadd.f32 %v14079_v53, %v8934_v5  ;;  %v10638_v41 = vpop.f32.mrb[30].mxu0 }
 0xc11   : > { %v8987_v6 = vadd.f32 %v8943_v43, %v14013_v32  ;;  %v8946_v7 = vadd.f32 %v10638_v41, %v14079_v53  ;;  %v8937_v51 = vpop.f32.mrb[31].mxu0 }
 0xc12   : > { %v8985_v36 = vadd.f32 %v8935_v11, %v14007_v10  ;;  %v8938_v57 = vadd.f32 %v14079_v53, %v8937_v51 }
 0xc13   : > { %v9460_v17 = vpack.c.bf16 %v8987_v6, %v8987_v6  ;;  %v8988_v15 = vadd.f32 %v8946_v7, %v14004_v56 }
 0xc14   : > { %v9458_v14 = vpack.c.bf16 %v8985_v36, %v8985_v36  ;;  %v8986_v13 = vadd.f32 %v8938_v57, %v14010_v28 }
 0xc15   : > { %9068 = vst.msk [vmem:[%s14090_s30 + $0x18] sm:$0xf] %vm9061_vm10, %v9460_v17  ;;  %v9461_v60 = vpack.c.bf16 %v8988_v15, %v8988_v15 }
 0xc16   : > { %9066 = vst.msk [vmem:[%s14090_s30 + $0x10] sm:$0xf] %vm9061_vm10, %v9458_v14  ;;  %v9459_v35 = vpack.c.bf16 %v8986_v13, %v8986_v13 }
 0xc17   : > { %9069 = vst.msk [vmem:[%s14090_s30 + $0x1c] sm:$0xf] %vm9061_vm10, %v9461_v60 }
 0xc18   : > { %9067 = vst.msk [vmem:[%s14090_s30 + $0x14] sm:$0xf] %vm9061_vm10, %v9459_v35 }
 0xc4b   : > { %v10641_v10 = vpop.f32.mrb[32].mxu0 }
 0xc4c   : > { %v8959_v32 = vadd.f32 %v10641_v10, %v14079_v53  ;;  %v8950_v12 = vpop.f32.mrb[33].mxu0 }
 0xc4d   : > { %v8951_v56 = vadd.f32 %v14079_v53, %v8950_v12  ;;  %v10642_v28 = vpop.f32.mrb[34].mxu0 }
 0xc4e   : > { %v8991_v19 = vadd.f32 %v8959_v32, %v14035_v50  ;;  %v8962_v54 = vadd.f32 %v10642_v28, %v14079_v53  ;;  %v8953_v26 = vpop.f32.mrb[35].mxu0 }
 0xc4f   : > { %v8989_v22 = vadd.f32 %v8951_v56, %v14029_v9  ;;  %v8954_v2 = vadd.f32 %v14079_v53, %v8953_v26 }
 0xc50   : > { %v9464_v25 = vpack.c.bf16 %v8991_v19, %v8991_v19  ;;  %v8992_v3 = vadd.f32 %v8962_v54, %v14026_v40 }
 0xc51   : > { %v9462_v61 = vpack.c.bf16 %v8989_v22, %v8989_v22  ;;  %v8990_v29 = vadd.f32 %v8954_v2, %v14032_v46 }
 0xc52   : > { %9072 = vst.msk [vmem:[%s14090_s30 + $0x28] sm:$0xf] %vm9061_vm10, %v9464_v25  ;;  %v9465_v24 = vpack.c.bf16 %v8992_v3, %v8992_v3 }
 0xc53   : > { %9070 = vst.msk [vmem:[%s14090_s30 + $0x20] sm:$0xf] %vm9061_vm10, %v9462_v61  ;;  %v9463_v47 = vpack.c.bf16 %v8990_v29, %v8990_v29 }
 0xc54   : > { %9073 = vst.msk [vmem:[%s14090_s30 + $0x2c] sm:$0xf] %vm9061_vm10, %v9465_v24 }
 0xc55   : > { %9071 = vst.msk [vmem:[%s14090_s30 + $0x24] sm:$0xf] %vm9061_vm10, %v9463_v47 }
 0xc63   : > { %v10645_v9 = vpop.f32.mrb[36].mxu0 }
 0xc64   : > { %v8975_v50 = vadd.f32 %v10645_v9, %v14079_v53  ;;  %v8966_v49 = vpop.f32.mrb[37].mxu0 }
 0xc65   : > { %v8967_v40 = vadd.f32 %v14079_v53, %v8966_v49  ;;  %v10646_v46 = vpop.f32.mrb[38].mxu0 }
 0xc66   : > { %v8995_v33 = vadd.f32 %v8975_v50, %v14057_v45  ;;  %v8978_v30 = vadd.f32 %v10646_v46, %v14079_v53  ;;  %v8969_v42 = vpop.f32.mrb[39].mxu0 }
 0xc67   : > { %v8993_v58 = vadd.f32 %v8967_v40, %v14051_v44  ;;  %v8970_v63 = vadd.f32 %v14079_v53, %v8969_v42 }
 0xc68   : > { %v9468_v16 = vpack.c.bf16 %v8995_v33, %v8995_v33  ;;  %v8996_v23 = vadd.f32 %v8978_v30, %v14048_v21 }
 0xc69   : > { %v9466_v20 = vpack.c.bf16 %v8993_v58, %v8993_v58  ;;  %v8994_v55 = vadd.f32 %v8970_v63, %v14054_v31 }
 0xc6a   : > { %9076 = vst.msk [vmem:[%s14090_s30 + $0x38] sm:$0xf] %vm9061_vm10, %v9468_v16  ;;  %v9469_v27 = vpack.c.bf16 %v8996_v23, %v8996_v23 }
 0xc6b   : > { %9074 = vst.msk [vmem:[%s14090_s30 + $0x30] sm:$0xf] %vm9061_vm10, %v9466_v20  ;;  %v9467_v18 = vpack.c.bf16 %v8994_v55, %v8994_v55 }
 0xc6c   : > { %9077 = vst.msk [vmem:[%s14090_s30 + $0x3c] sm:$0xf] %vm9061_vm10, %v9469_v27 }
 0xc6d   : > { %9075 = vst.msk [vmem:[%s14090_s30 + $0x34] sm:$0xf] %vm9061_vm10, %v9467_v18 }
 0xc6e PF: > { %s22_s21 = sadd.s32 1, %s10951_s21  }
 0xc6f   : > { %p19_p5 = scmp.ge.s32.totalorder %s22_s21, 6  }
 0xc71   :  { %21 = sbr.rel (!%p19_p5) target bundleno = 1 (0x1), region = 101 }

</bundles_post_ra>
